<compile_context>
chip_gen: v7x
topology: tpu7x:2x2x1
jax: 0.10.0
libtpu: 0.0.40
codegen_flags: <defaults>
</compile_context>

<pallas_src>
import jax
import jax.numpy as jnp
import numpy as np
from jax.experimental import pallas as pl
from jax.experimental.pallas import tpu as pltpu


# ---------------------------------------------------------------------------
# Hardware-aware configuration
# ---------------------------------------------------------------------------
def _tpu_hw_info():
    """(physical per-core VMEM bytes, dual-TensorCore chip?) with safe fallbacks."""
    kind = ""
    try:
        kind = jax.devices()[0].device_kind.lower()
    except Exception:
        pass
    dual_tc = "v7" in kind                      # v7x: 2 TensorCores / chip
    vmem = None
    try:
        vmem = int(pltpu.get_tpu_info().vmem_capacity_bytes)
    except Exception:
        vmem = None
    if not vmem:
        vmem = (64 if dual_tc else 128) * 1024 * 1024
    return vmem, dual_tc


_VMEM_BYTES, _DUAL_TC = _tpu_hw_info()
# Never request the full physical VMEM (v7x only has 64 MiB/TC); on 128 MiB parts
# go up to ~100 MiB so bigger blocks amortize per-grid-step overhead.
_VMEM_LIMIT = max(32 * 1024 * 1024,
                  min(_VMEM_BYTES - 16 * 1024 * 1024, 100 * 1024 * 1024))
_VMEM_BUDGET = _VMEM_LIMIT // 2                 # block-planning budget (headroom)

_COMPILER_PARAMS = pltpu.CompilerParams(
    dimension_semantics=("parallel", "arbitrary"),   # batch axis / adj contraction
    vmem_limit_bytes=int(_VMEM_LIMIT),
)

_ACT_DTYPE = jnp.bfloat16                       # intermediate activation storage


def _plan_conv_tiling(B, N, row_bytes, adj_itemsize):
    """Pick (batch block bb, adjacency contraction tile nk).

    VMEM per grid step ~= bb*N*(2*nk*adj_itemsize + row_bytes); row_bytes covers
    the double-buffered x / output blocks, the f32 accumulator, mask, etc."""
    budget = _VMEM_BUDGET - (1 << 20)           # small constant slack (weights, BN vecs)
    # adj block last dim must be a multiple of 128 or the full extent N.
    nk_cands = sorted({N, *[m for m in range(128, N, 128) if N % m == 0]})
    bb_cands = [d for d in range(1, B + 1) if B % d == 0]
    if _DUAL_TC and B >= 2:
        # Keep >= 2 steps on the "parallel" batch axis so both TensorCores work.
        bb_cands = [d for d in bb_cands if B // d >= 2] or [1]

    def cost(bb, nk):
        return bb * N * (2 * nk * adj_itemsize + row_bytes)

    best, best_vol = None, -1
    for bb in bb_cands:
        for nk in nk_cands:
            if cost(bb, nk) > budget:
                continue
            vol = bb * nk
            if vol > best_vol or (vol == best_vol and nk > best[1]):
                best, best_vol = (bb, nk), vol
    if best is None:
        # TODO(synk): also tile the adjacency *row* (output-node) axis for graphs so
        # large that even (bb=1, nk=128) overflows the budget.
        best = (1, nk_cands[0])
    return best


# ---------------------------------------------------------------------------
# Pallas kernels
# ---------------------------------------------------------------------------
def _conv_step(x_ref, scale_ref, shift_ref, adj_ref, acc_ref):
    """One contraction step:  acc += adj[:, :, k-tile] @ BN(x)[k-tile]."""
    k = pl.program_id(1)
    nk = adj_ref.shape[2]

    @pl.when(k == 0)
    def _():
        acc_ref[...] = jnp.zeros_like(acc_ref)

    start = pl.multiple_of(k * nk, nk)
    # Per-node BatchNorm of the *previous* layer is applied here as an affine
    # prologue (scale/shift were finished by tiny JAX glue between layers).
    xk = x_ref[:, pl.ds(start, nk), :].astype(jnp.float32)
    xk = (xk * scale_ref[pl.ds(start, nk), :][None]
          + shift_ref[pl.ds(start, nk), :][None]).astype(jnp.bfloat16)
    # Binary adjacency arrives as int8; upcast to bf16 right before the MXU.
    adj_bf = adj_ref[...].astype(jnp.float32).astype(jnp.bfloat16)
    acc_ref[...] += jnp.einsum("bij,bjd->bid", adj_bf, xk,
                               preferred_element_type=jnp.float32)


def _conv_epilogue(x_ref, scale_ref, shift_ref, w_ref, ws_ref, b_ref, acc_ref):
    """y = (adj@x_norm) @ W + x_norm @ W_self + b, then per-node L2 normalize."""
    bb, n, din = x_ref.shape
    dout = w_ref.shape[1]
    x_norm = (x_ref[...].astype(jnp.float32) * scale_ref[...][None]
              + shift_ref[...][None]).astype(jnp.bfloat16)
    h1 = acc_ref[...].astype(jnp.bfloat16)
    y = jnp.dot(h1.reshape(bb * n, din), w_ref[...],
                preferred_element_type=jnp.float32)
    y = y + jnp.dot(x_norm.reshape(bb * n, din), ws_ref[...],
                    preferred_element_type=jnp.float32)
    y = y.reshape(bb, n, dout) + b_ref[...].reshape(1, 1, dout)
    # F.normalize(y, p=2, dim=2) == y / max(||y||, 1e-12); rsqrt runs on the EUP.
    ss = jnp.sum(y * y, axis=-1, keepdims=True)
    return y * jax.lax.rsqrt(jnp.maximum(ss, 1e-24))


def _gcn_conv_relu_kernel(x_ref, scale_ref, shift_ref, adj_ref, w_ref, ws_ref,
                          b_ref, o_ref, stats_ref, acc_ref):
    _conv_step(x_ref, scale_ref, shift_ref, adj_ref, acc_ref)

    @pl.when(pl.program_id(1) == pl.num_programs(1) - 1)
    def _():
        y = _conv_epilogue(x_ref, scale_ref, shift_ref, w_ref, ws_ref, b_ref,
                           acc_ref)
        y = jnp.maximum(y, 0.0)                           # fused ReLU
        o_ref[...] = y.astype(o_ref.dtype)
        # Per-node partial BatchNorm statistics over (batch-block, feature);
        # finished by a tiny reduction in plain JAX glue.
        s0 = jnp.sum(y, axis=(0, 2))
        s1 = jnp.sum(y * y, axis=(0, 2))
        stats_ref[...] = jnp.stack([s0, s1], axis=0)[None].astype(stats_ref.dtype)


def _gcn_conv_pred_kernel(x_ref, scale_ref, shift_ref, adj_ref, w_ref, ws_ref,
                          b_ref, mask_ref, pw_ref, pb_ref, o_ref, acc_ref):
    _conv_step(x_ref, scale_ref, shift_ref, adj_ref, acc_ref)

    @pl.when(pl.program_id(1) == pl.num_programs(1) - 1)
    def _():
        y = _conv_epilogue(x_ref, scale_ref, shift_ref, w_ref, ws_ref, b_ref,
                           acc_ref)
        y = y * mask_ref[...]                             # embedding mask
        bb, n, dout = y.shape
        l = pw_ref.shape[1]
        # Per-node Linear(E, label_dim) fused here (bf16 MXU operands).
        out = jnp.dot(y.astype(jnp.bfloat16).reshape(bb * n, dout), pw_ref[...],
                      preferred_element_type=jnp.float32) + pb_ref[...]
        # TODO(synk): label_dim < 128 output block lowers to masked stores; a
        # lane-dense (B, N*L) slab would need an in-kernel relayout.
        o_ref[...] = out.reshape(bb, n, l).astype(o_ref.dtype)


# ---------------------------------------------------------------------------
# Pallas wrappers
# ---------------------------------------------------------------------------
def graph_conv_relu(x, bn_scale, bn_shift, adj, p):
    """Fused GraphConv + ReLU; also emits per-node partial BN statistics."""
    B, N, Din = x.shape
    Dout = p["w"].shape[1]
    row_bytes = 2 * Din * x.dtype.itemsize + 4 * Din + 2 * Dout * 2
    bb, nk = _plan_conv_tiling(B, N, row_bytes, adj.dtype.itemsize)
    grid = (B // bb, N // nk)
    in_specs = [
        pl.BlockSpec((bb, N, Din), lambda b, k: (b, 0, 0)),     # x (resident over k)
        pl.BlockSpec((N, 1), lambda b, k: (0, 0)),              # BN scale (per node)
        pl.BlockSpec((N, 1), lambda b, k: (0, 0)),              # BN shift
        pl.BlockSpec((bb, N, nk), lambda b, k: (b, 0, k)),      # adj column tile
        pl.BlockSpec((Din, Dout), lambda b, k: (0, 0)),         # W
        pl.BlockSpec((Din, Dout), lambda b, k: (0, 0)),         # W_self
        pl.BlockSpec((1, Dout), lambda b, k: (0, 0)),           # bias
    ]
    out_specs = [
        pl.BlockSpec((bb, N, Dout), lambda b, k: (b, 0, 0)),    # activation
        pl.BlockSpec((1, 2, N), lambda b, k: (b, 0, 0)),        # partial BN stats
    ]
    out_shape = [
        jax.ShapeDtypeStruct((B, N, Dout), _ACT_DTYPE),
        jax.ShapeDtypeStruct((B // bb, 2, N), jnp.float32),
    ]
    return pl.pallas_call(
        _gcn_conv_relu_kernel,
        out_shape=out_shape,
        grid_spec=pltpu.PrefetchScalarGridSpec(
            num_scalar_prefetch=0, grid=grid,
            in_specs=in_specs, out_specs=out_specs,
            scratch_shapes=[pltpu.VMEM((bb, N, Din), jnp.float32)]),
        compiler_params=_COMPILER_PARAMS,
    )(x, bn_scale, bn_shift, adj, p["w"], p["w_self"], p["b"])


def graph_conv_pred(x, bn_scale, bn_shift, adj, p, mask, pw, pb):
    """conv_last + embedding mask + per-node Linear prediction head, fully fused."""
    B, N, Din = x.shape
    Dout = p["w"].shape[1]
    L = pw.shape[1]
    row_bytes = 2 * Din * x.dtype.itemsize + 4 * Din + 2 * L * 4 + 2 * 4
    bb, nk = _plan_conv_tiling(B, N, row_bytes, adj.dtype.itemsize)
    grid = (B // bb, N // nk)
    in_specs = [
        pl.BlockSpec((bb, N, Din), lambda b, k: (b, 0, 0)),
        pl.BlockSpec((N, 1), lambda b, k: (0, 0)),
        pl.BlockSpec((N, 1), lambda b, k: (0, 0)),
        pl.BlockSpec((bb, N, nk), lambda b, k: (b, 0, k)),
        pl.BlockSpec((Din, Dout), lambda b, k: (0, 0)),
        pl.BlockSpec((Din, Dout), lambda b, k: (0, 0)),
        pl.BlockSpec((1, Dout), lambda b, k: (0, 0)),
        pl.BlockSpec((bb, N, 1), lambda b, k: (b, 0, 0)),       # embedding mask
        pl.BlockSpec((Dout, L), lambda b, k: (0, 0)),           # pred weight (E, L)
        pl.BlockSpec((1, L), lambda b, k: (0, 0)),              # pred bias
    ]
    return pl.pallas_call(
        _gcn_conv_pred_kernel,
        out_shape=jax.ShapeDtypeStruct((B, N, L), jnp.float32),
        grid_spec=pltpu.PrefetchScalarGridSpec(
            num_scalar_prefetch=0, grid=grid,
            in_specs=in_specs,
            out_specs=pl.BlockSpec((bb, N, L), lambda b, k: (b, 0, 0)),
            scratch_shapes=[pltpu.VMEM((bb, N, Din), jnp.float32)]),
        compiler_params=_COMPILER_PARAMS,
    )(x, bn_scale, bn_shift, adj, p["w"], p["w_self"], p["b"], mask, pw, pb)


def finish_bn(stats, batch, feat):
    """Turn per-node partial (sum, sumsq) into BatchNorm1d(num_nodes) scale/shift
    (training mode: biased variance, eps=1e-5, affine == identity)."""
    tot = jnp.sum(stats, axis=0)                      # (2, N)
    cnt = float(batch * feat)
    mean = tot[0] / cnt
    var = tot[1] / cnt - mean * mean
    scale = jax.lax.rsqrt(jnp.maximum(var, 0.0) + 1e-5)
    shift = -mean * scale
    return scale[:, None].astype(jnp.float32), shift[:, None].astype(jnp.float32)


# ---------------------------------------------------------------------------
# Parameter init (deterministic, mirrors module __init__) + one-time packing
# ---------------------------------------------------------------------------
def xavier_uniform(key, shape, gain):
    bound = gain * np.sqrt(6.0 / (shape[0] + shape[1]))
    return jax.random.uniform(key, shape, jnp.float32, -bound, bound)


def init_params(key, input_dim, hidden_dim, embedding_dim, label_dim, num_layers):
    gain = np.sqrt(2.0)  # nn.init.calculate_gain('relu')
    keys = jax.random.split(key, 4 * num_layers + 2)
    k = iter(keys)

    def conv_params(din, dout):
        return {
            "w": xavier_uniform(next(k), (din, dout), gain),
            "w_self": xavier_uniform(next(k), (din, dout), gain),
            "b": jnp.zeros((dout,), jnp.float32),
        }

    params = {
        "conv_first": conv_params(input_dim, hidden_dim),
        "conv_block": [conv_params(hidden_dim, hidden_dim)
                       for _ in range(num_layers - 2)],
        "conv_last": conv_params(hidden_dim, embedding_dim),
    }
    # pred model: nn.Linear(embedding_dim, label_dim), stored as (E, L) = W^T
    bound = 1.0 / np.sqrt(embedding_dim)
    params["pred_w"] = jax.random.uniform(
        next(k), (embedding_dim, label_dim), jnp.float32, -bound, bound)
    params["pred_b"] = jax.random.uniform(
        next(k), (label_dim,), jnp.float32, -bound, bound)
    return params


def prepare_params(params):
    """Hoisted, once-per-model weight casts (bf16 MXU operands, reshaped biases)."""
    def prep_conv(p):
        dout = p["w"].shape[1]
        return {"w": p["w"].astype(jnp.bfloat16),
                "w_self": p["w_self"].astype(jnp.bfloat16),
                "b": p["b"].reshape(1, dout).astype(jnp.float32)}
    return {
        "conv_first": prep_conv(params["conv_first"]),
        "conv_block": [prep_conv(p) for p in params["conv_block"]],
        "conv_last": prep_conv(params["conv_last"]),
        "pred_w": params["pred_w"].astype(jnp.bfloat16),
        "pred_b": params["pred_b"].reshape(1, -1).astype(jnp.float32),
    }


# ---------------------------------------------------------------------------
# Forward pass (Pallas hot path; tiny glue in plain JAX)
# ---------------------------------------------------------------------------
def construct_mask(max_nodes, batch_num_nodes):
    nn_arr = jnp.asarray(batch_num_nodes, jnp.int32)
    mask = (jnp.arange(max_nodes)[None, :] < nn_arr[:, None]).astype(jnp.float32)
    return mask[..., None]                                    # (B, N, 1)


def gcn_encoder_forward(prepped, x, adj, batch_num_nodes=None, *,
                        adj_is_binary=True, return_adj_att=True):
    # GcnEncoderNode.forward default path.
    # TODO(synk): att=True attention re-weighting of adj is not implemented.
    # TODO(synk): adj_v edge-feature aggregation and dropout>0 are not implemented.
    # TODO(synk): new_node_idx selection / extract_feats early return not implemented.
    # TODO(synk): when the whole int8 adjacency fits VMEM, the full layer stack could
    #             be fused into a single pallas_call (adj DMA'd once, activations
    #             never leave VMEM).
    B, N, _ = x.shape
    if batch_num_nodes is not None:
        mask = construct_mask(N, batch_num_nodes)
    else:
        mask = jnp.ones((B, N, 1), jnp.float32)

    # Binary adjacency streams from HBM as int8 (dominant, bandwidth-bound operand);
    # upcast to bf16 inside the kernel. Non-binary adjacency falls back to bf16.
    adj_k = adj.astype(jnp.int8) if adj_is_binary else adj.astype(jnp.bfloat16)

    x_act = x.astype(_ACT_DTYPE)
    ones = jnp.ones((N, 1), jnp.float32)
    zeros = jnp.zeros((N, 1), jnp.float32)

    # conv_first -> ReLU (fused); BN applied as the next layer's prologue.
    h, stats = graph_conv_relu(x_act, ones, zeros, adj_k, prepped["conv_first"])
    scale, shift = finish_bn(stats, B, h.shape[-1])
    for p in prepped["conv_block"]:
        h, stats = graph_conv_relu(h, scale, shift, adj_k, p)
        scale, shift = finish_bn(stats, B, h.shape[-1])
    # conv_last + embedding mask + per-node Linear, fully fused.
    pred = graph_conv_pred(h, scale, shift, adj_k, prepped["conv_last"],
                           mask, prepped["pred_w"], prepped["pred_b"])

    if return_adj_att:
        # att=False: every GraphConv returns adj unchanged; gcn_forward stacks
        # (num_layers - 1) copies -> a single broadcast, no concat copies.
        n_stack = 1 + len(prepped["conv_block"])
        adj_att = jnp.broadcast_to(adj[..., None], (B, N, N, n_stack))
    else:
        adj_att = None
    return pred, adj_att


# ---------------------------------------------------------------------------
# Pure-JAX (f32) reference for sanity checking
# ---------------------------------------------------------------------------
def ref_forward(params, x, adj, batch_num_nodes):
    B, N, _ = x.shape
    mask = (construct_mask(N, batch_num_nodes) if batch_num_nodes is not None
            else jnp.ones((B, N, 1), jnp.float32))

    def conv(h, p):
        y = jnp.einsum("bij,bjd->bid", adj, h)
        y = (jnp.einsum("bnd,de->bne", y, p["w"])
             + jnp.einsum("bnd,de->bne", h, p["w_self"]) + p["b"])
        nrm = jnp.sqrt(jnp.sum(y * y, axis=-1, keepdims=True))
        return y / jnp.maximum(nrm, 1e-12)

    def relu_bn(h):
        h = jnp.maximum(h, 0.0)
        m = jnp.mean(h, axis=(0, 2), keepdims=True)
        v = jnp.mean((h - m) ** 2, axis=(0, 2), keepdims=True)
        return (h - m) / jnp.sqrt(v + 1e-5)

    h = relu_bn(conv(x, params["conv_first"]))
    for p in params["conv_block"]:
        h = relu_bn(conv(h, p))
    h = conv(h, params["conv_last"])
    emb = h * mask
    pred = jnp.einsum("bne,el->bnl", emb, params["pred_w"]) + params["pred_b"]
    n_stack = 1 + len(params["conv_block"])
    adj_att = jnp.stack([adj] * n_stack, axis=3)
    return pred, adj_att


# ---------------------------------------------------------------------------
if __name__ == "__main__":
    B, N = 4, 16
    input_dim, hidden_dim, embedding_dim, label_dim, num_layers = 8, 32, 32, 4, 3

    key = jax.random.PRNGKey(0)
    kx, kadj, kp = jax.random.split(key, 3)

    x = jax.random.normal(kx, (B, N, input_dim), jnp.float32)
    adj = (jax.random.uniform(kadj, (B, N, N)) > 0.5).astype(jnp.float32)
    batch_num_nodes = jnp.array([16, 12, 16, 9], jnp.int32)

    params = init_params(kp, input_dim, hidden_dim, embedding_dim,
                         label_dim, num_layers)
    prepped = prepare_params(params)           # hoisted bf16 casts / reshapes

    fwd = jax.jit(gcn_encoder_forward,
                  static_argnames=("adj_is_binary", "return_adj_att"))
    ypred, adj_att = fwd(prepped, x, adj, batch_num_nodes)
    ypred = jax.block_until_ready(ypred)
    adj_att = jax.block_until_ready(adj_att)

    ref_pred, ref_att = ref_forward(params, x, adj, batch_num_nodes)
    ref_pred = jax.block_until_ready(ref_pred)

    assert ypred.shape == (B, N, label_dim)
    assert adj_att.shape == (B, N, N, num_layers - 1)
    # bf16 MXU operands + bf16 intermediate activations (f32 accumulation) vs. a
    # pure-f32 reference.
    np.testing.assert_allclose(np.asarray(ypred), np.asarray(ref_pred),
                               rtol=3e-2, atol=3e-2)
    np.testing.assert_allclose(np.asarray(adj_att), np.asarray(ref_att),
                               rtol=0, atol=0)
    print("KERNEL_OK")
</pallas_src>

<mosaic_0001>
module attributes {stable_mosaic.version = 11 : i64} {
  func.func @_gcn_conv_relu_kernel(%arg0: i32, %arg1: i32, %arg2: memref<4x16x8xbf16, #tpu.memory_space<vmem>>, %arg3: memref<16x1xf32, #tpu.memory_space<vmem>>, %arg4: memref<16x1xf32, #tpu.memory_space<vmem>>, %arg5: memref<4x16x16xi8, #tpu.memory_space<vmem>>, %arg6: memref<8x32xbf16, #tpu.memory_space<vmem>>, %arg7: memref<8x32xbf16, #tpu.memory_space<vmem>>, %arg8: memref<1x32xf32, #tpu.memory_space<vmem>>, %arg9: memref<4x16x32xbf16, #tpu.memory_space<vmem>>, %arg10: memref<1x2x16xf32, #tpu.memory_space<vmem>>, %arg11: memref<4x16x8xf32, #tpu.memory_space<vmem>>) attributes {dimension_semantics = [#tpu.dimension_semantics<parallel>, #tpu.dimension_semantics<arbitrary>], iteration_bounds = array<i64: 1, 1>, scalar_prefetch = 0 : i64, scratch_operands = 1 : i64, tpu.core_type = #tpu.core_type<tc>, window_params = [{transform_indices = @transform_0, window_bounds = array<i64: 4, 16, 8>}, {pipeline_mode = #tpu.pipeline_mode<synchronous>, transform_indices = @transform_1, window_bounds = array<i64: 16, 1>}, {pipeline_mode = #tpu.pipeline_mode<synchronous>, transform_indices = @transform_2, window_bounds = array<i64: 16, 1>}, {transform_indices = @transform_3, window_bounds = array<i64: 4, 16, 16>}, {pipeline_mode = #tpu.pipeline_mode<synchronous>, transform_indices = @transform_4, window_bounds = array<i64: 8, 32>}, {pipeline_mode = #tpu.pipeline_mode<synchronous>, transform_indices = @transform_5, window_bounds = array<i64: 8, 32>}, {pipeline_mode = #tpu.pipeline_mode<synchronous>, transform_indices = @transform_6, window_bounds = array<i64: 1, 32>}, {transform_indices = @transform_7, window_bounds = array<i64: 4, 16, 32>}, {transform_indices = @transform_8, window_bounds = array<i64: 1, 2, 16>}]} {
    %c0_i32 = arith.constant 0 : i32
    %0 = arith.cmpi eq, %arg1, %c0_i32 : i32
    %1 = arith.extui %0 : i1 to i32
    %c0_i32_0 = arith.constant 0 : i32
    %2 = arith.cmpi ne, %1, %c0_i32_0 : i32
    scf.if %2 {
      %cst_15 = arith.constant 0.000000e+00 : f32
      %29 = vector.broadcast %cst_15 : f32 to vector<4x16x8xf32>
      %c0_16 = arith.constant 0 : index
      %c0_17 = arith.constant 0 : index
      %c0_18 = arith.constant 0 : index
      %30 = vector.load %arg11[%c0_16, %c0_17, %c0_18] : memref<4x16x8xf32, #tpu.memory_space<vmem>>, vector<4x16x8xf32>
      tpu.vector_store %arg11[%c0_16, %c0_17, %c0_18], %29 {strides = array<i32>} : memref<4x16x8xf32, #tpu.memory_space<vmem>>, vector<4x16x8xf32>,
    } else {
    }
    %c16_i32 = arith.constant 16 : i32
    %3 = arith.muli %arg1, %c16_i32 : i32
    %4 = tpu.assume_multiple %3, 16 : i32
    %c0 = arith.constant 0 : index
    %5 = arith.index_cast %4 : i32 to index
    %c0_1 = arith.constant 0 : index
    %6 = vector.load %arg2[%c0, %5, %c0_1] : memref<4x16x8xbf16, #tpu.memory_space<vmem>>, vector<4x16x8xbf16>
    %7 = arith.extf %6 : vector<4x16x8xbf16> to vector<4x16x8xf32>
    %8 = arith.index_cast %4 : i32 to index
    %c0_2 = arith.constant 0 : index
    %9 = vector.load %arg3[%8, %c0_2] : memref<16x1xf32, #tpu.memory_space<vmem>>, vector<16x1xf32>
    %10 = vector.shape_cast %9 : vector<16x1xf32> to vector<1x16x1xf32>
    %11 = vector.broadcast %10 : vector<1x16x1xf32> to vector<4x16x8xf32>
    %12 = arith.mulf %7, %11 : vector<4x16x8xf32>
    %13 = arith.index_cast %4 : i32 to index
    %c0_3 = arith.constant 0 : index
    %14 = vector.load %arg4[%13, %c0_3] : memref<16x1xf32, #tpu.memory_space<vmem>>, vector<16x1xf32>
    %15 = vector.shape_cast %14 : vector<16x1xf32> to vector<1x16x1xf32>
    %16 = vector.broadcast %15 : vector<1x16x1xf32> to vector<4x16x8xf32>
    %17 = arith.addf %12, %16 : vector<4x16x8xf32>
    %18 = arith.truncf %17 : vector<4x16x8xf32> to vector<4x16x8xbf16>
    %c0_4 = arith.constant 0 : index
    %c0_5 = arith.constant 0 : index
    %c0_6 = arith.constant 0 : index
    %19 = vector.load %arg5[%c0_4, %c0_5, %c0_6] : memref<4x16x16xi8, #tpu.memory_space<vmem>>, vector<4x16x16xi8>
    %20 = arith.sitofp %19 : vector<4x16x16xi8> to vector<4x16x16xf32>
    %21 = arith.truncf %20 : vector<4x16x16xf32> to vector<4x16x16xbf16>
    %c0_7 = arith.constant 0 : index
    %c0_8 = arith.constant 0 : index
    %c0_9 = arith.constant 0 : index
    %22 = vector.load %arg11[%c0_7, %c0_8, %c0_9] : memref<4x16x8xf32, #tpu.memory_space<vmem>>, vector<4x16x8xf32>
    "tpu.trace_start"() <{level = 10 : i32, message = "bij,bjd->bid"}> : () -> ()
    %cst = arith.constant dense<0.000000e+00> : vector<4x16x8xf32>
    %23 = tpu.matmul %21, %18, %cst {dimension_numbers = #tpu.dot_dimension_numbers<[2], [1], [1], [2], [0, 0, 0, 1, 1, 2], [0], [0]>} : vector<4x16x16xbf16>, vector<4x16x8xbf16>, vector<4x16x8xf32> -> vector<4x16x8xf32>
    "tpu.trace_stop"() : () -> ()
    %24 = arith.addf %22, %23 : vector<4x16x8xf32>
    %c0_10 = arith.constant 0 : index
    %c0_11 = arith.constant 0 : index
    %c0_12 = arith.constant 0 : index
    %25 = vector.load %arg11[%c0_10, %c0_11, %c0_12] : memref<4x16x8xf32, #tpu.memory_space<vmem>>, vector<4x16x8xf32>
    tpu.vector_store %arg11[%c0_10, %c0_11, %c0_12], %24 {strides = array<i32>} : memref<4x16x8xf32, #tpu.memory_space<vmem>>, vector<4x16x8xf32>,
    %c0_i32_13 = arith.constant 0 : i32
    %26 = arith.cmpi eq, %arg1, %c0_i32_13 : i32
    %27 = arith.extui %26 : i1 to i32
    %c0_i32_14 = arith.constant 0 : i32
    %28 = arith.cmpi ne, %27, %c0_i32_14 : i32
    scf.if %28 {
      %c0_15 = arith.constant 0 : index
      %c0_16 = arith.constant 0 : index
      %c0_17 = arith.constant 0 : index
      %29 = vector.load %arg2[%c0_15, %c0_16, %c0_17] : memref<4x16x8xbf16, #tpu.memory_space<vmem>>, vector<4x16x8xbf16>
      %30 = arith.extf %29 : vector<4x16x8xbf16> to vector<4x16x8xf32>
      %c0_18 = arith.constant 0 : index
      %c0_19 = arith.constant 0 : index
      %31 = vector.load %arg3[%c0_18, %c0_19] : memref<16x1xf32, #tpu.memory_space<vmem>>, vector<16x1xf32>
      %32 = vector.shape_cast %31 : vector<16x1xf32> to vector<1x16x1xf32>
      %33 = vector.broadcast %32 : vector<1x16x1xf32> to vector<4x16x8xf32>
      %34 = arith.mulf %30, %33 : vector<4x16x8xf32>
      %c0_20 = arith.constant 0 : index
      %c0_21 = arith.constant 0 : index
      %35 = vector.load %arg4[%c0_20, %c0_21] : memref<16x1xf32, #tpu.memory_space<vmem>>, vector<16x1xf32>
      %36 = vector.shape_cast %35 : vector<16x1xf32> to vector<1x16x1xf32>
      %37 = vector.broadcast %36 : vector<1x16x1xf32> to vector<4x16x8xf32>
      %38 = arith.addf %34, %37 : vector<4x16x8xf32>
      %39 = arith.truncf %38 : vector<4x16x8xf32> to vector<4x16x8xbf16>
      %c0_22 = arith.constant 0 : index
      %c0_23 = arith.constant 0 : index
      %c0_24 = arith.constant 0 : index
      %40 = vector.load %arg11[%c0_22, %c0_23, %c0_24] : memref<4x16x8xf32, #tpu.memory_space<vmem>>, vector<4x16x8xf32>
      %41 = arith.truncf %40 : vector<4x16x8xf32> to vector<4x16x8xbf16>
      %42 = vector.shape_cast %41 : vector<4x16x8xbf16> to vector<64x8xbf16>
      %c0_25 = arith.constant 0 : index
      %c0_26 = arith.constant 0 : index
      %43 = vector.load %arg6[%c0_25, %c0_26] : memref<8x32xbf16, #tpu.memory_space<vmem>>, vector<8x32xbf16>
      %cst_27 = arith.constant dense<0.000000e+00> : vector<64x32xf32>
      %44 = tpu.matmul %42, %43, %cst_27 {dimension_numbers = #tpu.dot_dimension_numbers<[1], [0], [0], [1], [0, 0, 1, 1], [], []>} : vector<64x8xbf16>, vector<8x32xbf16>, vector<64x32xf32> -> vector<64x32xf32>
      %45 = vector.shape_cast %39 : vector<4x16x8xbf16> to vector<64x8xbf16>
      %c0_28 = arith.constant 0 : index
      %c0_29 = arith.constant 0 : index
      %46 = vector.load %arg7[%c0_28, %c0_29] : memref<8x32xbf16, #tpu.memory_space<vmem>>, vector<8x32xbf16>
      %cst_30 = arith.constant dense<0.000000e+00> : vector<64x32xf32>
      %47 = tpu.matmul %45, %46, %cst_30 {dimension_numbers = #tpu.dot_dimension_numbers<[1], [0], [0], [1], [0, 0, 1, 1], [], []>} : vector<64x8xbf16>, vector<8x32xbf16>, vector<64x32xf32> -> vector<64x32xf32>
      %48 = arith.addf %44, %47 : vector<64x32xf32>
      %49 = vector.shape_cast %48 : vector<64x32xf32> to vector<4x16x32xf32>
      %c0_31 = arith.constant 0 : index
      %c0_32 = arith.constant 0 : index
      %50 = vector.load %arg8[%c0_31, %c0_32] : memref<1x32xf32, #tpu.memory_space<vmem>>, vector<1x32xf32>
      %51 = vector.shape_cast %50 : vector<1x32xf32> to vector<1x1x32xf32>
      %52 = vector.broadcast %51 : vector<1x1x32xf32> to vector<4x16x32xf32>
      %53 = arith.addf %49, %52 : vector<4x16x32xf32>
      %54 = arith.mulf %53, %53 : vector<4x16x32xf32>
      %cst_33 = arith.constant dense<0.000000e+00> : vector<4x16xf32>
      %55 = vector.multi_reduction <add>, %54, %cst_33 [2] : vector<4x16x32xf32> to vector<4x16xf32>
      %56 = vector.shape_cast %55 : vector<4x16xf32> to vector<4x16x1xf32>
      %cst_34 = arith.constant 1.000000e-24 : f32
      %57 = vector.broadcast %cst_34 : f32 to vector<4x16x1xf32>
      %58 = arith.maximumf %56, %57 : vector<4x16x1xf32>
      %59 = math.rsqrt %58 : vector<4x16x1xf32>
      %60 = vector.broadcast %59 : vector<4x16x1xf32> to vector<4x16x32xf32>
      %61 = arith.mulf %53, %60 : vector<4x16x32xf32>
      %cst_35 = arith.constant 0.000000e+00 : f32
      %62 = vector.broadcast %cst_35 : f32 to vector<4x16x32xf32>
      %63 = arith.maximumf %61, %62 : vector<4x16x32xf32>
      %64 = arith.truncf %63 : vector<4x16x32xf32> to vector<4x16x32xbf16>
      %c0_36 = arith.constant 0 : index
      %c0_37 = arith.constant 0 : index
      %c0_38 = arith.constant 0 : index
      %65 = vector.load %arg9[%c0_36, %c0_37, %c0_38] : memref<4x16x32xbf16, #tpu.memory_space<vmem>>, vector<4x16x32xbf16>
      tpu.vector_store %arg9[%c0_36, %c0_37, %c0_38], %64 {strides = array<i32>} : memref<4x16x32xbf16, #tpu.memory_space<vmem>>, vector<4x16x32xbf16>,
      %cst_39 = arith.constant dense<0.000000e+00> : vector<16xf32>
      %66 = vector.multi_reduction <add>, %63, %cst_39 [0, 2] : vector<4x16x32xf32> to vector<16xf32>
      %67 = arith.mulf %63, %63 : vector<4x16x32xf32>
      %cst_40 = arith.constant dense<0.000000e+00> : vector<16xf32>
      %68 = vector.multi_reduction <add>, %67, %cst_40 [0, 2] : vector<4x16x32xf32> to vector<16xf32>
      %69 = vector.shape_cast %66 : vector<16xf32> to vector<1x16xf32>
      %70 = vector.shape_cast %68 : vector<16xf32> to vector<1x16xf32>
      %71 = tpu.concatenate %69, %70 in 0 : vector<1x16xf32>, vector<1x16xf32> -> vector<2x16xf32>
      %72 = vector.shape_cast %71 : vector<2x16xf32> to vector<1x2x16xf32>
      %c0_41 = arith.constant 0 : index
      %c0_42 = arith.constant 0 : index
      %c0_43 = arith.constant 0 : index
      %73 = vector.load %arg10[%c0_41, %c0_42, %c0_43] : memref<1x2x16xf32, #tpu.memory_space<vmem>>, vector<1x2x16xf32>
      tpu.vector_store %arg10[%c0_41, %c0_42, %c0_43], %72 {strides = array<i32>} : memref<1x2x16xf32, #tpu.memory_space<vmem>>, vector<1x2x16xf32>,
    } else {
    }
    return
  }
  func.func @transform_0(%arg0: i32, %arg1: i32) -> (i32, i32, i32) {
    %c0_i32 = arith.constant 0 : i32
    %c0_i32_0 = arith.constant 0 : i32
    %c0_i32_1 = arith.constant 0 : i32
    return %arg0, %c0_i32, %c0_i32_0 : i32, i32, i32
  }
  func.func @transform_1(%arg0: i32, %arg1: i32) -> (i32, i32) {
    %c0_i32 = arith.constant 0 : i32
    %c0_i32_0 = arith.constant 0 : i32
    %c0_i32_1 = arith.constant 0 : i32
    return %c0_i32, %c0_i32_0 : i32, i32
  }
  func.func @transform_2(%arg0: i32, %arg1: i32) -> (i32, i32) {
    %c0_i32 = arith.constant 0 : i32
    %c0_i32_0 = arith.constant 0 : i32
    %c0_i32_1 = arith.constant 0 : i32
    return %c0_i32, %c0_i32_0 : i32, i32
  }
  func.func @transform_3(%arg0: i32, %arg1: i32) -> (i32, i32, i32) {
    %c0_i32 = arith.constant 0 : i32
    %c0_i32_0 = arith.constant 0 : i32
    return %arg0, %c0_i32, %arg1 : i32, i32, i32
  }
  func.func @transform_4(%arg0: i32, %arg1: i32) -> (i32, i32) {
    %c0_i32 = arith.constant 0 : i32
    %c0_i32_0 = arith.constant 0 : i32
    %c0_i32_1 = arith.constant 0 : i32
    return %c0_i32, %c0_i32_0 : i32, i32
  }
  func.func @transform_5(%arg0: i32, %arg1: i32) -> (i32, i32) {
    %c0_i32 = arith.constant 0 : i32
    %c0_i32_0 = arith.constant 0 : i32
    %c0_i32_1 = arith.constant 0 : i32
    return %c0_i32, %c0_i32_0 : i32, i32
  }
  func.func @transform_6(%arg0: i32, %arg1: i32) -> (i32, i32) {
    %c0_i32 = arith.constant 0 : i32
    %c0_i32_0 = arith.constant 0 : i32
    %c0_i32_1 = arith.constant 0 : i32
    return %c0_i32, %c0_i32_0 : i32, i32
  }
  func.func @transform_7(%arg0: i32, %arg1: i32) -> (i32, i32, i32) {
    %c0_i32 = arith.constant 0 : i32
    %c0_i32_0 = arith.constant 0 : i32
    %c0_i32_1 = arith.constant 0 : i32
    return %arg0, %c0_i32, %c0_i32_0 : i32, i32, i32
  }
  func.func @transform_8(%arg0: i32, %arg1: i32) -> (i32, i32, i32) {
    %c0_i32 = arith.constant 0 : i32
    %c0_i32_0 = arith.constant 0 : i32
    %c0_i32_1 = arith.constant 0 : i32
    return %arg0, %c0_i32, %c0_i32_0 : i32, i32, i32
  }
}

module attributes {stable_mosaic.version = 11 : i64} {
  func.func @_gcn_conv_relu_kernel(%arg0: i32, %arg1: i32, %arg2: memref<4x16x32xbf16, #tpu.memory_space<vmem>>, %arg3: memref<16x1xf32, #tpu.memory_space<vmem>>, %arg4: memref<16x1xf32, #tpu.memory_space<vmem>>, %arg5: memref<4x16x16xi8, #tpu.memory_space<vmem>>, %arg6: memref<32x32xbf16, #tpu.memory_space<vmem>>, %arg7: memref<32x32xbf16, #tpu.memory_space<vmem>>, %arg8: memref<1x32xf32, #tpu.memory_space<vmem>>, %arg9: memref<4x16x32xbf16, #tpu.memory_space<vmem>>, %arg10: memref<1x2x16xf32, #tpu.memory_space<vmem>>, %arg11: memref<4x16x32xf32, #tpu.memory_space<vmem>>) attributes {dimension_semantics = [#tpu.dimension_semantics<parallel>, #tpu.dimension_semantics<arbitrary>], iteration_bounds = array<i64: 1, 1>, scalar_prefetch = 0 : i64, scratch_operands = 1 : i64, tpu.core_type = #tpu.core_type<tc>, window_params = [{transform_indices = @transform_0, window_bounds = array<i64: 4, 16, 32>}, {pipeline_mode = #tpu.pipeline_mode<synchronous>, transform_indices = @transform_1, window_bounds = array<i64: 16, 1>}, {pipeline_mode = #tpu.pipeline_mode<synchronous>, transform_indices = @transform_2, window_bounds = array<i64: 16, 1>}, {transform_indices = @transform_3, window_bounds = array<i64: 4, 16, 16>}, {pipeline_mode = #tpu.pipeline_mode<synchronous>, transform_indices = @transform_4, window_bounds = array<i64: 32, 32>}, {pipeline_mode = #tpu.pipeline_mode<synchronous>, transform_indices = @transform_5, window_bounds = array<i64: 32, 32>}, {pipeline_mode = #tpu.pipeline_mode<synchronous>, transform_indices = @transform_6, window_bounds = array<i64: 1, 32>}, {transform_indices = @transform_7, window_bounds = array<i64: 4, 16, 32>}, {transform_indices = @transform_8, window_bounds = array<i64: 1, 2, 16>}]} {
    %c0_i32 = arith.constant 0 : i32
    %0 = arith.cmpi eq, %arg1, %c0_i32 : i32
    %1 = arith.extui %0 : i1 to i32
    %c0_i32_0 = arith.constant 0 : i32
    %2 = arith.cmpi ne, %1, %c0_i32_0 : i32
    scf.if %2 {
      %cst_15 = arith.constant 0.000000e+00 : f32
      %29 = vector.broadcast %cst_15 : f32 to vector<4x16x32xf32>
      %c0_16 = arith.constant 0 : index
      %c0_17 = arith.constant 0 : index
      %c0_18 = arith.constant 0 : index
      %30 = vector.load %arg11[%c0_16, %c0_17, %c0_18] : memref<4x16x32xf32, #tpu.memory_space<vmem>>, vector<4x16x32xf32>
      tpu.vector_store %arg11[%c0_16, %c0_17, %c0_18], %29 {strides = array<i32>} : memref<4x16x32xf32, #tpu.memory_space<vmem>>, vector<4x16x32xf32>,
    } else {
    }
    %c16_i32 = arith.constant 16 : i32
    %3 = arith.muli %arg1, %c16_i32 : i32
    %4 = tpu.assume_multiple %3, 16 : i32
    %c0 = arith.constant 0 : index
    %5 = arith.index_cast %4 : i32 to index
    %c0_1 = arith.constant 0 : index
    %6 = vector.load %arg2[%c0, %5, %c0_1] : memref<4x16x32xbf16, #tpu.memory_space<vmem>>, vector<4x16x32xbf16>
    %7 = arith.extf %6 : vector<4x16x32xbf16> to vector<4x16x32xf32>
    %8 = arith.index_cast %4 : i32 to index
    %c0_2 = arith.constant 0 : index
    %9 = vector.load %arg3[%8, %c0_2] : memref<16x1xf32, #tpu.memory_space<vmem>>, vector<16x1xf32>
    %10 = vector.shape_cast %9 : vector<16x1xf32> to vector<1x16x1xf32>
    %11 = vector.broadcast %10 : vector<1x16x1xf32> to vector<4x16x32xf32>
    %12 = arith.mulf %7, %11 : vector<4x16x32xf32>
    %13 = arith.index_cast %4 : i32 to index
    %c0_3 = arith.constant 0 : index
    %14 = vector.load %arg4[%13, %c0_3] : memref<16x1xf32, #tpu.memory_space<vmem>>, vector<16x1xf32>
    %15 = vector.shape_cast %14 : vector<16x1xf32> to vector<1x16x1xf32>
    %16 = vector.broadcast %15 : vector<1x16x1xf32> to vector<4x16x32xf32>
    %17 = arith.addf %12, %16 : vector<4x16x32xf32>
    %18 = arith.truncf %17 : vector<4x16x32xf32> to vector<4x16x32xbf16>
    %c0_4 = arith.constant 0 : index
    %c0_5 = arith.constant 0 : index
    %c0_6 = arith.constant 0 : index
    %19 = vector.load %arg5[%c0_4, %c0_5, %c0_6] : memref<4x16x16xi8, #tpu.memory_space<vmem>>, vector<4x16x16xi8>
    %20 = arith.sitofp %19 : vector<4x16x16xi8> to vector<4x16x16xf32>
    %21 = arith.truncf %20 : vector<4x16x16xf32> to vector<4x16x16xbf16>
    %c0_7 = arith.constant 0 : index
    %c0_8 = arith.constant 0 : index
    %c0_9 = arith.constant 0 : index
    %22 = vector.load %arg11[%c0_7, %c0_8, %c0_9] : memref<4x16x32xf32, #tpu.memory_space<vmem>>, vector<4x16x32xf32>
    "tpu.trace_start"() <{level = 10 : i32, message = "bij,bjd->bid"}> : () -> ()
    %cst = arith.constant dense<0.000000e+00> : vector<4x16x32xf32>
    %23 = tpu.matmul %21, %18, %cst {dimension_numbers = #tpu.dot_dimension_numbers<[2], [1], [1], [2], [0, 0, 0, 1, 1, 2], [0], [0]>} : vector<4x16x16xbf16>, vector<4x16x32xbf16>, vector<4x16x32xf32> -> vector<4x16x32xf32>
    "tpu.trace_stop"() : () -> ()
    %24 = arith.addf %22, %23 : vector<4x16x32xf32>
    %c0_10 = arith.constant 0 : index
    %c0_11 = arith.constant 0 : index
    %c0_12 = arith.constant 0 : index
    %25 = vector.load %arg11[%c0_10, %c0_11, %c0_12] : memref<4x16x32xf32, #tpu.memory_space<vmem>>, vector<4x16x32xf32>
    tpu.vector_store %arg11[%c0_10, %c0_11, %c0_12], %24 {strides = array<i32>} : memref<4x16x32xf32, #tpu.memory_space<vmem>>, vector<4x16x32xf32>,
    %c0_i32_13 = arith.constant 0 : i32
    %26 = arith.cmpi eq, %arg1, %c0_i32_13 : i32
    %27 = arith.extui %26 : i1 to i32
    %c0_i32_14 = arith.constant 0 : i32
    %28 = arith.cmpi ne, %27, %c0_i32_14 : i32
    scf.if %28 {
      %c0_15 = arith.constant 0 : index
      %c0_16 = arith.constant 0 : index
      %c0_17 = arith.constant 0 : index
      %29 = vector.load %arg2[%c0_15, %c0_16, %c0_17] : memref<4x16x32xbf16, #tpu.memory_space<vmem>>, vector<4x16x32xbf16>
      %30 = arith.extf %29 : vector<4x16x32xbf16> to vector<4x16x32xf32>
      %c0_18 = arith.constant 0 : index
      %c0_19 = arith.constant 0 : index
      %31 = vector.load %arg3[%c0_18, %c0_19] : memref<16x1xf32, #tpu.memory_space<vmem>>, vector<16x1xf32>
      %32 = vector.shape_cast %31 : vector<16x1xf32> to vector<1x16x1xf32>
      %33 = vector.broadcast %32 : vector<1x16x1xf32> to vector<4x16x32xf32>
      %34 = arith.mulf %30, %33 : vector<4x16x32xf32>
      %c0_20 = arith.constant 0 : index
      %c0_21 = arith.constant 0 : index
      %35 = vector.load %arg4[%c0_20, %c0_21] : memref<16x1xf32, #tpu.memory_space<vmem>>, vector<16x1xf32>
      %36 = vector.shape_cast %35 : vector<16x1xf32> to vector<1x16x1xf32>
      %37 = vector.broadcast %36 : vector<1x16x1xf32> to vector<4x16x32xf32>
      %38 = arith.addf %34, %37 : vector<4x16x32xf32>
      %39 = arith.truncf %38 : vector<4x16x32xf32> to vector<4x16x32xbf16>
      %c0_22 = arith.constant 0 : index
      %c0_23 = arith.constant 0 : index
      %c0_24 = arith.constant 0 : index
      %40 = vector.load %arg11[%c0_22, %c0_23, %c0_24] : memref<4x16x32xf32, #tpu.memory_space<vmem>>, vector<4x16x32xf32>
      %41 = arith.truncf %40 : vector<4x16x32xf32> to vector<4x16x32xbf16>
      %42 = vector.shape_cast %41 : vector<4x16x32xbf16> to vector<64x32xbf16>
      %c0_25 = arith.constant 0 : index
      %c0_26 = arith.constant 0 : index
      %43 = vector.load %arg6[%c0_25, %c0_26] : memref<32x32xbf16, #tpu.memory_space<vmem>>, vector<32x32xbf16>
      %cst_27 = arith.constant dense<0.000000e+00> : vector<64x32xf32>
      %44 = tpu.matmul %42, %43, %cst_27 {dimension_numbers = #tpu.dot_dimension_numbers<[1], [0], [0], [1], [0, 0, 1, 1], [], []>} : vector<64x32xbf16>, vector<32x32xbf16>, vector<64x32xf32> -> vector<64x32xf32>
      %45 = vector.shape_cast %39 : vector<4x16x32xbf16> to vector<64x32xbf16>
      %c0_28 = arith.constant 0 : index
      %c0_29 = arith.constant 0 : index
      %46 = vector.load %arg7[%c0_28, %c0_29] : memref<32x32xbf16, #tpu.memory_space<vmem>>, vector<32x32xbf16>
      %cst_30 = arith.constant dense<0.000000e+00> : vector<64x32xf32>
      %47 = tpu.matmul %45, %46, %cst_30 {dimension_numbers = #tpu.dot_dimension_numbers<[1], [0], [0], [1], [0, 0, 1, 1], [], []>} : vector<64x32xbf16>, vector<32x32xbf16>, vector<64x32xf32> -> vector<64x32xf32>
      %48 = arith.addf %44, %47 : vector<64x32xf32>
      %49 = vector.shape_cast %48 : vector<64x32xf32> to vector<4x16x32xf32>
      %c0_31 = arith.constant 0 : index
      %c0_32 = arith.constant 0 : index
      %50 = vector.load %arg8[%c0_31, %c0_32] : memref<1x32xf32, #tpu.memory_space<vmem>>, vector<1x32xf32>
      %51 = vector.shape_cast %50 : vector<1x32xf32> to vector<1x1x32xf32>
      %52 = vector.broadcast %51 : vector<1x1x32xf32> to vector<4x16x32xf32>
      %53 = arith.addf %49, %52 : vector<4x16x32xf32>
      %54 = arith.mulf %53, %53 : vector<4x16x32xf32>
      %cst_33 = arith.constant dense<0.000000e+00> : vector<4x16xf32>
      %55 = vector.multi_reduction <add>, %54, %cst_33 [2] : vector<4x16x32xf32> to vector<4x16xf32>
      %56 = vector.shape_cast %55 : vector<4x16xf32> to vector<4x16x1xf32>
      %cst_34 = arith.constant 1.000000e-24 : f32
      %57 = vector.broadcast %cst_34 : f32 to vector<4x16x1xf32>
      %58 = arith.maximumf %56, %57 : vector<4x16x1xf32>
      %59 = math.rsqrt %58 : vector<4x16x1xf32>
      %60 = vector.broadcast %59 : vector<4x16x1xf32> to vector<4x16x32xf32>
      %61 = arith.mulf %53, %60 : vector<4x16x32xf32>
      %cst_35 = arith.constant 0.000000e+00 : f32
      %62 = vector.broadcast %cst_35 : f32 to vector<4x16x32xf32>
      %63 = arith.maximumf %61, %62 : vector<4x16x32xf32>
      %64 = arith.truncf %63 : vector<4x16x32xf32> to vector<4x16x32xbf16>
      %c0_36 = arith.constant 0 : index
      %c0_37 = arith.constant 0 : index
      %c0_38 = arith.constant 0 : index
      %65 = vector.load %arg9[%c0_36, %c0_37, %c0_38] : memref<4x16x32xbf16, #tpu.memory_space<vmem>>, vector<4x16x32xbf16>
      tpu.vector_store %arg9[%c0_36, %c0_37, %c0_38], %64 {strides = array<i32>} : memref<4x16x32xbf16, #tpu.memory_space<vmem>>, vector<4x16x32xbf16>,
      %cst_39 = arith.constant dense<0.000000e+00> : vector<16xf32>
      %66 = vector.multi_reduction <add>, %63, %cst_39 [0, 2] : vector<4x16x32xf32> to vector<16xf32>
      %67 = arith.mulf %63, %63 : vector<4x16x32xf32>
      %cst_40 = arith.constant dense<0.000000e+00> : vector<16xf32>
      %68 = vector.multi_reduction <add>, %67, %cst_40 [0, 2] : vector<4x16x32xf32> to vector<16xf32>
      %69 = vector.shape_cast %66 : vector<16xf32> to vector<1x16xf32>
      %70 = vector.shape_cast %68 : vector<16xf32> to vector<1x16xf32>
      %71 = tpu.concatenate %69, %70 in 0 : vector<1x16xf32>, vector<1x16xf32> -> vector<2x16xf32>
      %72 = vector.shape_cast %71 : vector<2x16xf32> to vector<1x2x16xf32>
      %c0_41 = arith.constant 0 : index
      %c0_42 = arith.constant 0 : index
      %c0_43 = arith.constant 0 : index
      %73 = vector.load %arg10[%c0_41, %c0_42, %c0_43] : memref<1x2x16xf32, #tpu.memory_space<vmem>>, vector<1x2x16xf32>
      tpu.vector_store %arg10[%c0_41, %c0_42, %c0_43], %72 {strides = array<i32>} : memref<1x2x16xf32, #tpu.memory_space<vmem>>, vector<1x2x16xf32>,
    } else {
    }
    return
  }
  func.func @transform_0(%arg0: i32, %arg1: i32) -> (i32, i32, i32) {
    %c0_i32 = arith.constant 0 : i32
    %c0_i32_0 = arith.constant 0 : i32
    %c0_i32_1 = arith.constant 0 : i32
    return %arg0, %c0_i32, %c0_i32_0 : i32, i32, i32
  }
  func.func @transform_1(%arg0: i32, %arg1: i32) -> (i32, i32) {
    %c0_i32 = arith.constant 0 : i32
    %c0_i32_0 = arith.constant 0 : i32
    %c0_i32_1 = arith.constant 0 : i32
    return %c0_i32, %c0_i32_0 : i32, i32
  }
  func.func @transform_2(%arg0: i32, %arg1: i32) -> (i32, i32) {
    %c0_i32 = arith.constant 0 : i32
    %c0_i32_0 = arith.constant 0 : i32
    %c0_i32_1 = arith.constant 0 : i32
    return %c0_i32, %c0_i32_0 : i32, i32
  }
  func.func @transform_3(%arg0: i32, %arg1: i32) -> (i32, i32, i32) {
    %c0_i32 = arith.constant 0 : i32
    %c0_i32_0 = arith.constant 0 : i32
    return %arg0, %c0_i32, %arg1 : i32, i32, i32
  }
  func.func @transform_4(%arg0: i32, %arg1: i32) -> (i32, i32) {
    %c0_i32 = arith.constant 0 : i32
    %c0_i32_0 = arith.constant 0 : i32
    %c0_i32_1 = arith.constant 0 : i32
    return %c0_i32, %c0_i32_0 : i32, i32
  }
  func.func @transform_5(%arg0: i32, %arg1: i32) -> (i32, i32) {
    %c0_i32 = arith.constant 0 : i32
    %c0_i32_0 = arith.constant 0 : i32
    %c0_i32_1 = arith.constant 0 : i32
    return %c0_i32, %c0_i32_0 : i32, i32
  }
  func.func @transform_6(%arg0: i32, %arg1: i32) -> (i32, i32) {
    %c0_i32 = arith.constant 0 : i32
    %c0_i32_0 = arith.constant 0 : i32
    %c0_i32_1 = arith.constant 0 : i32
    return %c0_i32, %c0_i32_0 : i32, i32
  }
  func.func @transform_7(%arg0: i32, %arg1: i32) -> (i32, i32, i32) {
    %c0_i32 = arith.constant 0 : i32
    %c0_i32_0 = arith.constant 0 : i32
    %c0_i32_1 = arith.constant 0 : i32
    return %arg0, %c0_i32, %c0_i32_0 : i32, i32, i32
  }
  func.func @transform_8(%arg0: i32, %arg1: i32) -> (i32, i32, i32) {
    %c0_i32 = arith.constant 0 : i32
    %c0_i32_0 = arith.constant 0 : i32
    %c0_i32_1 = arith.constant 0 : i32
    return %arg0, %c0_i32, %c0_i32_0 : i32, i32, i32
  }
}

module attributes {stable_mosaic.version = 11 : i64} {
  func.func @_gcn_conv_pred_kernel(%arg0: i32, %arg1: i32, %arg2: memref<4x16x32xbf16, #tpu.memory_space<vmem>>, %arg3: memref<16x1xf32, #tpu.memory_space<vmem>>, %arg4: memref<16x1xf32, #tpu.memory_space<vmem>>, %arg5: memref<4x16x16xi8, #tpu.memory_space<vmem>>, %arg6: memref<32x32xbf16, #tpu.memory_space<vmem>>, %arg7: memref<32x32xbf16, #tpu.memory_space<vmem>>, %arg8: memref<1x32xf32, #tpu.memory_space<vmem>>, %arg9: memref<4x16x1xf32, #tpu.memory_space<vmem>>, %arg10: memref<32x4xbf16, #tpu.memory_space<vmem>>, %arg11: memref<1x4xf32, #tpu.memory_space<vmem>>, %arg12: memref<4x16x4xf32, #tpu.memory_space<vmem>>, %arg13: memref<4x16x32xf32, #tpu.memory_space<vmem>>) attributes {dimension_semantics = [#tpu.dimension_semantics<parallel>, #tpu.dimension_semantics<arbitrary>], iteration_bounds = array<i64: 1, 1>, scalar_prefetch = 0 : i64, scratch_operands = 1 : i64, tpu.core_type = #tpu.core_type<tc>, window_params = [{transform_indices = @transform_0, window_bounds = array<i64: 4, 16, 32>}, {pipeline_mode = #tpu.pipeline_mode<synchronous>, transform_indices = @transform_1, window_bounds = array<i64: 16, 1>}, {pipeline_mode = #tpu.pipeline_mode<synchronous>, transform_indices = @transform_2, window_bounds = array<i64: 16, 1>}, {transform_indices = @transform_3, window_bounds = array<i64: 4, 16, 16>}, {pipeline_mode = #tpu.pipeline_mode<synchronous>, transform_indices = @transform_4, window_bounds = array<i64: 32, 32>}, {pipeline_mode = #tpu.pipeline_mode<synchronous>, transform_indices = @transform_5, window_bounds = array<i64: 32, 32>}, {pipeline_mode = #tpu.pipeline_mode<synchronous>, transform_indices = @transform_6, window_bounds = array<i64: 1, 32>}, {transform_indices = @transform_7, window_bounds = array<i64: 4, 16, 1>}, {pipeline_mode = #tpu.pipeline_mode<synchronous>, transform_indices = @transform_8, window_bounds = array<i64: 32, 4>}, {pipeline_mode = #tpu.pipeline_mode<synchronous>, transform_indices = @transform_9, window_bounds = array<i64: 1, 4>}, {transform_indices = @transform_10, window_bounds = array<i64: 4, 16, 4>}]} {
    %c0_i32 = arith.constant 0 : i32
    %0 = arith.cmpi eq, %arg1, %c0_i32 : i32
    %1 = arith.extui %0 : i1 to i32
    %c0_i32_0 = arith.constant 0 : i32
    %2 = arith.cmpi ne, %1, %c0_i32_0 : i32
    scf.if %2 {
      %cst_15 = arith.constant 0.000000e+00 : f32
      %29 = vector.broadcast %cst_15 : f32 to vector<4x16x32xf32>
      %c0_16 = arith.constant 0 : index
      %c0_17 = arith.constant 0 : index
      %c0_18 = arith.constant 0 : index
      %30 = vector.load %arg13[%c0_16, %c0_17, %c0_18] : memref<4x16x32xf32, #tpu.memory_space<vmem>>, vector<4x16x32xf32>
      tpu.vector_store %arg13[%c0_16, %c0_17, %c0_18], %29 {strides = array<i32>} : memref<4x16x32xf32, #tpu.memory_space<vmem>>, vector<4x16x32xf32>,
    } else {
    }
    %c16_i32 = arith.constant 16 : i32
    %3 = arith.muli %arg1, %c16_i32 : i32
    %4 = tpu.assume_multiple %3, 16 : i32
    %c0 = arith.constant 0 : index
    %5 = arith.index_cast %4 : i32 to index
    %c0_1 = arith.constant 0 : index
    %6 = vector.load %arg2[%c0, %5, %c0_1] : memref<4x16x32xbf16, #tpu.memory_space<vmem>>, vector<4x16x32xbf16>
    %7 = arith.extf %6 : vector<4x16x32xbf16> to vector<4x16x32xf32>
    %8 = arith.index_cast %4 : i32 to index
    %c0_2 = arith.constant 0 : index
    %9 = vector.load %arg3[%8, %c0_2] : memref<16x1xf32, #tpu.memory_space<vmem>>, vector<16x1xf32>
    %10 = vector.shape_cast %9 : vector<16x1xf32> to vector<1x16x1xf32>
    %11 = vector.broadcast %10 : vector<1x16x1xf32> to vector<4x16x32xf32>
    %12 = arith.mulf %7, %11 : vector<4x16x32xf32>
    %13 = arith.index_cast %4 : i32 to index
    %c0_3 = arith.constant 0 : index
    %14 = vector.load %arg4[%13, %c0_3] : memref<16x1xf32, #tpu.memory_space<vmem>>, vector<16x1xf32>
    %15 = vector.shape_cast %14 : vector<16x1xf32> to vector<1x16x1xf32>
    %16 = vector.broadcast %15 : vector<1x16x1xf32> to vector<4x16x32xf32>
    %17 = arith.addf %12, %16 : vector<4x16x32xf32>
    %18 = arith.truncf %17 : vector<4x16x32xf32> to vector<4x16x32xbf16>
    %c0_4 = arith.constant 0 : index
    %c0_5 = arith.constant 0 : index
    %c0_6 = arith.constant 0 : index
    %19 = vector.load %arg5[%c0_4, %c0_5, %c0_6] : memref<4x16x16xi8, #tpu.memory_space<vmem>>, vector<4x16x16xi8>
    %20 = arith.sitofp %19 : vector<4x16x16xi8> to vector<4x16x16xf32>
    %21 = arith.truncf %20 : vector<4x16x16xf32> to vector<4x16x16xbf16>
    %c0_7 = arith.constant 0 : index
    %c0_8 = arith.constant 0 : index
    %c0_9 = arith.constant 0 : index
    %22 = vector.load %arg13[%c0_7, %c0_8, %c0_9] : memref<4x16x32xf32, #tpu.memory_space<vmem>>, vector<4x16x32xf32>
    "tpu.trace_start"() <{level = 10 : i32, message = "bij,bjd->bid"}> : () -> ()
    %cst = arith.constant dense<0.000000e+00> : vector<4x16x32xf32>
    %23 = tpu.matmul %21, %18, %cst {dimension_numbers = #tpu.dot_dimension_numbers<[2], [1], [1], [2], [0, 0, 0, 1, 1, 2], [0], [0]>} : vector<4x16x16xbf16>, vector<4x16x32xbf16>, vector<4x16x32xf32> -> vector<4x16x32xf32>
    "tpu.trace_stop"() : () -> ()
    %24 = arith.addf %22, %23 : vector<4x16x32xf32>
    %c0_10 = arith.constant 0 : index
    %c0_11 = arith.constant 0 : index
    %c0_12 = arith.constant 0 : index
    %25 = vector.load %arg13[%c0_10, %c0_11, %c0_12] : memref<4x16x32xf32, #tpu.memory_space<vmem>>, vector<4x16x32xf32>
    tpu.vector_store %arg13[%c0_10, %c0_11, %c0_12], %24 {strides = array<i32>} : memref<4x16x32xf32, #tpu.memory_space<vmem>>, vector<4x16x32xf32>,
    %c0_i32_13 = arith.constant 0 : i32
    %26 = arith.cmpi eq, %arg1, %c0_i32_13 : i32
    %27 = arith.extui %26 : i1 to i32
    %c0_i32_14 = arith.constant 0 : i32
    %28 = arith.cmpi ne, %27, %c0_i32_14 : i32
    scf.if %28 {
      %c0_15 = arith.constant 0 : index
      %c0_16 = arith.constant 0 : index
      %c0_17 = arith.constant 0 : index
      %29 = vector.load %arg2[%c0_15, %c0_16, %c0_17] : memref<4x16x32xbf16, #tpu.memory_space<vmem>>, vector<4x16x32xbf16>
      %30 = arith.extf %29 : vector<4x16x32xbf16> to vector<4x16x32xf32>
      %c0_18 = arith.constant 0 : index
      %c0_19 = arith.constant 0 : index
      %31 = vector.load %arg3[%c0_18, %c0_19] : memref<16x1xf32, #tpu.memory_space<vmem>>, vector<16x1xf32>
      %32 = vector.shape_cast %31 : vector<16x1xf32> to vector<1x16x1xf32>
      %33 = vector.broadcast %32 : vector<1x16x1xf32> to vector<4x16x32xf32>
      %34 = arith.mulf %30, %33 : vector<4x16x32xf32>
      %c0_20 = arith.constant 0 : index
      %c0_21 = arith.constant 0 : index
      %35 = vector.load %arg4[%c0_20, %c0_21] : memref<16x1xf32, #tpu.memory_space<vmem>>, vector<16x1xf32>
      %36 = vector.shape_cast %35 : vector<16x1xf32> to vector<1x16x1xf32>
      %37 = vector.broadcast %36 : vector<1x16x1xf32> to vector<4x16x32xf32>
      %38 = arith.addf %34, %37 : vector<4x16x32xf32>
      %39 = arith.truncf %38 : vector<4x16x32xf32> to vector<4x16x32xbf16>
      %c0_22 = arith.constant 0 : index
      %c0_23 = arith.constant 0 : index
      %c0_24 = arith.constant 0 : index
      %40 = vector.load %arg13[%c0_22, %c0_23, %c0_24] : memref<4x16x32xf32, #tpu.memory_space<vmem>>, vector<4x16x32xf32>
      %41 = arith.truncf %40 : vector<4x16x32xf32> to vector<4x16x32xbf16>
      %42 = vector.shape_cast %41 : vector<4x16x32xbf16> to vector<64x32xbf16>
      %c0_25 = arith.constant 0 : index
      %c0_26 = arith.constant 0 : index
      %43 = vector.load %arg6[%c0_25, %c0_26] : memref<32x32xbf16, #tpu.memory_space<vmem>>, vector<32x32xbf16>
      %cst_27 = arith.constant dense<0.000000e+00> : vector<64x32xf32>
      %44 = tpu.matmul %42, %43, %cst_27 {dimension_numbers = #tpu.dot_dimension_numbers<[1], [0], [0], [1], [0, 0, 1, 1], [], []>} : vector<64x32xbf16>, vector<32x32xbf16>, vector<64x32xf32> -> vector<64x32xf32>
      %45 = vector.shape_cast %39 : vector<4x16x32xbf16> to vector<64x32xbf16>
      %c0_28 = arith.constant 0 : index
      %c0_29 = arith.constant 0 : index
      %46 = vector.load %arg7[%c0_28, %c0_29] : memref<32x32xbf16, #tpu.memory_space<vmem>>, vector<32x32xbf16>
      %cst_30 = arith.constant dense<0.000000e+00> : vector<64x32xf32>
      %47 = tpu.matmul %45, %46, %cst_30 {dimension_numbers = #tpu.dot_dimension_numbers<[1], [0], [0], [1], [0, 0, 1, 1], [], []>} : vector<64x32xbf16>, vector<32x32xbf16>, vector<64x32xf32> -> vector<64x32xf32>
      %48 = arith.addf %44, %47 : vector<64x32xf32>
      %49 = vector.shape_cast %48 : vector<64x32xf32> to vector<4x16x32xf32>
      %c0_31 = arith.constant 0 : index
      %c0_32 = arith.constant 0 : index
      %50 = vector.load %arg8[%c0_31, %c0_32] : memref<1x32xf32, #tpu.memory_space<vmem>>, vector<1x32xf32>
      %51 = vector.shape_cast %50 : vector<1x32xf32> to vector<1x1x32xf32>
      %52 = vector.broadcast %51 : vector<1x1x32xf32> to vector<4x16x32xf32>
      %53 = arith.addf %49, %52 : vector<4x16x32xf32>
      %54 = arith.mulf %53, %53 : vector<4x16x32xf32>
      %cst_33 = arith.constant dense<0.000000e+00> : vector<4x16xf32>
      %55 = vector.multi_reduction <add>, %54, %cst_33 [2] : vector<4x16x32xf32> to vector<4x16xf32>
      %56 = vector.shape_cast %55 : vector<4x16xf32> to vector<4x16x1xf32>
      %cst_34 = arith.constant 1.000000e-24 : f32
      %57 = vector.broadcast %cst_34 : f32 to vector<4x16x1xf32>
      %58 = arith.maximumf %56, %57 : vector<4x16x1xf32>
      %59 = math.rsqrt %58 : vector<4x16x1xf32>
      %60 = vector.broadcast %59 : vector<4x16x1xf32> to vector<4x16x32xf32>
      %61 = arith.mulf %53, %60 : vector<4x16x32xf32>
      %c0_35 = arith.constant 0 : index
      %c0_36 = arith.constant 0 : index
      %c0_37 = arith.constant 0 : index
      %62 = vector.load %arg9[%c0_35, %c0_36, %c0_37] : memref<4x16x1xf32, #tpu.memory_space<vmem>>, vector<4x16x1xf32>
      %63 = vector.broadcast %62 : vector<4x16x1xf32> to vector<4x16x32xf32>
      %64 = arith.mulf %61, %63 : vector<4x16x32xf32>
      %65 = arith.truncf %64 : vector<4x16x32xf32> to vector<4x16x32xbf16>
      %66 = vector.shape_cast %65 : vector<4x16x32xbf16> to vector<64x32xbf16>
      %c0_38 = arith.constant 0 : index
      %c0_39 = arith.constant 0 : index
      %67 = vector.load %arg10[%c0_38, %c0_39] : memref<32x4xbf16, #tpu.memory_space<vmem>>, vector<32x4xbf16>
      %cst_40 = arith.constant dense<0.000000e+00> : vector<64x4xf32>
      %68 = tpu.matmul %66, %67, %cst_40 {dimension_numbers = #tpu.dot_dimension_numbers<[1], [0], [0], [1], [0, 0, 1, 1], [], []>} : vector<64x32xbf16>, vector<32x4xbf16>, vector<64x4xf32> -> vector<64x4xf32>
      %c0_41 = arith.constant 0 : index
      %c0_42 = arith.constant 0 : index
      %69 = vector.load %arg11[%c0_41, %c0_42] : memref<1x4xf32, #tpu.memory_space<vmem>>, vector<1x4xf32>
      %70 = vector.broadcast %69 : vector<1x4xf32> to vector<64x4xf32>
      %71 = arith.addf %68, %70 : vector<64x4xf32>
      %72 = vector.shape_cast %71 : vector<64x4xf32> to vector<4x16x4xf32>
      %c0_43 = arith.constant 0 : index
      %c0_44 = arith.constant 0 : index
      %c0_45 = arith.constant 0 : index
      %73 = vector.load %arg12[%c0_43, %c0_44, %c0_45] : memref<4x16x4xf32, #tpu.memory_space<vmem>>, vector<4x16x4xf32>
      tpu.vector_store %arg12[%c0_43, %c0_44, %c0_45], %72 {strides = array<i32>} : memref<4x16x4xf32, #tpu.memory_space<vmem>>, vector<4x16x4xf32>,
    } else {
    }
    return
  }
  func.func @transform_0(%arg0: i32, %arg1: i32) -> (i32, i32, i32) {
    %c0_i32 = arith.constant 0 : i32
    %c0_i32_0 = arith.constant 0 : i32
    %c0_i32_1 = arith.constant 0 : i32
    return %arg0, %c0_i32, %c0_i32_0 : i32, i32, i32
  }
  func.func @transform_1(%arg0: i32, %arg1: i32) -> (i32, i32) {
    %c0_i32 = arith.constant 0 : i32
    %c0_i32_0 = arith.constant 0 : i32
    %c0_i32_1 = arith.constant 0 : i32
    return %c0_i32, %c0_i32_0 : i32, i32
  }
  func.func @transform_2(%arg0: i32, %arg1: i32) -> (i32, i32) {
    %c0_i32 = arith.constant 0 : i32
    %c0_i32_0 = arith.constant 0 : i32
    %c0_i32_1 = arith.constant 0 : i32
    return %c0_i32, %c0_i32_0 : i32, i32
  }
  func.func @transform_3(%arg0: i32, %arg1: i32) -> (i32, i32, i32) {
    %c0_i32 = arith.constant 0 : i32
    %c0_i32_0 = arith.constant 0 : i32
    return %arg0, %c0_i32, %arg1 : i32, i32, i32
  }
  func.func @transform_4(%arg0: i32, %arg1: i32) -> (i32, i32) {
    %c0_i32 = arith.constant 0 : i32
    %c0_i32_0 = arith.constant 0 : i32
    %c0_i32_1 = arith.constant 0 : i32
    return %c0_i32, %c0_i32_0 : i32, i32
  }
  func.func @transform_5(%arg0: i32, %arg1: i32) -> (i32, i32) {
    %c0_i32 = arith.constant 0 : i32
    %c0_i32_0 = arith.constant 0 : i32
    %c0_i32_1 = arith.constant 0 : i32
    return %c0_i32, %c0_i32_0 : i32, i32
  }
  func.func @transform_6(%arg0: i32, %arg1: i32) -> (i32, i32) {
    %c0_i32 = arith.constant 0 : i32
    %c0_i32_0 = arith.constant 0 : i32
    %c0_i32_1 = arith.constant 0 : i32
    return %c0_i32, %c0_i32_0 : i32, i32
  }
  func.func @transform_7(%arg0: i32, %arg1: i32) -> (i32, i32, i32) {
    %c0_i32 = arith.constant 0 : i32
    %c0_i32_0 = arith.constant 0 : i32
    %c0_i32_1 = arith.constant 0 : i32
    return %arg0, %c0_i32, %c0_i32_0 : i32, i32, i32
  }
  func.func @transform_8(%arg0: i32, %arg1: i32) -> (i32, i32) {
    %c0_i32 = arith.constant 0 : i32
    %c0_i32_0 = arith.constant 0 : i32
    %c0_i32_1 = arith.constant 0 : i32
    return %c0_i32, %c0_i32_0 : i32, i32
  }
  func.func @transform_9(%arg0: i32, %arg1: i32) -> (i32, i32) {
    %c0_i32 = arith.constant 0 : i32
    %c0_i32_0 = arith.constant 0 : i32
    %c0_i32_1 = arith.constant 0 : i32
    return %c0_i32, %c0_i32_0 : i32, i32
  }
  func.func @transform_10(%arg0: i32, %arg1: i32) -> (i32, i32, i32) {
    %c0_i32 = arith.constant 0 : i32
    %c0_i32_0 = arith.constant 0 : i32
    %c0_i32_1 = arith.constant 0 : i32
    return %arg0, %c0_i32, %c0_i32_0 : i32, i32, i32
  }
}

</mosaic_0001>

<bundles_post_ra>
// kernel: gcn_encoder_forward.3
= control target key start
LH: loop header
LB: loop body
LE: loop exit
PB: predicated region body
PF: predicated region fallthrough
CT: control target
= control target key end

     0   :  { %14 = vsyncpa [#allocation4], 0  ;;  %s1647_s0 = inlined_call_operand.hbm [shape: bf16[4,16,8], index: 0, kind: input, shape index: {}]   ;;  %s1648_s1 = inlined_call_operand.hbm [shape: f32[16,1], index: 1, kind: input, shape index: {}]   ;;  %s1649_s2 = inlined_call_operand.hbm [shape: f32[16,1], index: 2, kind: input, shape index: {}]   ;;  %s1650_s3 = inlined_call_operand.hbm [shape: s8[4,16,16], index: 3, kind: input, shape index: {}]   ;;  %s1651_s4 = inlined_call_operand.hbm [shape: bf16[8,32], index: 4, kind: input, shape index: {}]   ;;  %s1652_s5 = inlined_call_operand.hbm [shape: bf16[8,32], index: 5, kind: input, shape index: {}]   ;;  %s1653_s6 = inlined_call_operand.hbm [shape: f32[1,32], index: 6, kind: input, shape index: {}]   ;;  %s1654_s7 = inlined_call_operand.hbm [shape: bf16[4,16,32], index: 7, kind: output, shape index: {0}]   ;;  %s1655_s8 = inlined_call_operand.hbm [shape: f32[1,2,16], index: 8, kind: output, shape index: {1}]  }
   0x1   :  { %15 = vsyncpa [#allocation7], 0 }
   0x2   :  { %16 = vsyncpa [#allocation10], 0 }
   0x3   :  { %17 = vsyncpa [#allocation13], 0 }
   0x4   :  { %18 = vsyncpa [#allocation5], 0 }
   0x5   :  { %19 = vsyncpa [#allocation17], 0  ;;  %s1298_s27 = smov [#allocation6]   ;;  %s1088_s9 = scalar_lea.hbm %s1648_s1, 256 }
   0x6   :  { %s37_s28 = sshll.u32 %s1298_s27, 4  ;;  %p1089_p0 = scmp.ne.s32.totalorder %s1648_s1, %s1088_s9  ;;  %s38_s28 = int_to_ptr.vmem [resolvable:$true] %s37_s28 }
   0x7   :  { %p1092_p1 = scmp.lt.u32.totalorder %s1088_s9, %s1648_s1 }
   0x9   :  { %p1094_p2 = pnand %p1092_p1, %p1089_p0 }
   0xb   :  { %1097 = shalt.err (!%p1094_p2)
}
   0xc   :  { %s1098_s14 = scalar_lea.vmem %s38_s28, 256  ;;  %p1103_p4 = scmp.lt.s32.totalorder %s38_s28, %s38_s28 }
   0xd   :  { %p1099_p3 = scmp.ne.s32.totalorder %s38_s28, %s1098_s14  ;;  %p1104_p5 = scmp.lt.s32.totalorder %s1098_s14, %s1098_s14 }
   0xf   :  { %p1105_p6 = por %p1104_p5, %p1103_p4 }
  0x11   :  { %p1106_p7 = pnand %p1105_p6, %p1099_p3 }
  0x13   :  { %1109 = shalt.err (!%p1106_p7)
}
  0x14   :  { %s1299_s15 = smov 128   ;;  %s1300_s16 = smov 8  }
  0x15   :  { %43 = dma.hbm_to_vmem [thread:$0]  %s1648_s1, 256, %s38_s28, [#allocation7], %s1299_s15, %s1299_s15, %s1300_s16  }
  0x16   :  { %s1301_s19 = smov [#allocation9]   ;;  %s1110_s23 = scalar_lea.hbm %s1650_s3, 256 }
  0x17   :  { %s61_s20 = sshll.u32 %s1301_s19, 4  ;;  %p1111_p8 = scmp.ne.s32.totalorder %s1650_s3, %s1110_s23  ;;  %s62_s20 = int_to_ptr.vmem [resolvable:$true] %s61_s20 }
  0x18   :  { %p1114_p9 = scmp.lt.u32.totalorder %s1110_s23, %s1650_s3 }
  0x1a   :  { %p1116_p10 = pnand %p1114_p9, %p1111_p8 }
  0x1c   :  { %1119 = shalt.err (!%p1116_p10)
}
  0x1d   :  { %s1120_s29 = scalar_lea.vmem %s62_s20, 256  ;;  %p1125_p12 = scmp.lt.s32.totalorder %s62_s20, %s62_s20 }
  0x1e   :  { %p1121_p11 = scmp.ne.s32.totalorder %s62_s20, %s1120_s29  ;;  %p1126_p13 = scmp.lt.s32.totalorder %s1120_s29, %s1120_s29 }
  0x20   :  { %p1127_p0 = por %p1126_p13, %p1125_p12 }
  0x22   :  { %p1128_p1 = pnand %p1127_p0, %p1121_p11 }
  0x24   :  { %1131 = shalt.err (!%p1128_p1)
}
  0x25   :  { %s1302_s1 = smov 32   ;;  %s1303_s28 = smov 2  }
  0x26   :  { %67 = dma.hbm_to_vmem [thread:$0]  %s1650_s3, 256, %s62_s20, [#allocation10], %s1302_s1, %s1302_s1, %s1303_s28  }
  0x27   :  { %s1304_s10 = smov [#allocation12]   ;;  %s1305_s12 = smov [#allocation3]  }
  0x28   :  { %s84_s11 = sshll.u32 %s1304_s10, 4  ;;  %s25_s13 = sshll.u32 %s1305_s12, 4  ;;  %s85_s11 = int_to_ptr.vmem [resolvable:$true] %s84_s11  ;;  %s1388_s13 = int_to_ptr.vmem [resolvable:$true] %s25_s13 }
  0x29   :  { %s1132_s18 = scalar_lea.hbm %s1652_s5, 64 }
  0x2a   :  { %p1133_p2 = scmp.ne.s32.totalorder %s1652_s5, %s1132_s18  ;;  %p1136_p3 = scmp.lt.u32.totalorder %s1132_s18, %s1652_s5 }
  0x2c   :  { %p1138_p4 = pnand %p1136_p3, %p1133_p2 }
  0x2e   :  { %1141 = shalt.err (!%p1138_p4)
}
  0x2f   :  { %s1142_s3 = scalar_lea.vmem %s85_s11, 64  ;;  %p1147_p6 = scmp.lt.s32.totalorder %s85_s11, %s85_s11 }
  0x30   :  { %p1143_p5 = scmp.ne.s32.totalorder %s85_s11, %s1142_s3  ;;  %p1148_p7 = scmp.lt.s32.totalorder %s1142_s3, %s1142_s3 }
  0x32   :  { %p1149_p8 = por %p1148_p7, %p1147_p6 }
  0x34   :  { %p1150_p9 = pnand %p1149_p8, %p1143_p5 }
  0x36   :  { %1153 = shalt.err (!%p1150_p9)
}
  0x37   :  { %87 = dma.hbm_to_vmem [thread:$0]  %s1652_s5, 64, %s85_s11, [#allocation13]  }
  0x38   :  { %s1154_s27 = scalar_lea.hbm %s1647_s0, 512 }
  0x39   :  { %p1155_p10 = scmp.ne.s32.totalorder %s1647_s0, %s1154_s27  ;;  %p1158_p11 = scmp.lt.u32.totalorder %s1154_s27, %s1647_s0 }
  0x3b   :  { %p1160_p12 = pnand %p1158_p11, %p1155_p10 }
  0x3d   :  { %1163 = shalt.err (!%p1160_p12)
}
  0x3e   :  { %s1164_s9 = scalar_lea.vmem %s1388_s13, 512  ;;  %p1169_p0 = scmp.lt.s32.totalorder %s1388_s13, %s1388_s13 }
  0x3f   :  { %p1165_p13 = scmp.ne.s32.totalorder %s1388_s13, %s1164_s9  ;;  %p1170_p1 = scmp.lt.s32.totalorder %s1164_s9, %s1164_s9 }
  0x41   :  { %p1171_p2 = por %p1170_p1, %p1169_p0 }
  0x43   :  { %p1172_p3 = pnand %p1171_p2, %p1165_p13 }
  0x45   :  { %1175 = shalt.err (!%p1172_p3)
}
  0x46   :  { %s1306_s5 = smov 64   ;;  %s1307_s10 = smov 4  }
  0x47   :  { %31 = dma.hbm_to_vmem [thread:$0]  %s1647_s0, 512, %s1388_s13, [#allocation4], %s1306_s5, %s1306_s5, %s1307_s10  }
  0x48   :  { %s1308_s14 = smov [#allocation8]   ;;  %s1309_s18 = smov [#allocation11]  }
  0x49   :  { %s49_s17 = sshll.u32 %s1308_s14, 4  ;;  %s74_s19 = sshll.u32 %s1309_s18, 4  ;;  %s50_s17 = int_to_ptr.vmem [resolvable:$true] %s49_s17  ;;  %s75_s19 = int_to_ptr.vmem [resolvable:$true] %s74_s19 }
  0x4a   :  { %s1176_s23 = scalar_lea.hbm %s1649_s2, 256 }
  0x4b   :  { %p1177_p4 = scmp.ne.s32.totalorder %s1649_s2, %s1176_s23  ;;  %p1180_p5 = scmp.lt.u32.totalorder %s1176_s23, %s1649_s2 }
  0x4d   :  { %p1182_p6 = pnand %p1180_p5, %p1177_p4 }
  0x4f   :  { %1185 = shalt.err (!%p1182_p6)
}
  0x50   :  { %s1186_s0 = scalar_lea.vmem %s50_s17, 256  ;;  %p1191_p8 = scmp.lt.s32.totalorder %s50_s17, %s50_s17 }
  0x51   :  { %p1187_p7 = scmp.ne.s32.totalorder %s50_s17, %s1186_s0  ;;  %p1192_p9 = scmp.lt.s32.totalorder %s1186_s0, %s1186_s0 }
  0x53   :  { %p1193_p10 = por %p1192_p9, %p1191_p8 }
  0x55   :  { %p1194_p11 = pnand %p1193_p10, %p1187_p7 }
  0x57   :  { %1197 = shalt.err (!%p1194_p11)
}
  0x58   :  { %55 = dma.hbm_to_vmem [thread:$0]  %s1649_s2, 256, %s50_s17, [#allocation7], %s1299_s15, %s1299_s15, %s1300_s16  }
  0x59   :  { %s1198_s1 = scalar_lea.hbm %s1651_s4, 64 }
  0x5a   :  { %p1199_p12 = scmp.ne.s32.totalorder %s1651_s4, %s1198_s1  ;;  %p1202_p13 = scmp.lt.u32.totalorder %s1198_s1, %s1651_s4 }
  0x5c   :  { %p1204_p0 = pnand %p1202_p13, %p1199_p12 }
  0x5e   :  { %1207 = shalt.err (!%p1204_p0)
}
  0x5f   :  { %s1208_s12 = scalar_lea.vmem %s75_s19, 64  ;;  %p1213_p2 = scmp.lt.s32.totalorder %s75_s19, %s75_s19 }
  0x60   :  { %p1209_p1 = scmp.ne.s32.totalorder %s75_s19, %s1208_s12  ;;  %p1214_p3 = scmp.lt.s32.totalorder %s1208_s12, %s1208_s12 }
  0x62   :  { %p1215_p4 = por %p1214_p3, %p1213_p2 }
  0x64   :  { %p1216_p5 = pnand %p1215_p4, %p1209_p1 }
  0x66   :  { %1219 = shalt.err (!%p1216_p5)
}
  0x67   :  { %77 = dma.hbm_to_vmem [thread:$0]  %s1651_s4, 64, %s75_s19, [#allocation10]  }
  0x68   :  { %s1310_s16 = smov [#allocation14]   ;;  %s1220_s21 = scalar_lea.hbm %s1653_s6, 16 }
  0x69   :  { %s94_s14 = sshll.u32 %s1310_s16, 4  ;;  %p1221_p6 = scmp.ne.s32.totalorder %s1653_s6, %s1220_s21  ;;  %s95_s14 = int_to_ptr.vmem [resolvable:$true] %s94_s14 }
  0x6a   :  { %p1224_p7 = scmp.lt.u32.totalorder %s1220_s21, %s1653_s6 }
  0x6c   :  { %p1226_p8 = pnand %p1224_p7, %p1221_p6 }
  0x6e   :  { %1229 = shalt.err (!%p1226_p8)
}
  0x6f   :  { %s1230_s24 = scalar_lea.vmem %s95_s14, 16  ;;  %s1234_s4 = scalar_lea.vmem %s95_s14, 32 }
  0x70   :  { %p1231_p9 = scmp.ne.s32.totalorder %s95_s14, %s1230_s24  ;;  %p1235_p10 = scmp.lt.s32.totalorder %s95_s14, %s95_s14 }
  0x71   :  { %p1236_p11 = scmp.lt.s32.totalorder %s1234_s4, %s1230_s24 }
  0x73   :  { %p1237_p12 = por %p1236_p11, %p1235_p10 }
  0x75   :  { %p1238_p13 = pnand %p1237_p12, %p1231_p9 }
  0x77   :  { %1241 = shalt.err (!%p1238_p13)
}
  0x78   :  { %97 = dma.hbm_to_vmem [thread:$0]  %s1653_s6, 16, %s95_s14, [#allocation13]  }
  0x79   :  { %1286 = dma.done.wait [#allocation4], 512  }
  0x7a   :  { %1287 = vsyncadd [#allocation4], 4294966784 }
  0x7b   :  { %1288 = dma.done.wait [#allocation7], 512  }
  0x7c   :  { %1289 = vsyncadd [#allocation7], 4294966784 }
  0x7d   :  { %1290 = dma.done.wait [#allocation10], 320  }
  0x7e   :  { %1291 = vsyncadd [#allocation10], 4294966976 }
  0x7f   :  { %1292 = dma.done.wait [#allocation13], 80  }
  0x80   :  { %1293 = vsyncadd [#allocation13], 4294967216  ;;  %v1311_v0 = vmov 0   ;;  %v176_v1 = vld [vmem:[#allocation8] sm:$0xff]  ;;  %v155_v2 = vld [vmem:[#allocation6] sm:$0xff]  ;;  %v1312_v5 = vmov 0.0  }
  0x81   :  { %1071 = vset.pattern.permute.xlu1 %v1311_v0  ;;  %1070 = vset.pattern.permute.xlu0 %v1311_v0  ;;  %v177_v3 = vld [vmem:[#allocation8 + $0x8] sm:$0xff]  ;;  %v156_v4 = vld [vmem:[#allocation6 + $0x8] sm:$0xff]  ;;  %vm1313_vm0 = vmmov 0   ;;  %vm124_vm1 = vcmask 64512   ;;  %v1483_v6 = vld [vmem:[#allocation3] sm:$0xff]   ;;  %vm229_vm2 = vcmask 130048  }
  0x82   :  { %180 = vperm.xlu1 %1071, %v176_v1   ;;  %159 = vperm.xlu0 %1070, %v155_v2   ;;  %125 = vst.msk [vmem:[#allocation2] sm:$0xff] %vm124_vm1, %v1312_v5  ;;  %126 = vst.msk [vmem:[#allocation2 + $0x8] sm:$0xff] %vm124_vm1, %v1312_v5  ;;  %v1485_v7 = vld [vmem:[#allocation3 + $0x8] sm:$0xff]   ;;  %v1487_v10 = vld [vmem:[#allocation3 + $0x10] sm:$0xff]   ;;  %v961_v12 = vunpack.c.h.bf16 %v1483_v6  ;;  %v960_v14 = vunpack.c.l.bf16 %v1483_v6  ;;  %vm527_vm3 = vcmask 1043456   ;;  %vm699_vm4 = vcmask 261120  }
  0x83   :  { %998 = vmatprep.subr.bf16.mxu0 %v1312_v5  ;;  %1004 = vmatprep.subr.bf16.mxu1 %v1312_v5  ;;  %127 = vst.msk [vmem:[#allocation2 + $0x10] sm:$0xff] %vm124_vm1, %v1312_v5  ;;  %128 = vst.msk [vmem:[#allocation2 + $0x18] sm:$0xff] %vm124_vm1, %v1312_v5  ;;  %v1489_v11 = vld [vmem:[#allocation3 + $0x18] sm:$0xff]   ;;  %v965_v13 = vunpack.c.h.bf16 %v1485_v7  ;;  %v964_v15 = vunpack.c.l.bf16 %v1485_v7  ;;  %v953_v16 = vunpack.c.h.bf16 %v1487_v10  ;;  %v952_v18 = vunpack.c.l.bf16 %v1487_v10  ;;  %v200_v22 = vld [vmem:[#allocation9] sm:$0x3]  ;;  %s1314_s6 = smov [#allocation15]  }
  0x84   :  { %1000 = vmatprep.mubr.msk.bf16.mxu0 %vm1313_vm0, %v1312_v5  ;;  %1006 = vmatprep.mubr.msk.bf16.mxu1 %vm1313_vm0, %v1312_v5  ;;  %129 = vst.msk [vmem:[#allocation2 + $0x20] sm:$0xff] %vm124_vm1, %v1312_v5  ;;  %130 = vst.msk [vmem:[#allocation2 + $0x28] sm:$0xff] %vm124_vm1, %v1312_v5  ;;  %v957_v17 = vunpack.c.h.bf16 %v1489_v11  ;;  %v956_v19 = vunpack.c.l.bf16 %v1489_v11  ;;  %v201_v27 = vld [vmem:[#allocation9 + $0x2] sm:$0x3]  ;;  %v202_v28 = vld [vmem:[#allocation9 + $0x4] sm:$0x3]  ;;  %v208_v34 = vunpack.c.l.s8.bf16 %v200_v22 }
  0x85   :  { %131 = vst.msk [vmem:[#allocation2 + $0x30] sm:$0xff] %vm124_vm1, %v1312_v5  ;;  %132 = vst.msk [vmem:[#allocation2 + $0x38] sm:$0xff] %vm124_vm1, %v1312_v5  ;;  %v203_v29 = vld [vmem:[#allocation9 + $0x6] sm:$0x3]  ;;  %v209_v35 = vunpack.c.l.s8.bf16 %v201_v27  ;;  %v210_v36 = vunpack.c.l.s8.bf16 %v202_v28  ;;  %v204_v50 = vld [vmem:[#allocation9 + $0x8] sm:$0x3] }
  0x86   :  { %185 = vperm.xlu1 %1071, %v177_v3   ;;  %164 = vperm.xlu0 %1070, %v156_v4   ;;  %v211_v37 = vunpack.c.l.s8.bf16 %v203_v29  ;;  %v205_v53 = vld [vmem:[#allocation9 + $0xa] sm:$0x3]  ;;  %v206_v54 = vld [vmem:[#allocation9 + $0xc] sm:$0x3]  ;;  %v207_v55 = vld [vmem:[#allocation9 + $0xe] sm:$0x3]  ;;  %v212_v58 = vunpack.c.l.s8.bf16 %v204_v50 }
  0x87   :  { %v909_v48 = vcombine.low %v208_v34, %v209_v35  ;;  %v213_v61 = vunpack.c.l.s8.bf16 %v205_v53  ;;  %v214_v62 = vunpack.c.l.s8.bf16 %v206_v54  ;;  %v215_v63 = vunpack.c.l.s8.bf16 %v207_v55  ;;  %v514_v0 = vld [vmem:[#allocation12] sm:$0xf]  ;;  %v513_v27 = vld [vmem:[#allocation11] sm:$0xf]  ;;  %s878_s0 = sshll.u32 %s1314_s6, 4  ;;  %s879_s0 = int_to_ptr.vmem [resolvable:$true] %s878_s0 }
  0x88   :  { %v911_v49 = vcombine.low %v210_v36, %v211_v37  ;;  %v609_v28 = vsel %vm527_vm3, %v513_v27, 0  ;;  %vm788_vm5 = vcmask 257024   ;;  %s1242_s13 = scalar_lea.vmem %s879_s0, 512  ;;  %p1247_p1 = scmp.lt.s32.totalorder %s879_s0, %s879_s0 }
  0x89   :  { %v913_v6 = vcombine.low %v212_v58, %v213_v61  ;;  %v216_v29 = vld [vmem:[#allocation2] sm:$0xff]  ;;  %p1243_p0 = scmp.ne.s32.totalorder %s879_s0, %s1242_s13  ;;  %p1248_p2 = scmp.lt.s32.totalorder %s1242_s13, %s1242_s13 }
  0x8a   :  { %466 = vperm.xlu1 %1071, %v156_v4   ;;  %461 = vperm.xlu0 %1070, %v155_v2  }
  0x8b   :  { %p1249_p3 = por %p1248_p2, %p1247_p1 }
  0x8d   :  { %p1250_p4 = pnand %p1249_p3, %p1243_p0 }
  0x8e   :  { %486 = vperm.xlu1 %1071, %v177_v3   ;;  %481 = vperm.xlu0 %1070, %v176_v1  }
 0x101   :  { %v181_v8 = vpop.permute.xlu1 %180  ;;  %v160_v9 = vpop.permute.xlu0 %159 }
 0x102   :  { %v167_v23 = vmul.f32 %v960_v14, %v160_v9  ;;  %v169_v25 = vmul.f32 %v964_v15, %v160_v9  ;;  %v171_v38 = vmul.f32 %v952_v18, %v160_v9  ;;  %v173_v39 = vmul.f32 %v956_v19, %v160_v9 }
 0x103   :  { %v529_v9 = vsel %vm527_vm3, %v514_v0, 0 }
 0x104   :  { %v188_v40 = vadd.f32 %v181_v8, %v167_v23  ;;  %v190_v41 = vadd.f32 %v181_v8, %v169_v25  ;;  %v192_v51 = vadd.f32 %v181_v8, %v171_v38  ;;  %v194_v52 = vadd.f32 %v181_v8, %v173_v39 }
 0x105   :  { %v186_v20 = vpop.permute.xlu1 %185  ;;  %v165_v21 = vpop.permute.xlu0 %164  ;;  %v915_v8 = vcombine.low %v214_v62, %v215_v63 }
 0x106   :  { %v168_v24 = vmul.f32 %v961_v12, %v165_v21  ;;  %v170_v26 = vmul.f32 %v965_v13, %v165_v21  ;;  %v172_v30 = vmul.f32 %v953_v16, %v165_v21  ;;  %v174_v31 = vmul.f32 %v957_v17, %v165_v21 }
 0x108   :  { %v189_v32 = vadd.f32 %v186_v20, %v168_v24  ;;  %v191_v33 = vadd.f32 %v186_v20, %v170_v26  ;;  %v193_v44 = vadd.f32 %v186_v20, %v172_v30  ;;  %v195_v45 = vadd.f32 %v186_v20, %v174_v31  ;;  %v219_v31 = vld [vmem:[#allocation2 + $0x18] sm:$0xff] }
 0x109   :  { %v467_v42 = vpop.permute.xlu1 %466  ;;  %v462_v43 = vpop.permute.xlu0 %461 }
 0x10a   :  { %v196_v46 = vpack.c.bf16 %v189_v32, %v188_v40  ;;  %v197_v47 = vpack.c.bf16 %v191_v33, %v190_v41  ;;  %v198_v56 = vpack.c.bf16 %v193_v44, %v192_v51  ;;  %v199_v57 = vpack.c.bf16 %v195_v45, %v194_v52 }
 0x10b   :  { %v470_v1 = vmul.f32 %v961_v12, %v467_v42  ;;  %v469_v2 = vmul.f32 %v960_v14, %v462_v43  ;;  %v472_v12 = vmul.f32 %v965_v13, %v467_v42  ;;  %v471_v14 = vmul.f32 %v964_v15, %v462_v43 }
 0x10c   :  { %999 = vmatpush3.bf16.msra.mxu0 %v196_v46  ;;  %1005 = vmatpush3.bf16.msra.mxu1 %v197_v47  ;;  %v473_v21 = vmul.f32 %v952_v18, %v462_v43  ;;  %v476_v15 = vmul.f32 %v957_v17, %v467_v42  ;;  %v475_v26 = vmul.f32 %v956_v19, %v462_v43  ;;  %v218_v17 = vld [vmem:[#allocation2 + $0x10] sm:$0xff]  ;;  %v217_v19 = vld [vmem:[#allocation2 + $0x8] sm:$0xff]  ;;  %v223_v47 = vld [vmem:[#allocation2 + $0x38] sm:$0xff] }
 0x10d   :  { %1010 = vmatprep.subr.bf16.mxu0 %v1312_v5  ;;  %1016 = vmatprep.subr.bf16.mxu1 %v1312_v5  ;;  %v487_v59 = vpop.permute.xlu1 %486  ;;  %v482_v60 = vpop.permute.xlu0 %481  ;;  %v222_v43 = vld [vmem:[#allocation2 + $0x30] sm:$0xff]  ;;  %v221_v46 = vld [vmem:[#allocation2 + $0x28] sm:$0xff] }
 0x10e   :  { %v490_v3 = vadd.f32 %v487_v59, %v470_v1  ;;  %v489_v4 = vadd.f32 %v482_v60, %v469_v2  ;;  %v492_v22 = vadd.f32 %v487_v59, %v472_v12  ;;  %v491_v23 = vadd.f32 %v482_v60, %v471_v14 }
 0x10f   :  { %1001 = vmatmul.mubr.msk.bf16.vlgmr.msra.gmra.mrb[0].mxu0 %vm229_vm2, %v909_v48  ;;  %1007 = vmatmul.mubr.msk.bf16.vlgmr.msra.gmra.mrb[0].mxu1 %vm229_vm2, %v911_v49  ;;  %v493_v13 = vadd.f32 %v482_v60, %v473_v21  ;;  %v496_v10 = vadd.f32 %v487_v59, %v476_v15 }
 0x110   :  { %1011 = vmatpush3.bf16.msra.mxu0 %v198_v56  ;;  %1017 = vmatpush3.bf16.msra.mxu1 %v199_v57  ;;  %v497_v20 = vpack.c.bf16 %v490_v3, %v489_v4  ;;  %v498_v25 = vpack.c.bf16 %v492_v22, %v491_v23 }
 0x111   :  { %1012 = vmatprep.mubr.msk.bf16.mxu0 %vm1313_vm0, %v1312_v5  ;;  %1018 = vmatprep.mubr.msk.bf16.mxu1 %vm1313_vm0, %v1312_v5  ;;  %v474_v5 = vmul.f32 %v953_v16, %v467_v42  ;;  %v495_v16 = vadd.f32 %v482_v60, %v475_v26  ;;  %v220_v42 = vld [vmem:[#allocation2 + $0x20] sm:$0xff] }
 0x112   :  { %1050 = vmatprep.subr.msk.bf16.mxu1 %vm527_vm3, %v514_v0  ;;  %1051 = vmatprep.subr.msk.bf16.mxu0 %vm527_vm3, %v513_v27 }
 0x113   :  { %v494_v24 = vadd.f32 %v487_v59, %v474_v5  ;;  %v500_v18 = vpack.c.bf16 %v496_v10, %v495_v16 }
 0x115   :  { %v499_v7 = vpack.c.bf16 %v494_v24, %v493_v13  ;;  %v925_v24 = vld [vmem:[#allocation14] ss:$0 sm:$0xff] }
 0x117   :  { %1013 = vmatmul.mubr.msk.bf16.vlgmr.msra.gmra.mrb[4].mxu0 %vm229_vm2, %v913_v6  ;;  %1019 = vmatmul.mubr.msk.bf16.vlgmr.msra.gmra.mrb[4].mxu1 %vm229_vm2, %v915_v8 }
 0x118   :  { %1024 = vmatprep.mubr.msk.bf16.mxu1 %vm124_vm1, %v497_v20  ;;  %1023 = vmatpush3.bf16.msra.mxu1 %v529_v9 }
 0x119   :  { %1033 = vmatpush3.bf16.msra.mxu0 %v609_v28 }
 0x11f   :  { %1025 = vmatmul.mubr.msk.bf16.vlgmr.msra.gmra.mrb[8].mxu1 %vm124_vm1, %v498_v25 }
 0x120   :  { %1028 = vmatprep.mubr.msk.bf16.mxu1 %vm124_vm1, %v499_v7 }
 0x127   :  { %1029 = vmatmul.mubr.msk.bf16.gmra.mrb[12].mxu1 %vm124_vm1, %v500_v18 }
 0x1e2   :  { %v267_v30 = vpop.f32.mrb[0].mxu0  ;;  %v316_v11 = vpop.f32.mrb[0].mxu1 }
 0x1e3   :  { %v421_v32 = vadd.f32 %v267_v30, %v216_v29  ;;  %v423_v33 = vadd.f32 %v316_v11, %v218_v17  ;;  %v1002_v34 = vpop.f32.mrb[1].mxu0  ;;  %v1008_v35 = vpop.f32.mrb[1].mxu1 }
 0x1e4   :  { %v270_v36 = vpop.f32.mrb[2].mxu0  ;;  %v319_v37 = vpop.f32.mrb[2].mxu1 }
 0x1e5   :  { %430 = vst.msk [vmem:[#allocation2] sm:$0xff] %vm124_vm1, %v421_v32  ;;  %432 = vst.msk [vmem:[#allocation2 + $0x10] sm:$0xff] %vm124_vm1, %v423_v33  ;;  %v422_v38 = vadd.f32 %v270_v36, %v217_v19  ;;  %v424_v39 = vadd.f32 %v319_v37, %v219_v31  ;;  %v1003_v40 = vpop.f32.mrb[3].mxu0  ;;  %v1009_v41 = vpop.f32.mrb[3].mxu1 }
 0x1e7   :  { %431 = vst.msk [vmem:[#allocation2 + $0x8] sm:$0xff] %vm124_vm1, %v422_v38  ;;  %433 = vst.msk [vmem:[#allocation2 + $0x18] sm:$0xff] %vm124_vm1, %v424_v39 }
 0x1ea   :  { %v365_v44 = vpop.f32.mrb[4].mxu0  ;;  %v414_v45 = vpop.f32.mrb[4].mxu1 }
 0x1eb   :  { %v425_v48 = vadd.f32 %v365_v44, %v220_v42  ;;  %v427_v49 = vadd.f32 %v414_v45, %v222_v43  ;;  %v1014_v50 = vpop.f32.mrb[5].mxu0  ;;  %v1020_v51 = vpop.f32.mrb[5].mxu1 }
 0x1ec   :  { %v368_v52 = vpop.f32.mrb[6].mxu0  ;;  %v417_v53 = vpop.f32.mrb[6].mxu1  ;;  %v503_v54 = vld [vmem:[#allocation2 + $0x10] sm:$0xff]  ;;  %v501_v59 = vld [vmem:[#allocation2] sm:$0xff] }
 0x1ed   :  { %434 = vst.msk [vmem:[#allocation2 + $0x20] sm:$0xff] %vm124_vm1, %v425_v48  ;;  %436 = vst.msk [vmem:[#allocation2 + $0x30] sm:$0xff] %vm124_vm1, %v427_v49  ;;  %v426_v55 = vadd.f32 %v368_v52, %v221_v46  ;;  %v428_v56 = vadd.f32 %v417_v53, %v223_v47  ;;  %v1015_v57 = vpop.f32.mrb[7].mxu0  ;;  %v1021_v58 = vpop.f32.mrb[7].mxu1 }
 0x1ee   :  { %v502_v60 = vld [vmem:[#allocation2 + $0x8] sm:$0xff]  ;;  %v504_v61 = vld [vmem:[#allocation2 + $0x18] sm:$0xff] }
 0x1ef   :  { %435 = vst.msk [vmem:[#allocation2 + $0x28] sm:$0xff] %vm124_vm1, %v426_v55  ;;  %437 = vst.msk [vmem:[#allocation2 + $0x38] sm:$0xff] %vm124_vm1, %v428_v56  ;;  %v509_v62 = vpack.c.bf16 %v502_v60, %v501_v59  ;;  %v510_v63 = vpack.c.bf16 %v504_v61, %v503_v54 }
 0x1f1   :  { %1034 = vmatprep.mubr.msk.bf16.mxu0 %vm124_vm1, %v509_v62 }
 0x1f2   :  { %v1026_v0 = vpop.f32.mrb[8].mxu1  ;;  %1035 = vmatmul.mubr.msk.bf16.vlgmr.msra.gmra.mrb[8].mxu0 %vm124_vm1, %v510_v63 }
 0x1f3   :  { %v565_v1 = vpop.f32.mrb[9].mxu1 }
 0x1f4   :  { %v1027_v2 = vpop.f32.mrb[10].mxu1  ;;  %v505_v3 = vld [vmem:[#allocation2 + $0x20] sm:$0xff]  ;;  %v507_v4 = vld [vmem:[#allocation2 + $0x30] sm:$0xff] }
 0x1f5   :  { %v568_v6 = vpop.f32.mrb[11].mxu1 }
 0x1f6   :  { %v506_v8 = vld [vmem:[#allocation2 + $0x28] sm:$0xff]  ;;  %v508_v9 = vld [vmem:[#allocation2 + $0x38] sm:$0xff] }
 0x1f7   :  { %v511_v20 = vpack.c.bf16 %v506_v8, %v505_v3  ;;  %v512_v12 = vpack.c.bf16 %v508_v9, %v507_v4 }
 0x1f9   :  { %1038 = vmatprep.mubr.msk.bf16.mxu0 %vm124_vm1, %v511_v20 }
 0x1fa   :  { %v1030_v14 = vpop.f32.mrb[12].mxu1  ;;  %1039 = vmatmul.mubr.msk.bf16.gmra.mrb[12].mxu0 %vm124_vm1, %v512_v12 }
 0x1fb   :  { %v581_v5 = vpop.f32.mrb[13].mxu1 }
 0x1fc   :  { %v1031_v21 = vpop.f32.mrb[14].mxu1 }
 0x1fd   :  { %v584_v22 = vpop.f32.mrb[15].mxu1 }
 0x2c5   :  { %v1036_v23 = vpop.f32.mrb[8].mxu0 }
 0x2c6   :  { %v654_v13 = vadd.f32 %v1036_v23, %v1026_v0  ;;  %v645_v25 = vpop.f32.mrb[9].mxu0 }
 0x2c7   :  { %v646_v7 = vadd.f32 %v645_v25, %v565_v1  ;;  %v1037_v15 = vpop.f32.mrb[10].mxu0 }
 0x2c8   :  { %v1553_v26 = vadd.f32 %v925_v24, %v654_v13  ;;  %v657_v10 = vadd.f32 %v1037_v15, %v1027_v2  ;;  %v648_v16 = vpop.f32.mrb[11].mxu0 }
 0x2c9   :  { %v1555_v18 = vadd.f32 %v925_v24, %v646_v7  ;;  %v649_v27 = vadd.f32 %v648_v16, %v568_v6 }
 0x2ca   :  { %v693_v28 = vmul.f32 %v1553_v26, %v1553_v26  ;;  %v1561_v17 = vadd.f32 %v925_v24, %v657_v10 }
 0x2cb   :  { %v1559_v29 = vadd.f32 %v925_v24, %v649_v27  ;;  %v691_v11 = vmul.f32 %v1555_v18, %v1555_v18 }
 0x2cc   :  { %v706_v30 = vsel %vm699_vm4, %v693_v28, 0.0  ;;  %v694_v40 = vmul.f32 %v1561_v17, %v1561_v17 }
 0x2cd   :  { %707 = vadd.xlane.f32.xlu0 %v706_v30  ;;  %v1040_v19 = vpop.f32.mrb[12].mxu0  ;;  %v692_v31 = vmul.f32 %v1559_v29, %v1559_v29  ;;  %v700_v39 = vsel %vm699_vm4, %v691_v11, 0.0 }
 0x2ce   :  { %v670_v32 = vadd.f32 %v1040_v19, %v1030_v14  ;;  %v661_v33 = vpop.f32.mrb[13].mxu0  ;;  %v709_v47 = vsel %vm699_vm4, %v694_v40, 0.0 }
 0x2cf   :  { %v662_v34 = vadd.f32 %v661_v33, %v581_v5  ;;  %v1041_v35 = vpop.f32.mrb[14].mxu0  ;;  %v703_v36 = vsel %vm699_vm4, %v692_v31, 0.0 }
 0x2d0   :  { %v673_v37 = vadd.f32 %v1041_v35, %v1031_v21  ;;  %v664_v38 = vpop.f32.mrb[15].mxu0  ;;  %704 = vadd.xlane.f32.xlu1 %v703_v36  ;;  %v1572_v41 = vadd.f32 %v925_v24, %v670_v32 }
 0x2d1   :  { %v687_v42 = vadd.f32 %v925_v24, %v662_v34  ;;  %v665_v43 = vadd.f32 %v664_v38, %v584_v22  ;;  %701 = vadd.xlane.f32.xlu0 %v700_v39 }
 0x2d2   :  { %v1576_v46 = vadd.f32 %v925_v24, %v673_v37  ;;  %v697_v50 = vmul.f32 %v1572_v41, %v1572_v41 }
 0x2d3   :  { %v1574_v44 = vadd.f32 %v925_v24, %v665_v43  ;;  %v695_v45 = vmul.f32 %v687_v42, %v687_v42 }
 0x2d4   :  { %v698_v52 = vmul.f32 %v1576_v46, %v1576_v46  ;;  %v718_v53 = vsel %vm699_vm4, %v697_v50, 0.0 }
 0x2d5   :  { %710 = vadd.xlane.f32.xlu0 %v709_v47  ;;  %v712_v48 = vsel %vm699_vm4, %v695_v45, 0.0  ;;  %v696_v49 = vmul.f32 %v1574_v44, %v1574_v44 }
 0x2d6   :  { %713 = vadd.xlane.f32.xlu1 %v712_v48  ;;  %v721_v54 = vsel %vm699_vm4, %v698_v52, 0.0 }
 0x2d7   :  { %v715_v51 = vsel %vm699_vm4, %v696_v49, 0.0 }
 0x2d9   :  { %716 = vadd.xlane.f32.xlu0 %v715_v51 }
 0x2da   :  { %719 = vadd.xlane.f32.xlu1 %v718_v53 }
 0x2dd   :  { %722 = vadd.xlane.f32.xlu0 %v721_v54 }
 0x35a   :  { %v708_v55 = vpop.xlane.xlu0 %707 }
 0x35b   :  { %v726_v56 = vmax.f32 %v708_v55, 1e-24 }
 0x35d   :  { %1072 = vrsqrt.f32 %v726_v56  ;;  %v705_v57 = vpop.xlane.xlu1 %704 }
 0x35e   :  { %v725_v58 = vmax.f32 %v705_v57, 1e-24  ;;  %v702_v59 = vpop.xlane.xlu0 %701 }
 0x35f   :  { %v724_v60 = vmax.f32 %v702_v59, 1e-24 }
 0x360   :  { %1074 = vrsqrt.f32 %v725_v58 }
 0x361   :  { %1076 = vrsqrt.f32 %v724_v60 }
 0x362   :  { %v711_v61 = vpop.xlane.xlu0 %710 }
 0x363   :  { %v727_v62 = vmax.f32 %v711_v61, 1e-24  ;;  %v714_v63 = vpop.xlane.xlu1 %713 }
 0x364   :  { %v728_v0 = vmax.f32 %v714_v63, 1e-24 }
 0x365   :  { %1078 = vrsqrt.f32 %v727_v62 }
 0x366   :  { %1080 = vrsqrt.f32 %v728_v0  ;;  %v717_v1 = vpop.xlane.xlu0 %716 }
 0x367   :  { %v1073_v2 = vpop.eup %1072  ;;  %v729_v3 = vmax.f32 %v717_v1, 1e-24  ;;  %v720_v4 = vpop.xlane.xlu1 %719 }
 0x368   :  { %v730_v6 = vmax.f32 %v720_v4, 1e-24  ;;  %v742_v8 = vmul.f32 %v1073_v2, %v1553_v26 }
 0x369   :  { %1082 = vrsqrt.f32 %v729_v3 }
 0x36a   :  { %v1075_v9 = vpop.eup %1074  ;;  %1084 = vrsqrt.f32 %v730_v6  ;;  %v723_v20 = vpop.xlane.xlu0 %722  ;;  %v750_v12 = vmax.f32 %v742_v8, 0.0 }
 0x36b   :  { %v1077_v14 = vpop.eup %1076  ;;  %v731_v5 = vmax.f32 %v723_v20, 1e-24  ;;  %v741_v21 = vmul.f32 %v1075_v9, %v1559_v29 }
 0x36c   :  { %v740_v22 = vmul.f32 %v1077_v14, %v1555_v18  ;;  %v936_v23 = vpack.c.bf16 %v750_v12, %v750_v12  ;;  %v817_v15 = vmul.f32 %v750_v12, %v750_v12  ;;  %v798_v19 = vsel %vm699_vm4, %v750_v12, 0.0 }
 0x36d   :  { %1086 = vrsqrt.f32 %v731_v5  ;;  %v749_v24 = vmax.f32 %v741_v21, 0.0 }
 0x36e   :  { %v748_v13 = vmax.f32 %v740_v22, 0.0  ;;  %791 = vst.msk [vmem:[#allocation15 + $0x8] sm:$0xf] %vm788_vm5, %v936_v23  ;;  %v824_v31 = vsel %vm699_vm4, %v817_v15, 0.0 }
 0x36f   :  { %v1079_v25 = vpop.eup %1078  ;;  %v935_v7 = vpack.c.bf16 %v749_v24, %v749_v24  ;;  %v806_v39 = vsel %vm699_vm4, %v749_v24, 0.0  ;;  %v816_v50 = vmul.f32 %v749_v24, %v749_v24 }
 0x370   :  { %v1081_v26 = vpop.eup %1080  ;;  %v934_v10 = vpack.c.bf16 %v748_v13, %v748_v13  ;;  %v743_v16 = vmul.f32 %v1079_v25, %v1561_v17  ;;  %v815_v27 = vmul.f32 %v748_v13, %v748_v13  ;;  %v797_v11 = vsel %vm699_vm4, %v748_v13, 0.0 }
 0x371   :  { %v744_v28 = vmul.f32 %v1081_v26, %v687_v42  ;;  %790 = vst.msk [vmem:[#allocation15 + $0x4] sm:$0xf] %vm788_vm5, %v935_v7  ;;  %v799_v40 = vadd.f32 %v798_v19, %v797_v11  ;;  %v832_v63 = vsel %vm699_vm4, %v816_v50, 0.0 }
 0x372   :  { %789 = vst.msk [vmem:[#allocation15] sm:$0xf] %vm788_vm5, %v934_v10  ;;  %v751_v18 = vmax.f32 %v743_v16, 0.0  ;;  %v823_v35 = vsel %vm699_vm4, %v815_v27, 0.0 }
 0x373   :  { %v1083_v29 = vpop.eup %1082  ;;  %v752_v30 = vmax.f32 %v744_v28, 0.0  ;;  %v825_v49 = vadd.f32 %v824_v31, %v823_v35 }
 0x374   :  { %v1085_v32 = vpop.eup %1084  ;;  %v745_v33 = vmul.f32 %v1083_v29, %v1574_v44  ;;  %v937_v34 = vpack.c.bf16 %v751_v18, %v751_v18  ;;  %v807_v17 = vsel %vm699_vm4, %v751_v18, 0.0  ;;  %v818_v45 = vmul.f32 %v751_v18, %v751_v18 }
 0x375   :  { %v746_v36 = vmul.f32 %v1085_v32, %v1572_v41  ;;  %v938_v37 = vpack.c.bf16 %v752_v30, %v752_v30  ;;  %v800_v38 = vsel %vm699_vm4, %v752_v30, 0.0  ;;  %v819_v43 = vmul.f32 %v752_v30, %v752_v30 }
 0x376   :  { %v753_v42 = vmax.f32 %v745_v33, 0.0  ;;  %792 = vst.msk [vmem:[#allocation15 + $0xc] sm:$0xf] %vm788_vm5, %v937_v34  ;;  %v808_v48 = vadd.f32 %v807_v17, %v806_v39  ;;  %v801_v51 = vadd.f32 %v800_v38, %v799_v40  ;;  %v833_v61 = vsel %vm699_vm4, %v818_v45, 0.0 }
 0x377   :  { %v1087_v47 = vpop.eup %1086  ;;  %v754_v44 = vmax.f32 %v746_v36, 0.0  ;;  %793 = vst.msk [vmem:[#allocation15 + $0x10] sm:$0xf] %vm788_vm5, %v938_v37  ;;  %v826_v57 = vsel %vm699_vm4, %v819_v43, 0.0  ;;  %v834_v6 = vadd.f32 %v833_v61, %v832_v63 }
 0x378   :  { %v747_v41 = vmul.f32 %v1087_v47, %v1576_v46  ;;  %v939_v52 = vpack.c.bf16 %v753_v42, %v753_v42  ;;  %v809_v53 = vsel %vm699_vm4, %v753_v42, 0.0  ;;  %v820_v60 = vmul.f32 %v753_v42, %v753_v42 }
 0x379   :  { %v940_v54 = vpack.c.bf16 %v754_v44, %v754_v44  ;;  %v802_v55 = vsel %vm699_vm4, %v754_v44, 0.0  ;;  %v821_v56 = vmul.f32 %v754_v44, %v754_v44  ;;  %v810_v62 = vadd.f32 %v809_v53, %v808_v48 }
 0x37a   :  { %v803_v58 = vadd.f32 %v802_v55, %v801_v51  ;;  %v755_v59 = vmax.f32 %v747_v41, 0.0  ;;  %794 = vst.msk [vmem:[#allocation15 + $0x14] sm:$0xf] %vm788_vm5, %v939_v52  ;;  %v827_v2 = vadd.f32 %v826_v57, %v825_v49  ;;  %v835_v8 = vsel %vm699_vm4, %v820_v60, 0.0 }
 0x37b   :  { %795 = vst.msk [vmem:[#allocation15 + $0x18] sm:$0xf] %vm788_vm5, %v940_v54  ;;  %v828_v46 = vsel %vm699_vm4, %v821_v56, 0.0  ;;  %v836_v12 = vadd.f32 %v835_v8, %v834_v6 }
 0x37c   :  { %804 = vadd.xlane.f32.xlu1 %v803_v58  ;;  %v811_v0 = vsel %vm699_vm4, %v755_v59, 0.0  ;;  %v941_v1 = vpack.c.bf16 %v755_v59, %v755_v59  ;;  %v822_v3 = vmul.f32 %v755_v59, %v755_v59  ;;  %v829_v9 = vadd.f32 %v828_v46, %v827_v2 }
 0x37d   :  { %v812_v4 = vadd.f32 %v811_v0, %v810_v62 }
 0x37e   :  { %796 = vst.msk [vmem:[#allocation15 + $0x1c] sm:$0xf] %vm788_vm5, %v941_v1  ;;  %v837_v20 = vsel %vm699_vm4, %v822_v3, 0.0 }
 0x37f   :  { %813 = vadd.xlane.f32.xlu0 %v812_v4  ;;  %v838_v14 = vadd.f32 %v837_v20, %v836_v12 }
 0x380   :  { %830 = vadd.xlane.f32.xlu1 %v829_v9 }
 0x383   :  { %839 = vadd.xlane.f32.xlu0 %v838_v14 }
 0x384   :  { %1253 = shalt.err (!%p1250_p4)
}
 0x385   :  { %s1254_s29 = scalar_lea.hbm %s1654_s7, 512 }
 0x386   :  { %p1255_p5 = scmp.ne.s32.totalorder %s1654_s7, %s1254_s29  ;;  %p1258_p6 = scmp.lt.u32.totalorder %s1254_s29, %s1654_s7 }
 0x388   :  { %p1260_p7 = pnand %p1258_p6, %p1255_p5 }
 0x38a   :  { %1263 = shalt.err (!%p1260_p7)
}
 0x38b   :  { %884 = dma.vmem_to_hbm [thread:$0]  %s879_s0, 512, %s1654_s7, [#allocation5], %s1306_s5, %s1306_s5, %s1307_s10   ;;  %v843_v5 = vlaneseq  ;;  %vm854_vm6 = vcmask 130112   ;;  %vm869_vm7 = vcmask 1040384   ;;  %vm871_vm8 = vcmask 123904  }
 0x38c   :  { %s1315_s2 = smov [#allocation16]  }
 0x38d   :  { %v844_v21 = vand.u32 127, %v843_v5  ;;  %v846_v23 = vshrl.u32 %v843_v5, 7  ;;  %s891_s15 = sshll.u32 %s1315_s2, 4  ;;  %s892_s15 = int_to_ptr.vmem [resolvable:$true] %s891_s15 }
 0x38e   :  { %s1264_s7 = scalar_lea.vmem %s892_s15, 32  ;;  %p1269_p9 = scmp.lt.s32.totalorder %s892_s15, %s892_s15 }
 0x38f   :  { %v849_v22 = vadd.s32 4294967288, %v844_v21  ;;  %v847_v7 = vsub.s32 %v844_v21, %v846_v23  ;;  %p1265_p8 = scmp.ne.s32.totalorder %s892_s15, %s1264_s7  ;;  %p1270_p10 = scmp.lt.s32.totalorder %s1264_s7, %s1264_s7 }
 0x391   :  { %v852_v13 = vsub.s32 %v849_v22, %v846_v23  ;;  %p1271_p11 = por %p1270_p10, %p1269_p9 }
 0x393   :  { %p1272_p12 = pnand %p1271_p11, %p1265_p8 }
 0x409   :  { %v805_v24 = vpop.xlane.xlu1 %804 }
 0x40a   :  { %v848_v16 = vrot.slane %v805_v24, %v847_v7 }
 0x40c   :  { %v814_v25 = vpop.xlane.xlu0 %813 }
 0x40d   :  { %v831_v15 = vpop.xlane.xlu1 %830  ;;  %v853_v26 = vrot.slane %v814_v25, %v852_v13 }
 0x40e   :  { %v862_v27 = vrot.slane %v831_v15, %v847_v7 }
 0x40f   :  { %v855_v18 = vsel %vm854_vm6, %v853_v26, %v848_v16 }
 0x410   :  { %v840_v10 = vpop.xlane.xlu0 %839 }
 0x411   :  { %v866_v28 = vrot.slane %v840_v10, %v852_v13 }
 0x413   :  { %v867_v29 = vsel %vm854_vm6, %v866_v28, %v862_v27 }
 0x414   :  { %v870_v30 = vsel %vm869_vm7, %v855_v18, %v867_v29 }
 0x415   :  { %872 = vst.msk [vmem:[#allocation16] sm:$0x3] %vm871_vm8, %v870_v30 }
 0x416   :  { %1275 = shalt.err (!%p1272_p12)
}
 0x417   :  { %s1276_s16 = scalar_lea.hbm %s1655_s8, 32 }
 0x418   :  { %p1277_p13 = scmp.ne.s32.totalorder %s1655_s8, %s1276_s16  ;;  %p1280_p0 = scmp.lt.u32.totalorder %s1276_s16, %s1655_s8 }
 0x41a   :  { %p1282_p1 = pnand %p1280_p0, %p1277_p13 }
 0x41c   :  { %1285 = shalt.err (!%p1282_p1)
}
 0x41d   :  { %894 = dma.vmem_to_hbm [thread:$0]  %s892_s15, 32, %s1655_s8, [#allocation17]  }
 0x41e   :  { %1294 = dma.done.wait [#allocation5], 512  }
 0x41f   :  { %1295 = vsyncadd [#allocation5], 4294966784 }
 0x420   :  { %1296 = dma.done.wait [#allocation17], 32  }
 0x421   :  { %1297 = vsyncadd [#allocation17], 4294967264 }
 0x422   :  { %901 = vsyncpa [#allocation4], 1 }
 0x423   :  { %902 = vsyncpa [#allocation7], 1 }
 0x424   :  { %903 = vsyncpa [#allocation10], 1 }
 0x425   :  { %904 = vsyncpa [#allocation13], 1 }
 0x426   :  { %905 = vsyncpa [#allocation5], 1 }
 0x427   :  { %906 = vsyncpa [#allocation17], 1 }

// kernel: gcn_encoder_forward.4
= control target key start
LH: loop header
LB: loop body
LE: loop exit
PB: predicated region body
PF: predicated region fallthrough
CT: control target
= control target key end

     0   :  { %14 = vsyncpa [#allocation4], 0  ;;  %s1694_s0 = inlined_call_operand.hbm [shape: bf16[4,16,32], index: 0, kind: input, shape index: {}]   ;;  %s1695_s1 = inlined_call_operand.hbm [shape: f32[16,1], index: 1, kind: input, shape index: {}]   ;;  %s1696_s2 = inlined_call_operand.hbm [shape: f32[16,1], index: 2, kind: input, shape index: {}]   ;;  %s1697_s3 = inlined_call_operand.hbm [shape: s8[4,16,16], index: 3, kind: input, shape index: {}]   ;;  %s1698_s4 = inlined_call_operand.hbm [shape: bf16[32,32], index: 4, kind: input, shape index: {}]   ;;  %s1699_s5 = inlined_call_operand.hbm [shape: bf16[32,32], index: 5, kind: input, shape index: {}]   ;;  %s1700_s6 = inlined_call_operand.hbm [shape: f32[1,32], index: 6, kind: input, shape index: {}]   ;;  %s1701_s7 = inlined_call_operand.hbm [shape: bf16[4,16,32], index: 7, kind: output, shape index: {0}]   ;;  %s1702_s8 = inlined_call_operand.hbm [shape: f32[1,2,16], index: 8, kind: output, shape index: {1}]  }
   0x1   :  { %15 = vsyncpa [#allocation7], 0 }
   0x2   :  { %16 = vsyncpa [#allocation10], 0 }
   0x3   :  { %17 = vsyncpa [#allocation13], 0 }
   0x4   :  { %18 = vsyncpa [#allocation5], 0 }
   0x5   :  { %19 = vsyncpa [#allocation17], 0  ;;  %s1336_s27 = smov [#allocation6]   ;;  %s1126_s9 = scalar_lea.hbm %s1695_s1, 256 }
   0x6   :  { %s37_s28 = sshll.u32 %s1336_s27, 4  ;;  %p1127_p0 = scmp.ne.s32.totalorder %s1695_s1, %s1126_s9  ;;  %s38_s28 = int_to_ptr.vmem [resolvable:$true] %s37_s28 }
   0x7   :  { %p1130_p1 = scmp.lt.u32.totalorder %s1126_s9, %s1695_s1 }
   0x9   :  { %p1132_p2 = pnand %p1130_p1, %p1127_p0 }
   0xb   :  { %1135 = shalt.err (!%p1132_p2)
}
   0xc   :  { %s1136_s14 = scalar_lea.vmem %s38_s28, 256  ;;  %p1141_p4 = scmp.lt.s32.totalorder %s38_s28, %s38_s28 }
   0xd   :  { %p1137_p3 = scmp.ne.s32.totalorder %s38_s28, %s1136_s14  ;;  %p1142_p5 = scmp.lt.s32.totalorder %s1136_s14, %s1136_s14 }
   0xf   :  { %p1143_p6 = por %p1142_p5, %p1141_p4 }
  0x11   :  { %p1144_p7 = pnand %p1143_p6, %p1137_p3 }
  0x13   :  { %1147 = shalt.err (!%p1144_p7)
}
  0x14   :  { %s1337_s15 = smov 128   ;;  %s1338_s16 = smov 8  }
  0x15   :  { %43 = dma.hbm_to_vmem [thread:$0]  %s1695_s1, 256, %s38_s28, [#allocation7], %s1337_s15, %s1337_s15, %s1338_s16  }
  0x16   :  { %s1339_s19 = smov [#allocation9]   ;;  %s1148_s23 = scalar_lea.hbm %s1697_s3, 256 }
  0x17   :  { %s61_s20 = sshll.u32 %s1339_s19, 4  ;;  %p1149_p8 = scmp.ne.s32.totalorder %s1697_s3, %s1148_s23  ;;  %s62_s20 = int_to_ptr.vmem [resolvable:$true] %s61_s20 }
  0x18   :  { %p1152_p9 = scmp.lt.u32.totalorder %s1148_s23, %s1697_s3 }
  0x1a   :  { %p1154_p10 = pnand %p1152_p9, %p1149_p8 }
  0x1c   :  { %1157 = shalt.err (!%p1154_p10)
}
  0x1d   :  { %s1158_s29 = scalar_lea.vmem %s62_s20, 256  ;;  %p1163_p12 = scmp.lt.s32.totalorder %s62_s20, %s62_s20 }
  0x1e   :  { %p1159_p11 = scmp.ne.s32.totalorder %s62_s20, %s1158_s29  ;;  %p1164_p13 = scmp.lt.s32.totalorder %s1158_s29, %s1158_s29 }
  0x20   :  { %p1165_p0 = por %p1164_p13, %p1163_p12 }
  0x22   :  { %p1166_p1 = pnand %p1165_p0, %p1159_p11 }
  0x24   :  { %1169 = shalt.err (!%p1166_p1)
}
  0x25   :  { %s1340_s1 = smov 32   ;;  %s1341_s28 = smov 2  }
  0x26   :  { %67 = dma.hbm_to_vmem [thread:$0]  %s1697_s3, 256, %s62_s20, [#allocation10], %s1340_s1, %s1340_s1, %s1341_s28  }
  0x27   :  { %s1342_s10 = smov [#allocation12]   ;;  %s1343_s12 = smov [#allocation3]  }
  0x28   :  { %s85_s11 = sshll.u32 %s1342_s10, 4  ;;  %s25_s13 = sshll.u32 %s1343_s12, 4  ;;  %s86_s11 = int_to_ptr.vmem [resolvable:$true] %s85_s11  ;;  %s1426_s13 = int_to_ptr.vmem [resolvable:$true] %s25_s13 }
  0x29   :  { %s1170_s18 = scalar_lea.hbm %s1699_s5, 256 }
  0x2a   :  { %p1171_p2 = scmp.ne.s32.totalorder %s1699_s5, %s1170_s18  ;;  %p1174_p3 = scmp.lt.u32.totalorder %s1170_s18, %s1699_s5 }
  0x2c   :  { %p1176_p4 = pnand %p1174_p3, %p1171_p2 }
  0x2e   :  { %1179 = shalt.err (!%p1176_p4)
}
  0x2f   :  { %s1180_s3 = scalar_lea.vmem %s86_s11, 256  ;;  %p1185_p6 = scmp.lt.s32.totalorder %s86_s11, %s86_s11 }
  0x30   :  { %p1181_p5 = scmp.ne.s32.totalorder %s86_s11, %s1180_s3  ;;  %p1186_p7 = scmp.lt.s32.totalorder %s1180_s3, %s1180_s3 }
  0x32   :  { %p1187_p8 = por %p1186_p7, %p1185_p6 }
  0x34   :  { %p1188_p9 = pnand %p1187_p8, %p1181_p5 }
  0x36   :  { %1191 = shalt.err (!%p1188_p9)
}
  0x37   :  { %s1344_s20 = smov 64   ;;  %s1345_s24 = smov 4  }
  0x38   :  { %91 = dma.hbm_to_vmem [thread:$0]  %s1699_s5, 256, %s86_s11, [#allocation13], %s1344_s20, %s1344_s20, %s1345_s24  }
  0x39   :  { %s1192_s1 = scalar_lea.hbm %s1694_s0, 512 }
  0x3a   :  { %p1193_p10 = scmp.ne.s32.totalorder %s1694_s0, %s1192_s1  ;;  %p1196_p11 = scmp.lt.u32.totalorder %s1192_s1, %s1694_s0 }
  0x3c   :  { %p1198_p12 = pnand %p1196_p11, %p1193_p10 }
  0x3e   :  { %1201 = shalt.err (!%p1198_p12)
}
  0x3f   :  { %s1202_s12 = scalar_lea.vmem %s1426_s13, 512  ;;  %p1207_p0 = scmp.lt.s32.totalorder %s1426_s13, %s1426_s13 }
  0x40   :  { %p1203_p13 = scmp.ne.s32.totalorder %s1426_s13, %s1202_s12  ;;  %p1208_p1 = scmp.lt.s32.totalorder %s1202_s12, %s1202_s12 }
  0x42   :  { %p1209_p2 = por %p1208_p1, %p1207_p0 }
  0x44   :  { %p1210_p3 = pnand %p1209_p2, %p1203_p13 }
  0x46   :  { %1213 = shalt.err (!%p1210_p3)
}
  0x47   :  { %31 = dma.hbm_to_vmem [thread:$0]  %s1694_s0, 512, %s1426_s13, [#allocation4], %s1344_s20, %s1344_s20, %s1345_s24  }
  0x48   :  { %s1346_s14 = smov [#allocation8]   ;;  %s1347_s18 = smov [#allocation11]  }
  0x49   :  { %s49_s17 = sshll.u32 %s1346_s14, 4  ;;  %s73_s19 = sshll.u32 %s1347_s18, 4  ;;  %s50_s17 = int_to_ptr.vmem [resolvable:$true] %s49_s17  ;;  %s1463_s19 = int_to_ptr.vmem [resolvable:$true] %s73_s19 }
  0x4a   :  { %s1214_s23 = scalar_lea.hbm %s1696_s2, 256 }
  0x4b   :  { %p1215_p4 = scmp.ne.s32.totalorder %s1696_s2, %s1214_s23  ;;  %p1218_p5 = scmp.lt.u32.totalorder %s1214_s23, %s1696_s2 }
  0x4d   :  { %p1220_p6 = pnand %p1218_p5, %p1215_p4 }
  0x4f   :  { %1223 = shalt.err (!%p1220_p6)
}
  0x50   :  { %s1224_s0 = scalar_lea.vmem %s50_s17, 256  ;;  %p1229_p8 = scmp.lt.s32.totalorder %s50_s17, %s50_s17 }
  0x51   :  { %p1225_p7 = scmp.ne.s32.totalorder %s50_s17, %s1224_s0  ;;  %p1230_p9 = scmp.lt.s32.totalorder %s1224_s0, %s1224_s0 }
  0x53   :  { %p1231_p10 = por %p1230_p9, %p1229_p8 }
  0x55   :  { %p1232_p11 = pnand %p1231_p10, %p1225_p7 }
  0x57   :  { %1235 = shalt.err (!%p1232_p11)
}
  0x58   :  { %55 = dma.hbm_to_vmem [thread:$0]  %s1696_s2, 256, %s50_s17, [#allocation7], %s1337_s15, %s1337_s15, %s1338_s16  }
  0x59   :  { %s1236_s30 = scalar_lea.hbm %s1698_s4, 256 }
  0x5a   :  { %p1237_p12 = scmp.ne.s32.totalorder %s1698_s4, %s1236_s30  ;;  %p1240_p13 = scmp.lt.u32.totalorder %s1236_s30, %s1698_s4 }
  0x5c   :  { %p1242_p0 = pnand %p1240_p13, %p1237_p12 }
  0x5e   :  { %1245 = shalt.err (!%p1242_p0)
}
  0x5f   :  { %s1246_s11 = scalar_lea.vmem %s1463_s19, 256  ;;  %p1251_p2 = scmp.lt.s32.totalorder %s1463_s19, %s1463_s19 }
  0x60   :  { %p1247_p1 = scmp.ne.s32.totalorder %s1463_s19, %s1246_s11  ;;  %p1252_p3 = scmp.lt.s32.totalorder %s1246_s11, %s1246_s11 }
  0x62   :  { %p1253_p4 = por %p1252_p3, %p1251_p2 }
  0x64   :  { %p1254_p5 = pnand %p1253_p4, %p1247_p1 }
  0x66   :  { %1257 = shalt.err (!%p1254_p5)
}
  0x67   :  { %79 = dma.hbm_to_vmem [thread:$0]  %s1698_s4, 256, %s1463_s19, [#allocation10], %s1344_s20, %s1344_s20, %s1345_s24  }
  0x68   :  { %s1348_s16 = smov [#allocation14]   ;;  %s1258_s21 = scalar_lea.hbm %s1700_s6, 16 }
  0x69   :  { %s98_s14 = sshll.u32 %s1348_s16, 4  ;;  %p1259_p6 = scmp.ne.s32.totalorder %s1700_s6, %s1258_s21  ;;  %s99_s14 = int_to_ptr.vmem [resolvable:$true] %s98_s14 }
  0x6a   :  { %p1262_p7 = scmp.lt.u32.totalorder %s1258_s21, %s1700_s6 }
  0x6c   :  { %p1264_p8 = pnand %p1262_p7, %p1259_p6 }
  0x6e   :  { %1267 = shalt.err (!%p1264_p8)
}
  0x6f   :  { %s1268_s26 = scalar_lea.vmem %s99_s14, 16  ;;  %s1272_s4 = scalar_lea.vmem %s99_s14, 32 }
  0x70   :  { %p1269_p9 = scmp.ne.s32.totalorder %s99_s14, %s1268_s26  ;;  %p1273_p10 = scmp.lt.s32.totalorder %s99_s14, %s99_s14 }
  0x71   :  { %p1274_p11 = scmp.lt.s32.totalorder %s1272_s4, %s1268_s26 }
  0x73   :  { %p1275_p12 = por %p1274_p11, %p1273_p10 }
  0x75   :  { %p1276_p13 = pnand %p1275_p12, %p1269_p9 }
  0x77   :  { %1279 = shalt.err (!%p1276_p13)
}
  0x78   :  { %101 = dma.hbm_to_vmem [thread:$0]  %s1700_s6, 16, %s99_s14, [#allocation13]  }
  0x79   :  { %1324 = dma.done.wait [#allocation4], 512  }
  0x7a   :  { %1325 = vsyncadd [#allocation4], 4294966784 }
  0x7b   :  { %1326 = dma.done.wait [#allocation7], 512  }
  0x7c   :  { %1327 = vsyncadd [#allocation7], 4294966784 }
  0x7d   :  { %1328 = dma.done.wait [#allocation10], 512  }
  0x7e   :  { %1329 = vsyncadd [#allocation10], 4294966784 }
  0x7f   :  { %1330 = dma.done.wait [#allocation13], 272  }
  0x80   :  { %1331 = vsyncadd [#allocation13], 4294967024  ;;  %v1349_v0 = vmov 0   ;;  %v180_v1 = vld [vmem:[#allocation8] sm:$0xff]  ;;  %v159_v2 = vld [vmem:[#allocation6] sm:$0xff]  ;;  %v1350_v5 = vmov 0.0  }
  0x81   :  { %1105 = vset.pattern.permute.xlu1 %v1349_v0  ;;  %1104 = vset.pattern.permute.xlu0 %v1349_v0  ;;  %v181_v3 = vld [vmem:[#allocation8 + $0x8] sm:$0xff]  ;;  %v160_v4 = vld [vmem:[#allocation6 + $0x8] sm:$0xff]  ;;  %vm1351_vm0 = vmmov 0   ;;  %vm128_vm1 = vcmask 261120   ;;  %v1534_v6 = vld [vmem:[#allocation3] sm:$0xff]   ;;  %vm233_vm2 = vcmask 130048  }
  0x82   :  { %184 = vperm.xlu1 %1105, %v180_v1   ;;  %163 = vperm.xlu0 %1104, %v159_v2   ;;  %129 = vst.msk [vmem:[#allocation2] sm:$0xff] %vm128_vm1, %v1350_v5  ;;  %130 = vst.msk [vmem:[#allocation2 + $0x8] sm:$0xff] %vm128_vm1, %v1350_v5  ;;  %v1536_v7 = vld [vmem:[#allocation3 + $0x8] sm:$0xff]   ;;  %v1538_v10 = vld [vmem:[#allocation3 + $0x10] sm:$0xff]   ;;  %v991_v12 = vunpack.c.h.bf16 %v1534_v6  ;;  %v990_v14 = vunpack.c.l.bf16 %v1534_v6  ;;  %vm814_vm3 = vcmask 257024   ;;  %s1352_s6 = smov [#allocation15]  }
  0x83   :  { %1030 = vmatprep.subr.bf16.mxu0 %v1350_v5  ;;  %1036 = vmatprep.subr.bf16.mxu1 %v1350_v5  ;;  %131 = vst.msk [vmem:[#allocation2 + $0x10] sm:$0xff] %vm128_vm1, %v1350_v5  ;;  %132 = vst.msk [vmem:[#allocation2 + $0x18] sm:$0xff] %vm128_vm1, %v1350_v5  ;;  %v1540_v11 = vld [vmem:[#allocation3 + $0x18] sm:$0xff]   ;;  %v995_v13 = vunpack.c.h.bf16 %v1536_v7  ;;  %v994_v15 = vunpack.c.l.bf16 %v1536_v7  ;;  %v983_v16 = vunpack.c.h.bf16 %v1538_v10  ;;  %v982_v18 = vunpack.c.l.bf16 %v1538_v10  ;;  %v204_v22 = vld [vmem:[#allocation9] sm:$0x3]  ;;  %s904_s0 = sshll.u32 %s1352_s6, 4  ;;  %s905_s0 = int_to_ptr.vmem [resolvable:$true] %s904_s0 }
  0x84   :  { %1032 = vmatprep.mubr.msk.bf16.mxu0 %vm1351_vm0, %v1350_v5  ;;  %1038 = vmatprep.mubr.msk.bf16.mxu1 %vm1351_vm0, %v1350_v5  ;;  %133 = vst.msk [vmem:[#allocation2 + $0x20] sm:$0xff] %vm128_vm1, %v1350_v5  ;;  %134 = vst.msk [vmem:[#allocation2 + $0x28] sm:$0xff] %vm128_vm1, %v1350_v5  ;;  %v987_v17 = vunpack.c.h.bf16 %v1540_v11  ;;  %v986_v19 = vunpack.c.l.bf16 %v1540_v11  ;;  %v205_v27 = vld [vmem:[#allocation9 + $0x2] sm:$0x3]  ;;  %v206_v28 = vld [vmem:[#allocation9 + $0x4] sm:$0x3]  ;;  %v212_v34 = vunpack.c.l.s8.bf16 %v204_v22  ;;  %p1285_p1 = scmp.lt.s32.totalorder %s905_s0, %s905_s0 }
  0x85   :  { %135 = vst.msk [vmem:[#allocation2 + $0x30] sm:$0xff] %vm128_vm1, %v1350_v5  ;;  %136 = vst.msk [vmem:[#allocation2 + $0x38] sm:$0xff] %vm128_vm1, %v1350_v5  ;;  %v207_v29 = vld [vmem:[#allocation9 + $0x6] sm:$0x3]  ;;  %v213_v35 = vunpack.c.l.s8.bf16 %v205_v27  ;;  %v214_v36 = vunpack.c.l.s8.bf16 %v206_v28  ;;  %v208_v50 = vld [vmem:[#allocation9 + $0x8] sm:$0x3] }
  0x86   :  { %189 = vperm.xlu1 %1105, %v181_v3   ;;  %168 = vperm.xlu0 %1104, %v160_v4   ;;  %v215_v37 = vunpack.c.l.s8.bf16 %v207_v29  ;;  %v209_v53 = vld [vmem:[#allocation9 + $0xa] sm:$0x3]  ;;  %v210_v54 = vld [vmem:[#allocation9 + $0xc] sm:$0x3]  ;;  %v211_v55 = vld [vmem:[#allocation9 + $0xe] sm:$0x3]  ;;  %v216_v61 = vunpack.c.l.s8.bf16 %v208_v50 }
  0x87   :  { %v935_v48 = vcombine.low %v212_v34, %v213_v35  ;;  %v1106_v58 = vld [vmem:[#allocation12] sm:$0xff]   ;;  %v217_v62 = vunpack.c.l.s8.bf16 %v209_v53  ;;  %v218_v63 = vunpack.c.l.s8.bf16 %v210_v54  ;;  %v219_v0 = vunpack.c.l.s8.bf16 %v211_v55  ;;  %v1108_v27 = vld [vmem:[#allocation11] sm:$0xff]   ;;  %v1109_v28 = vld [vmem:[#allocation11 + $0x8] sm:$0xff]   ;;  %s1280_s13 = scalar_lea.vmem %s905_s0, 512 }
  0x88   :  { %v937_v49 = vcombine.low %v214_v36, %v215_v37  ;;  %p1281_p0 = scmp.ne.s32.totalorder %s905_s0, %s1280_s13  ;;  %p1286_p2 = scmp.lt.s32.totalorder %s1280_s13, %s1280_s13 }
  0x89   :  { %v939_v6 = vcombine.low %v216_v61, %v217_v62  ;;  %v220_v29 = vld [vmem:[#allocation2] sm:$0xff] }
  0x8a   :  { %470 = vperm.xlu1 %1105, %v160_v4   ;;  %465 = vperm.xlu0 %1104, %v159_v2   ;;  %p1287_p3 = por %p1286_p2, %p1285_p1 }
  0x8c   :  { %p1288_p4 = pnand %p1287_p3, %p1281_p0 }
  0x8e   :  { %490 = vperm.xlu1 %1105, %v181_v3   ;;  %485 = vperm.xlu0 %1104, %v180_v1  }
 0x101   :  { %v185_v8 = vpop.permute.xlu1 %184  ;;  %v164_v9 = vpop.permute.xlu0 %163 }
 0x102   :  { %v171_v23 = vmul.f32 %v990_v14, %v164_v9  ;;  %v173_v25 = vmul.f32 %v994_v15, %v164_v9  ;;  %v175_v38 = vmul.f32 %v982_v18, %v164_v9  ;;  %v177_v39 = vmul.f32 %v986_v19, %v164_v9  ;;  %v1107_v9 = vld [vmem:[#allocation12 + $0x8] sm:$0xff]  }
 0x104   :  { %v192_v40 = vadd.f32 %v185_v8, %v171_v23  ;;  %v194_v41 = vadd.f32 %v185_v8, %v173_v25  ;;  %v196_v51 = vadd.f32 %v185_v8, %v175_v38  ;;  %v198_v52 = vadd.f32 %v185_v8, %v177_v39 }
 0x105   :  { %v190_v20 = vpop.permute.xlu1 %189  ;;  %v169_v21 = vpop.permute.xlu0 %168  ;;  %v941_v8 = vcombine.low %v218_v63, %v219_v0 }
 0x106   :  { %v172_v24 = vmul.f32 %v991_v12, %v169_v21  ;;  %v174_v26 = vmul.f32 %v995_v13, %v169_v21  ;;  %v176_v30 = vmul.f32 %v983_v16, %v169_v21  ;;  %v178_v31 = vmul.f32 %v987_v17, %v169_v21 }
 0x108   :  { %v193_v32 = vadd.f32 %v190_v20, %v172_v24  ;;  %v195_v33 = vadd.f32 %v190_v20, %v174_v26  ;;  %v197_v44 = vadd.f32 %v190_v20, %v176_v30  ;;  %v199_v45 = vadd.f32 %v190_v20, %v178_v31  ;;  %v223_v31 = vld [vmem:[#allocation2 + $0x18] sm:$0xff] }
 0x109   :  { %v471_v42 = vpop.permute.xlu1 %470  ;;  %v466_v43 = vpop.permute.xlu0 %465 }
 0x10a   :  { %v200_v46 = vpack.c.bf16 %v193_v32, %v192_v40  ;;  %v201_v47 = vpack.c.bf16 %v195_v33, %v194_v41  ;;  %v202_v56 = vpack.c.bf16 %v197_v44, %v196_v51  ;;  %v203_v57 = vpack.c.bf16 %v199_v45, %v198_v52 }
 0x10b   :  { %v474_v1 = vmul.f32 %v991_v12, %v471_v42  ;;  %v473_v2 = vmul.f32 %v990_v14, %v466_v43  ;;  %v476_v21 = vmul.f32 %v995_v13, %v471_v42  ;;  %v475_v12 = vmul.f32 %v994_v15, %v466_v43 }
 0x10c   :  { %1031 = vmatpush3.bf16.msra.mxu0 %v200_v46  ;;  %1037 = vmatpush3.bf16.msra.mxu1 %v201_v47  ;;  %v477_v14 = vmul.f32 %v982_v18, %v466_v43  ;;  %v480_v25 = vmul.f32 %v987_v17, %v471_v42  ;;  %v222_v17 = vld [vmem:[#allocation2 + $0x10] sm:$0xff]  ;;  %v225_v46 = vld [vmem:[#allocation2 + $0x28] sm:$0xff]  ;;  %v227_v47 = vld [vmem:[#allocation2 + $0x38] sm:$0xff] }
 0x10d   :  { %1042 = vmatprep.subr.bf16.mxu0 %v1350_v5  ;;  %1048 = vmatprep.subr.bf16.mxu1 %v1350_v5  ;;  %v491_v59 = vpop.permute.xlu1 %490  ;;  %v486_v60 = vpop.permute.xlu0 %485 }
 0x10e   :  { %v494_v3 = vadd.f32 %v491_v59, %v474_v1  ;;  %v493_v4 = vadd.f32 %v486_v60, %v473_v2  ;;  %v496_v22 = vadd.f32 %v491_v59, %v476_v21  ;;  %v495_v23 = vadd.f32 %v486_v60, %v475_v12 }
 0x10f   :  { %1033 = vmatmul.mubr.msk.bf16.vlgmr.msra.gmra.mrb[0].mxu0 %vm233_vm2, %v935_v48  ;;  %1039 = vmatmul.mubr.msk.bf16.vlgmr.msra.gmra.mrb[0].mxu1 %vm233_vm2, %v937_v49  ;;  %v497_v24 = vadd.f32 %v486_v60, %v477_v14  ;;  %v500_v10 = vadd.f32 %v491_v59, %v480_v25 }
 0x110   :  { %1043 = vmatpush3.bf16.msra.mxu0 %v202_v56  ;;  %1049 = vmatpush3.bf16.msra.mxu1 %v203_v57  ;;  %v501_v20 = vpack.c.bf16 %v494_v3, %v493_v4  ;;  %v502_v7 = vpack.c.bf16 %v496_v22, %v495_v23 }
 0x111   :  { %1044 = vmatprep.mubr.msk.bf16.mxu0 %vm1351_vm0, %v1350_v5  ;;  %1050 = vmatprep.mubr.msk.bf16.mxu1 %vm1351_vm0, %v1350_v5  ;;  %v478_v5 = vmul.f32 %v983_v16, %v471_v42  ;;  %v479_v16 = vmul.f32 %v986_v19, %v466_v43  ;;  %v221_v19 = vld [vmem:[#allocation2 + $0x8] sm:$0xff]  ;;  %v224_v42 = vld [vmem:[#allocation2 + $0x20] sm:$0xff]  ;;  %v226_v43 = vld [vmem:[#allocation2 + $0x30] sm:$0xff] }
 0x112   :  { %1054 = vmatprep.subr.bf16.mxu1 %v1106_v58  ;;  %1066 = vmatprep.subr.bf16.mxu0 %v1108_v27 }
 0x113   :  { %v498_v13 = vadd.f32 %v491_v59, %v478_v5  ;;  %v499_v18 = vadd.f32 %v486_v60, %v479_v16 }
 0x115   :  { %v503_v15 = vpack.c.bf16 %v498_v13, %v497_v24  ;;  %v504_v26 = vpack.c.bf16 %v500_v10, %v499_v18  ;;  %v955_v13 = vld [vmem:[#allocation14] ss:$0 sm:$0xff] }
 0x117   :  { %1045 = vmatmul.mubr.msk.bf16.vlgmr.msra.gmra.mrb[4].mxu0 %vm233_vm2, %v939_v6  ;;  %1051 = vmatmul.mubr.msk.bf16.vlgmr.msra.gmra.mrb[4].mxu1 %vm233_vm2, %v941_v8 }
 0x118   :  { %1055 = vmatpush3.bf16.msra.mxu1 %v1106_v58  ;;  %1058 = vmatprep.mubr.msk.bf16.mxu1 %vm128_vm1, %v501_v20 }
 0x119   :  { %1056 = vmatprep.subr.bf16.mxu1 %v1107_v9  ;;  %1067 = vmatpush3.bf16.msra.mxu0 %v1108_v27 }
 0x11a   :  { %1068 = vmatprep.subr.bf16.mxu0 %v1109_v28 }
 0x11c   :  { %1057 = vmatpush3.bf16.msra.mxu1 %v1107_v9 }
 0x11d   :  { %1069 = vmatpush3.bf16.msra.mxu0 %v1109_v28 }
 0x11f   :  { %1059 = vmatmul.mubr.msk.bf16.vlgmr.msra.gmra.mrb[8].mxu1 %vm128_vm1, %v502_v7 }
 0x120   :  { %1062 = vmatprep.mubr.msk.bf16.mxu1 %vm128_vm1, %v503_v15 }
 0x127   :  { %1063 = vmatmul.mubr.msk.bf16.gmra.mrb[12].mxu1 %vm128_vm1, %v504_v26 }
 0x1e2   :  { %v271_v30 = vpop.f32.mrb[0].mxu0  ;;  %v320_v11 = vpop.f32.mrb[0].mxu1 }
 0x1e3   :  { %v425_v32 = vadd.f32 %v271_v30, %v220_v29  ;;  %v427_v33 = vadd.f32 %v320_v11, %v222_v17  ;;  %v1034_v34 = vpop.f32.mrb[1].mxu0  ;;  %v1040_v35 = vpop.f32.mrb[1].mxu1 }
 0x1e4   :  { %v274_v36 = vpop.f32.mrb[2].mxu0  ;;  %v323_v37 = vpop.f32.mrb[2].mxu1 }
 0x1e5   :  { %434 = vst.msk [vmem:[#allocation2] sm:$0xff] %vm128_vm1, %v425_v32  ;;  %436 = vst.msk [vmem:[#allocation2 + $0x10] sm:$0xff] %vm128_vm1, %v427_v33  ;;  %v426_v38 = vadd.f32 %v274_v36, %v221_v19  ;;  %v428_v39 = vadd.f32 %v323_v37, %v223_v31  ;;  %v1035_v40 = vpop.f32.mrb[3].mxu0  ;;  %v1041_v41 = vpop.f32.mrb[3].mxu1 }
 0x1e7   :  { %435 = vst.msk [vmem:[#allocation2 + $0x8] sm:$0xff] %vm128_vm1, %v426_v38  ;;  %437 = vst.msk [vmem:[#allocation2 + $0x18] sm:$0xff] %vm128_vm1, %v428_v39 }
 0x1ea   :  { %v369_v44 = vpop.f32.mrb[4].mxu0  ;;  %v418_v45 = vpop.f32.mrb[4].mxu1 }
 0x1eb   :  { %v429_v48 = vadd.f32 %v369_v44, %v224_v42  ;;  %v431_v49 = vadd.f32 %v418_v45, %v226_v43  ;;  %v1046_v50 = vpop.f32.mrb[5].mxu0  ;;  %v1052_v51 = vpop.f32.mrb[5].mxu1 }
 0x1ec   :  { %v372_v52 = vpop.f32.mrb[6].mxu0  ;;  %v421_v53 = vpop.f32.mrb[6].mxu1  ;;  %v507_v54 = vld [vmem:[#allocation2 + $0x10] sm:$0xff]  ;;  %v505_v59 = vld [vmem:[#allocation2] sm:$0xff] }
 0x1ed   :  { %438 = vst.msk [vmem:[#allocation2 + $0x20] sm:$0xff] %vm128_vm1, %v429_v48  ;;  %440 = vst.msk [vmem:[#allocation2 + $0x30] sm:$0xff] %vm128_vm1, %v431_v49  ;;  %v430_v55 = vadd.f32 %v372_v52, %v225_v46  ;;  %v432_v56 = vadd.f32 %v421_v53, %v227_v47  ;;  %v1047_v57 = vpop.f32.mrb[7].mxu0  ;;  %v1053_v58 = vpop.f32.mrb[7].mxu1 }
 0x1ee   :  { %v506_v60 = vld [vmem:[#allocation2 + $0x8] sm:$0xff]  ;;  %v508_v61 = vld [vmem:[#allocation2 + $0x18] sm:$0xff] }
 0x1ef   :  { %439 = vst.msk [vmem:[#allocation2 + $0x28] sm:$0xff] %vm128_vm1, %v430_v55  ;;  %441 = vst.msk [vmem:[#allocation2 + $0x38] sm:$0xff] %vm128_vm1, %v432_v56  ;;  %v513_v62 = vpack.c.bf16 %v506_v60, %v505_v59  ;;  %v514_v63 = vpack.c.bf16 %v508_v61, %v507_v54 }
 0x1f1   :  { %1070 = vmatprep.mubr.msk.bf16.mxu0 %vm128_vm1, %v513_v62 }
 0x1f2   :  { %v1060_v0 = vpop.f32.mrb[8].mxu1  ;;  %1071 = vmatmul.mubr.msk.bf16.vlgmr.msra.gmra.mrb[8].mxu0 %vm128_vm1, %v514_v63 }
 0x1f3   :  { %v583_v1 = vpop.f32.mrb[9].mxu1 }
 0x1f4   :  { %v1061_v2 = vpop.f32.mrb[10].mxu1  ;;  %v509_v3 = vld [vmem:[#allocation2 + $0x20] sm:$0xff]  ;;  %v511_v4 = vld [vmem:[#allocation2 + $0x30] sm:$0xff] }
 0x1f5   :  { %v586_v6 = vpop.f32.mrb[11].mxu1 }
 0x1f6   :  { %v510_v8 = vld [vmem:[#allocation2 + $0x28] sm:$0xff]  ;;  %v512_v9 = vld [vmem:[#allocation2 + $0x38] sm:$0xff] }
 0x1f7   :  { %v515_v20 = vpack.c.bf16 %v510_v8, %v509_v3  ;;  %v516_v21 = vpack.c.bf16 %v512_v9, %v511_v4 }
 0x1f9   :  { %1074 = vmatprep.mubr.msk.bf16.mxu0 %vm128_vm1, %v515_v20 }
 0x1fa   :  { %v1064_v12 = vpop.f32.mrb[12].mxu1  ;;  %1075 = vmatmul.mubr.msk.bf16.gmra.mrb[12].mxu0 %vm128_vm1, %v516_v21 }
 0x1fb   :  { %v599_v5 = vpop.f32.mrb[13].mxu1 }
 0x1fc   :  { %v1065_v14 = vpop.f32.mrb[14].mxu1 }
 0x1fd   :  { %v602_v22 = vpop.f32.mrb[15].mxu1 }
 0x2c5   :  { %v1072_v23 = vpop.f32.mrb[8].mxu0 }
 0x2c6   :  { %v681_v24 = vadd.f32 %v1072_v23, %v1060_v0  ;;  %v672_v7 = vpop.f32.mrb[9].mxu0 }
 0x2c7   :  { %v673_v15 = vadd.f32 %v672_v7, %v583_v1  ;;  %v1073_v25 = vpop.f32.mrb[10].mxu0 }
 0x2c8   :  { %v1600_v16 = vadd.f32 %v955_v13, %v681_v24  ;;  %v684_v10 = vadd.f32 %v1073_v25, %v1061_v2  ;;  %v675_v18 = vpop.f32.mrb[11].mxu0 }
 0x2c9   :  { %v1602_v26 = vadd.f32 %v955_v13, %v673_v15  ;;  %v676_v27 = vadd.f32 %v675_v18, %v586_v6 }
 0x2ca   :  { %v720_v28 = vmul.f32 %v1600_v16, %v1600_v16  ;;  %v1608_v17 = vadd.f32 %v955_v13, %v684_v10 }
 0x2cb   :  { %v1606_v29 = vadd.f32 %v955_v13, %v676_v27  ;;  %v718_v11 = vmul.f32 %v1602_v26, %v1602_v26 }
 0x2cc   :  { %v732_v30 = vsel %vm128_vm1, %v720_v28, 0.0  ;;  %v721_v40 = vmul.f32 %v1608_v17, %v1608_v17 }
 0x2cd   :  { %733 = vadd.xlane.f32.xlu0 %v732_v30  ;;  %v1076_v19 = vpop.f32.mrb[12].mxu0  ;;  %v719_v31 = vmul.f32 %v1606_v29, %v1606_v29  ;;  %v726_v39 = vsel %vm128_vm1, %v718_v11, 0.0 }
 0x2ce   :  { %v697_v32 = vadd.f32 %v1076_v19, %v1064_v12  ;;  %v688_v33 = vpop.f32.mrb[13].mxu0  ;;  %v735_v47 = vsel %vm128_vm1, %v721_v40, 0.0 }
 0x2cf   :  { %v689_v34 = vadd.f32 %v688_v33, %v599_v5  ;;  %v1077_v35 = vpop.f32.mrb[14].mxu0  ;;  %v729_v36 = vsel %vm128_vm1, %v719_v31, 0.0 }
 0x2d0   :  { %v700_v37 = vadd.f32 %v1077_v35, %v1065_v14  ;;  %v691_v38 = vpop.f32.mrb[15].mxu0  ;;  %730 = vadd.xlane.f32.xlu1 %v729_v36  ;;  %v1619_v41 = vadd.f32 %v955_v13, %v697_v32 }
 0x2d1   :  { %v714_v42 = vadd.f32 %v955_v13, %v689_v34  ;;  %v692_v43 = vadd.f32 %v691_v38, %v602_v22  ;;  %727 = vadd.xlane.f32.xlu0 %v726_v39 }
 0x2d2   :  { %v1623_v46 = vadd.f32 %v955_v13, %v700_v37  ;;  %v724_v50 = vmul.f32 %v1619_v41, %v1619_v41 }
 0x2d3   :  { %v1621_v44 = vadd.f32 %v955_v13, %v692_v43  ;;  %v722_v45 = vmul.f32 %v714_v42, %v714_v42 }
 0x2d4   :  { %v725_v52 = vmul.f32 %v1623_v46, %v1623_v46  ;;  %v744_v53 = vsel %vm128_vm1, %v724_v50, 0.0 }
 0x2d5   :  { %736 = vadd.xlane.f32.xlu0 %v735_v47  ;;  %v738_v48 = vsel %vm128_vm1, %v722_v45, 0.0  ;;  %v723_v49 = vmul.f32 %v1621_v44, %v1621_v44 }
 0x2d6   :  { %739 = vadd.xlane.f32.xlu1 %v738_v48  ;;  %v747_v54 = vsel %vm128_vm1, %v725_v52, 0.0 }
 0x2d7   :  { %v741_v51 = vsel %vm128_vm1, %v723_v49, 0.0 }
 0x2d9   :  { %742 = vadd.xlane.f32.xlu0 %v741_v51 }
 0x2da   :  { %745 = vadd.xlane.f32.xlu1 %v744_v53 }
 0x2dd   :  { %748 = vadd.xlane.f32.xlu0 %v747_v54 }
 0x35a   :  { %v734_v55 = vpop.xlane.xlu0 %733 }
 0x35b   :  { %v752_v56 = vmax.f32 %v734_v55, 1e-24 }
 0x35d   :  { %1110 = vrsqrt.f32 %v752_v56  ;;  %v731_v57 = vpop.xlane.xlu1 %730 }
 0x35e   :  { %v751_v58 = vmax.f32 %v731_v57, 1e-24  ;;  %v728_v59 = vpop.xlane.xlu0 %727 }
 0x35f   :  { %v750_v60 = vmax.f32 %v728_v59, 1e-24 }
 0x360   :  { %1112 = vrsqrt.f32 %v751_v58 }
 0x361   :  { %1114 = vrsqrt.f32 %v750_v60 }
 0x362   :  { %v737_v61 = vpop.xlane.xlu0 %736 }
 0x363   :  { %v753_v62 = vmax.f32 %v737_v61, 1e-24  ;;  %v740_v63 = vpop.xlane.xlu1 %739 }
 0x364   :  { %v754_v0 = vmax.f32 %v740_v63, 1e-24 }
 0x365   :  { %1116 = vrsqrt.f32 %v753_v62 }
 0x366   :  { %1118 = vrsqrt.f32 %v754_v0  ;;  %v743_v1 = vpop.xlane.xlu0 %742 }
 0x367   :  { %v1111_v2 = vpop.eup %1110  ;;  %v755_v3 = vmax.f32 %v743_v1, 1e-24  ;;  %v746_v4 = vpop.xlane.xlu1 %745 }
 0x368   :  { %v756_v6 = vmax.f32 %v746_v4, 1e-24  ;;  %v768_v8 = vmul.f32 %v1111_v2, %v1600_v16 }
 0x369   :  { %1120 = vrsqrt.f32 %v755_v3 }
 0x36a   :  { %v1113_v9 = vpop.eup %1112  ;;  %1122 = vrsqrt.f32 %v756_v6  ;;  %v749_v20 = vpop.xlane.xlu0 %748  ;;  %v776_v21 = vmax.f32 %v768_v8, 0.0 }
 0x36b   :  { %v1115_v12 = vpop.eup %1114  ;;  %v757_v5 = vmax.f32 %v749_v20, 1e-24  ;;  %v767_v14 = vmul.f32 %v1113_v9, %v1606_v29 }
 0x36c   :  { %v766_v22 = vmul.f32 %v1115_v12, %v1602_v26  ;;  %v966_v23 = vpack.c.bf16 %v776_v21, %v776_v21  ;;  %v843_v25 = vmul.f32 %v776_v21, %v776_v21  ;;  %v824_v19 = vsel %vm128_vm1, %v776_v21, 0.0 }
 0x36d   :  { %1124 = vrsqrt.f32 %v757_v5  ;;  %v775_v13 = vmax.f32 %v767_v14, 0.0 }
 0x36e   :  { %v774_v24 = vmax.f32 %v766_v22, 0.0  ;;  %817 = vst.msk [vmem:[#allocation15 + $0x8] sm:$0xf] %vm814_vm3, %v966_v23  ;;  %v850_v31 = vsel %vm128_vm1, %v843_v25, 0.0 }
 0x36f   :  { %v1117_v7 = vpop.eup %1116  ;;  %v965_v15 = vpack.c.bf16 %v775_v13, %v775_v13  ;;  %v832_v39 = vsel %vm128_vm1, %v775_v13, 0.0  ;;  %v842_v50 = vmul.f32 %v775_v13, %v775_v13 }
 0x370   :  { %v1119_v16 = vpop.eup %1118  ;;  %v964_v10 = vpack.c.bf16 %v774_v24, %v774_v24  ;;  %v769_v18 = vmul.f32 %v1117_v7, %v1608_v17  ;;  %v841_v27 = vmul.f32 %v774_v24, %v774_v24  ;;  %v823_v11 = vsel %vm128_vm1, %v774_v24, 0.0 }
 0x371   :  { %v770_v28 = vmul.f32 %v1119_v16, %v714_v42  ;;  %816 = vst.msk [vmem:[#allocation15 + $0x4] sm:$0xf] %vm814_vm3, %v965_v15  ;;  %v825_v40 = vadd.f32 %v824_v19, %v823_v11  ;;  %v858_v63 = vsel %vm128_vm1, %v842_v50, 0.0 }
 0x372   :  { %815 = vst.msk [vmem:[#allocation15] sm:$0xf] %vm814_vm3, %v964_v10  ;;  %v777_v26 = vmax.f32 %v769_v18, 0.0  ;;  %v849_v35 = vsel %vm128_vm1, %v841_v27, 0.0 }
 0x373   :  { %v1121_v29 = vpop.eup %1120  ;;  %v778_v30 = vmax.f32 %v770_v28, 0.0  ;;  %v851_v49 = vadd.f32 %v850_v31, %v849_v35 }
 0x374   :  { %v1123_v32 = vpop.eup %1122  ;;  %v771_v33 = vmul.f32 %v1121_v29, %v1621_v44  ;;  %v967_v34 = vpack.c.bf16 %v777_v26, %v777_v26  ;;  %v833_v17 = vsel %vm128_vm1, %v777_v26, 0.0  ;;  %v844_v45 = vmul.f32 %v777_v26, %v777_v26 }
 0x375   :  { %v772_v36 = vmul.f32 %v1123_v32, %v1619_v41  ;;  %v968_v37 = vpack.c.bf16 %v778_v30, %v778_v30  ;;  %v826_v38 = vsel %vm128_vm1, %v778_v30, 0.0  ;;  %v845_v43 = vmul.f32 %v778_v30, %v778_v30 }
 0x376   :  { %v779_v42 = vmax.f32 %v771_v33, 0.0  ;;  %818 = vst.msk [vmem:[#allocation15 + $0xc] sm:$0xf] %vm814_vm3, %v967_v34  ;;  %v834_v48 = vadd.f32 %v833_v17, %v832_v39  ;;  %v827_v51 = vadd.f32 %v826_v38, %v825_v40  ;;  %v859_v61 = vsel %vm128_vm1, %v844_v45, 0.0 }
 0x377   :  { %v1125_v47 = vpop.eup %1124  ;;  %v780_v44 = vmax.f32 %v772_v36, 0.0  ;;  %819 = vst.msk [vmem:[#allocation15 + $0x10] sm:$0xf] %vm814_vm3, %v968_v37  ;;  %v852_v57 = vsel %vm128_vm1, %v845_v43, 0.0  ;;  %v860_v6 = vadd.f32 %v859_v61, %v858_v63 }
 0x378   :  { %v773_v41 = vmul.f32 %v1125_v47, %v1623_v46  ;;  %v969_v52 = vpack.c.bf16 %v779_v42, %v779_v42  ;;  %v835_v53 = vsel %vm128_vm1, %v779_v42, 0.0  ;;  %v846_v60 = vmul.f32 %v779_v42, %v779_v42 }
 0x379   :  { %v970_v54 = vpack.c.bf16 %v780_v44, %v780_v44  ;;  %v828_v55 = vsel %vm128_vm1, %v780_v44, 0.0  ;;  %v847_v56 = vmul.f32 %v780_v44, %v780_v44  ;;  %v836_v62 = vadd.f32 %v835_v53, %v834_v48 }
 0x37a   :  { %v829_v58 = vadd.f32 %v828_v55, %v827_v51  ;;  %v781_v59 = vmax.f32 %v773_v41, 0.0  ;;  %820 = vst.msk [vmem:[#allocation15 + $0x14] sm:$0xf] %vm814_vm3, %v969_v52  ;;  %v853_v2 = vadd.f32 %v852_v57, %v851_v49  ;;  %v861_v8 = vsel %vm128_vm1, %v846_v60, 0.0 }
 0x37b   :  { %821 = vst.msk [vmem:[#allocation15 + $0x18] sm:$0xf] %vm814_vm3, %v970_v54  ;;  %v854_v46 = vsel %vm128_vm1, %v847_v56, 0.0  ;;  %v862_v21 = vadd.f32 %v861_v8, %v860_v6 }
 0x37c   :  { %830 = vadd.xlane.f32.xlu1 %v829_v58  ;;  %v837_v0 = vsel %vm128_vm1, %v781_v59, 0.0  ;;  %v971_v1 = vpack.c.bf16 %v781_v59, %v781_v59  ;;  %v848_v3 = vmul.f32 %v781_v59, %v781_v59  ;;  %v855_v9 = vadd.f32 %v854_v46, %v853_v2 }
 0x37d   :  { %v838_v4 = vadd.f32 %v837_v0, %v836_v62 }
 0x37e   :  { %822 = vst.msk [vmem:[#allocation15 + $0x1c] sm:$0xf] %vm814_vm3, %v971_v1  ;;  %v863_v20 = vsel %vm128_vm1, %v848_v3, 0.0 }
 0x37f   :  { %839 = vadd.xlane.f32.xlu0 %v838_v4  ;;  %v864_v12 = vadd.f32 %v863_v20, %v862_v21 }
 0x380   :  { %856 = vadd.xlane.f32.xlu1 %v855_v9 }
 0x383   :  { %865 = vadd.xlane.f32.xlu0 %v864_v12 }
 0x384   :  { %1291 = shalt.err (!%p1288_p4)
}
 0x385   :  { %s1292_s28 = scalar_lea.hbm %s1701_s7, 512 }
 0x386   :  { %p1293_p5 = scmp.ne.s32.totalorder %s1701_s7, %s1292_s28  ;;  %p1296_p6 = scmp.lt.u32.totalorder %s1292_s28, %s1701_s7 }
 0x388   :  { %p1298_p7 = pnand %p1296_p6, %p1293_p5 }
 0x38a   :  { %1301 = shalt.err (!%p1298_p7)
}
 0x38b   :  { %910 = dma.vmem_to_hbm [thread:$0]  %s905_s0, 512, %s1701_s7, [#allocation5], %s1344_s20, %s1344_s20, %s1345_s24   ;;  %v869_v5 = vlaneseq  ;;  %vm880_vm4 = vcmask 130112   ;;  %vm895_vm5 = vcmask 1040384   ;;  %vm897_vm6 = vcmask 123904  }
 0x38c   :  { %s1353_s2 = smov [#allocation16]  }
 0x38d   :  { %v870_v14 = vand.u32 127, %v869_v5  ;;  %v872_v23 = vshrl.u32 %v869_v5, 7  ;;  %s917_s15 = sshll.u32 %s1353_s2, 4  ;;  %s918_s15 = int_to_ptr.vmem [resolvable:$true] %s917_s15 }
 0x38e   :  { %s1302_s7 = scalar_lea.vmem %s918_s15, 32  ;;  %p1307_p9 = scmp.lt.s32.totalorder %s918_s15, %s918_s15 }
 0x38f   :  { %v875_v22 = vadd.s32 4294967288, %v870_v14  ;;  %v873_v15 = vsub.s32 %v870_v14, %v872_v23  ;;  %p1303_p8 = scmp.ne.s32.totalorder %s918_s15, %s1302_s7  ;;  %p1308_p10 = scmp.lt.s32.totalorder %s1302_s7, %s1302_s7 }
 0x391   :  { %v878_v24 = vsub.s32 %v875_v22, %v872_v23  ;;  %p1309_p11 = por %p1308_p10, %p1307_p9 }
 0x393   :  { %p1310_p12 = pnand %p1309_p11, %p1303_p8 }
 0x409   :  { %v831_v13 = vpop.xlane.xlu1 %830 }
 0x40a   :  { %v874_v18 = vrot.slane %v831_v13, %v873_v15 }
 0x40c   :  { %v840_v7 = vpop.xlane.xlu0 %839 }
 0x40d   :  { %v857_v25 = vpop.xlane.xlu1 %856  ;;  %v879_v16 = vrot.slane %v840_v7, %v878_v24 }
 0x40e   :  { %v888_v27 = vrot.slane %v857_v25, %v873_v15 }
 0x40f   :  { %v881_v26 = vsel %vm880_vm4, %v879_v16, %v874_v18 }
 0x410   :  { %v866_v10 = vpop.xlane.xlu0 %865 }
 0x411   :  { %v892_v28 = vrot.slane %v866_v10, %v878_v24 }
 0x413   :  { %v893_v29 = vsel %vm880_vm4, %v892_v28, %v888_v27 }
 0x414   :  { %v896_v30 = vsel %vm895_vm5, %v881_v26, %v893_v29 }
 0x415   :  { %898 = vst.msk [vmem:[#allocation16] sm:$0x3] %vm897_vm6, %v896_v30 }
 0x416   :  { %1313 = shalt.err (!%p1310_p12)
}
 0x417   :  { %s1314_s16 = scalar_lea.hbm %s1702_s8, 32 }
 0x418   :  { %p1315_p13 = scmp.ne.s32.totalorder %s1702_s8, %s1314_s16  ;;  %p1318_p0 = scmp.lt.u32.totalorder %s1314_s16, %s1702_s8 }
 0x41a   :  { %p1320_p1 = pnand %p1318_p0, %p1315_p13 }
 0x41c   :  { %1323 = shalt.err (!%p1320_p1)
}
 0x41d   :  { %920 = dma.vmem_to_hbm [thread:$0]  %s918_s15, 32, %s1702_s8, [#allocation17]  }
 0x41e   :  { %1332 = dma.done.wait [#allocation5], 512  }
 0x41f   :  { %1333 = vsyncadd [#allocation5], 4294966784 }
 0x420   :  { %1334 = dma.done.wait [#allocation17], 32  }
 0x421   :  { %1335 = vsyncadd [#allocation17], 4294967264 }
 0x422   :  { %927 = vsyncpa [#allocation4], 1 }
 0x423   :  { %928 = vsyncpa [#allocation7], 1 }
 0x424   :  { %929 = vsyncpa [#allocation10], 1 }
 0x425   :  { %930 = vsyncpa [#allocation13], 1 }
 0x426   :  { %931 = vsyncpa [#allocation5], 1 }
 0x427   :  { %932 = vsyncpa [#allocation17], 1 }

// kernel: gcn_encoder_forward.5
= control target key start
LH: loop header
LB: loop body
LE: loop exit
PB: predicated region body
PF: predicated region fallthrough
CT: control target
= control target key end

     0   :  { %15 = vsyncpa [#allocation4], 0  ;;  %s1859_s0 = inlined_call_operand.hbm [shape: bf16[4,16,32], index: 0, kind: input, shape index: {}]   ;;  %s1860_s1 = inlined_call_operand.hbm [shape: f32[16,1], index: 1, kind: input, shape index: {}]   ;;  %s1861_s2 = inlined_call_operand.hbm [shape: f32[16,1], index: 2, kind: input, shape index: {}]   ;;  %s1862_s3 = inlined_call_operand.hbm [shape: s8[4,16,16], index: 3, kind: input, shape index: {}]   ;;  %s1863_s4 = inlined_call_operand.hbm [shape: bf16[32,32], index: 4, kind: input, shape index: {}]   ;;  %s1864_s5 = inlined_call_operand.hbm [shape: bf16[32,32], index: 5, kind: input, shape index: {}]   ;;  %s1865_s6 = inlined_call_operand.hbm [shape: f32[1,32], index: 6, kind: input, shape index: {}]   ;;  %s1866_s7 = inlined_call_operand.hbm [shape: f32[4,16,1], index: 7, kind: input, shape index: {}]   ;;  %s1867_s8 = inlined_call_operand.hbm [shape: bf16[32,4], index: 8, kind: input, shape index: {}]   ;;  %s1868_s9 = inlined_call_operand.hbm [shape: f32[1,4], index: 9, kind: input, shape index: {}]   ;;  %s1869_s10 = inlined_call_operand.hbm [shape: f32[4,16,4], index: 10, kind: output, shape index: {}]  }
   0x1   :  { %16 = vsyncpa [#allocation7], 0 }
   0x2   :  { %17 = vsyncpa [#allocation10], 0 }
   0x3   :  { %18 = vsyncpa [#allocation13], 0 }
   0x4   :  { %19 = vsyncpa [#allocation16], 0 }
   0x5   :  { %20 = vsyncpa [#allocation19], 0 }
   0x6   :  { %21 = vsyncpa [#allocation5], 0  ;;  %s1472_s13 = smov [#allocation6]   ;;  %s1216_s17 = scalar_lea.hbm %s1860_s1, 256 }
   0x7   :  { %s39_s14 = sshll.u32 %s1472_s13, 4  ;;  %p1217_p0 = scmp.ne.s32.totalorder %s1860_s1, %s1216_s17  ;;  %s40_s14 = int_to_ptr.vmem [resolvable:$true] %s39_s14 }
   0x8   :  { %p1220_p1 = scmp.lt.u32.totalorder %s1216_s17, %s1860_s1 }
   0xa   :  { %p1222_p2 = pnand %p1220_p1, %p1217_p0 }
   0xc   :  { %1225 = shalt.err (!%p1222_p2)
}
   0xd   :  { %s1226_s22 = scalar_lea.vmem %s40_s14, 256  ;;  %p1231_p4 = scmp.lt.s32.totalorder %s40_s14, %s40_s14 }
   0xe   :  { %p1227_p3 = scmp.ne.s32.totalorder %s40_s14, %s1226_s22  ;;  %p1232_p5 = scmp.lt.s32.totalorder %s1226_s22, %s1226_s22 }
  0x10   :  { %p1233_p6 = por %p1232_p5, %p1231_p4 }
  0x12   :  { %p1234_p7 = pnand %p1233_p6, %p1227_p3 }
  0x14   :  { %1237 = shalt.err (!%p1234_p7)
}
  0x15   :  { %s1473_s23 = smov 128   ;;  %s1474_s24 = smov 8  }
  0x16   :  { %45 = dma.hbm_to_vmem [thread:$0]  %s1860_s1, 256, %s40_s14, [#allocation7], %s1473_s23, %s1473_s23, %s1474_s24  }
  0x17   :  { %s1475_s27 = smov [#allocation9]   ;;  %s1238_s11 = scalar_lea.hbm %s1862_s3, 256 }
  0x18   :  { %s63_s28 = sshll.u32 %s1475_s27, 4  ;;  %p1239_p8 = scmp.ne.s32.totalorder %s1862_s3, %s1238_s11  ;;  %s64_s28 = int_to_ptr.vmem [resolvable:$true] %s63_s28 }
  0x19   :  { %p1242_p9 = scmp.lt.u32.totalorder %s1238_s11, %s1862_s3 }
  0x1b   :  { %p1244_p10 = pnand %p1242_p9, %p1239_p8 }
  0x1d   :  { %1247 = shalt.err (!%p1244_p10)
}
  0x1e   :  { %s1248_s17 = scalar_lea.vmem %s64_s28, 256  ;;  %p1253_p12 = scmp.lt.s32.totalorder %s64_s28, %s64_s28 }
  0x1f   :  { %p1249_p11 = scmp.ne.s32.totalorder %s64_s28, %s1248_s17  ;;  %p1254_p13 = scmp.lt.s32.totalorder %s1248_s17, %s1248_s17 }
  0x21   :  { %p1255_p0 = por %p1254_p13, %p1253_p12 }
  0x23   :  { %p1256_p1 = pnand %p1255_p0, %p1249_p11 }
  0x25   :  { %1259 = shalt.err (!%p1256_p1)
}
  0x26   :  { %s1476_s1 = smov 32   ;;  %s1477_s14 = smov 2  }
  0x27   :  { %69 = dma.hbm_to_vmem [thread:$0]  %s1862_s3, 256, %s64_s28, [#allocation10], %s1476_s1, %s1476_s1, %s1477_s14  }
  0x28   :  { %s1478_s20 = smov [#allocation12]   ;;  %s1479_s22 = smov [#allocation15]  }
  0x29   :  { %s87_s21 = sshll.u32 %s1478_s20, 4  ;;  %s109_s25 = sshll.u32 %s1479_s22, 4  ;;  %s88_s21 = int_to_ptr.vmem [resolvable:$true] %s87_s21  ;;  %s1574_s25 = int_to_ptr.vmem [resolvable:$true] %s109_s25 }
  0x2a   :  { %s1260_s29 = scalar_lea.hbm %s1864_s5, 256 }
  0x2b   :  { %p1261_p2 = scmp.ne.s32.totalorder %s1864_s5, %s1260_s29  ;;  %p1264_p3 = scmp.lt.u32.totalorder %s1260_s29, %s1864_s5 }
  0x2d   :  { %p1266_p4 = pnand %p1264_p3, %p1261_p2 }
  0x2f   :  { %1269 = shalt.err (!%p1266_p4)
}
  0x30   :  { %s1270_s3 = scalar_lea.vmem %s88_s21, 256  ;;  %p1275_p6 = scmp.lt.s32.totalorder %s88_s21, %s88_s21 }
  0x31   :  { %p1271_p5 = scmp.ne.s32.totalorder %s88_s21, %s1270_s3  ;;  %p1276_p7 = scmp.lt.s32.totalorder %s1270_s3, %s1270_s3 }
  0x33   :  { %p1277_p8 = por %p1276_p7, %p1275_p6 }
  0x35   :  { %p1278_p9 = pnand %p1277_p8, %p1271_p5 }
  0x37   :  { %1281 = shalt.err (!%p1278_p9)
}
  0x38   :  { %s1480_s28 = smov 64   ;;  %s1481_s15 = smov 4  }
  0x39   :  { %93 = dma.hbm_to_vmem [thread:$0]  %s1864_s5, 256, %s88_s21, [#allocation13], %s1480_s28, %s1480_s28, %s1481_s15  }
  0x3a   :  { %s1282_s18 = scalar_lea.hbm %s1866_s7, 1024 }
  0x3b   :  { %p1283_p10 = scmp.ne.s32.totalorder %s1866_s7, %s1282_s18  ;;  %p1286_p11 = scmp.lt.u32.totalorder %s1282_s18, %s1866_s7 }
  0x3d   :  { %p1288_p12 = pnand %p1286_p11, %p1283_p10 }
  0x3f   :  { %1291 = shalt.err (!%p1288_p12)
}
  0x40   :  { %s1292_s27 = scalar_lea.vmem %s1574_s25, 1024  ;;  %p1297_p0 = scmp.lt.s32.totalorder %s1574_s25, %s1574_s25 }
  0x41   :  { %p1293_p13 = scmp.ne.s32.totalorder %s1574_s25, %s1292_s27  ;;  %p1298_p1 = scmp.lt.s32.totalorder %s1292_s27, %s1292_s27 }
  0x43   :  { %p1299_p2 = por %p1298_p1, %p1297_p0 }
  0x45   :  { %p1300_p3 = pnand %p1299_p2, %p1293_p13 }
  0x47   :  { %1303 = shalt.err (!%p1300_p3)
}
  0x48   :  { %115 = dma.hbm_to_vmem [thread:$0]  %s1866_s7, 1024, %s1574_s25, [#allocation16], %s1473_s23, %s1473_s23, %s1474_s24  }
  0x49   :  { %s1482_s29 = smov [#allocation3]   ;;  %s1483_s11 = smov [#allocation8]  }
  0x4a   :  { %s27_s30 = sshll.u32 %s1482_s29, 4  ;;  %s51_s12 = sshll.u32 %s1483_s11, 4  ;;  %s28_s30 = int_to_ptr.vmem [resolvable:$true] %s27_s30  ;;  %s1611_s12 = int_to_ptr.vmem [resolvable:$true] %s51_s12 }
  0x4b   :  { %s1304_s16 = scalar_lea.hbm %s1859_s0, 512 }
  0x4c   :  { %p1305_p4 = scmp.ne.s32.totalorder %s1859_s0, %s1304_s16  ;;  %p1308_p5 = scmp.lt.u32.totalorder %s1304_s16, %s1859_s0 }
  0x4e   :  { %p1310_p6 = pnand %p1308_p5, %p1305_p4 }
  0x50   :  { %1313 = shalt.err (!%p1310_p6)
}
  0x51   :  { %s1314_s7 = scalar_lea.vmem %s28_s30, 512  ;;  %p1319_p8 = scmp.lt.s32.totalorder %s28_s30, %s28_s30 }
  0x52   :  { %p1315_p7 = scmp.ne.s32.totalorder %s28_s30, %s1314_s7  ;;  %p1320_p9 = scmp.lt.s32.totalorder %s1314_s7, %s1314_s7 }
  0x54   :  { %p1321_p10 = por %p1320_p9, %p1319_p8 }
  0x56   :  { %p1322_p11 = pnand %p1321_p10, %p1315_p7 }
  0x58   :  { %1325 = shalt.err (!%p1322_p11)
}
  0x59   :  { %33 = dma.hbm_to_vmem [thread:$0]  %s1859_s0, 512, %s28_s30, [#allocation4], %s1480_s28, %s1480_s28, %s1481_s15  }
  0x5a   :  { %s1326_s26 = scalar_lea.hbm %s1861_s2, 256 }
  0x5b   :  { %p1327_p12 = scmp.ne.s32.totalorder %s1861_s2, %s1326_s26  ;;  %p1330_p13 = scmp.lt.u32.totalorder %s1326_s26, %s1861_s2 }
  0x5d   :  { %p1332_p0 = pnand %p1330_p13, %p1327_p12 }
  0x5f   :  { %1335 = shalt.err (!%p1332_p0)
}
  0x60   :  { %s1336_s11 = scalar_lea.vmem %s1611_s12, 256  ;;  %p1341_p2 = scmp.lt.s32.totalorder %s1611_s12, %s1611_s12 }
  0x61   :  { %p1337_p1 = scmp.ne.s32.totalorder %s1611_s12, %s1336_s11  ;;  %p1342_p3 = scmp.lt.s32.totalorder %s1336_s11, %s1336_s11 }
  0x63   :  { %p1343_p4 = por %p1342_p3, %p1341_p2 }
  0x65   :  { %p1344_p5 = pnand %p1343_p4, %p1337_p1 }
  0x67   :  { %1347 = shalt.err (!%p1344_p5)
}
  0x68   :  { %57 = dma.hbm_to_vmem [thread:$0]  %s1861_s2, 256, %s1611_s12, [#allocation7], %s1473_s23, %s1473_s23, %s1474_s24  }
  0x69   :  { %s1484_s13 = smov [#allocation11]   ;;  %s1485_s16 = smov [#allocation14]  }
  0x6a   :  { %s75_s3 = sshll.u32 %s1484_s13, 4  ;;  %s100_s17 = sshll.u32 %s1485_s16, 4  ;;  %s76_s3 = int_to_ptr.vmem [resolvable:$true] %s75_s3  ;;  %s101_s17 = int_to_ptr.vmem [resolvable:$true] %s100_s17 }
  0x6b   :  { %s1348_s18 = scalar_lea.hbm %s1863_s4, 256 }
  0x6c   :  { %p1349_p6 = scmp.ne.s32.totalorder %s1863_s4, %s1348_s18  ;;  %p1352_p7 = scmp.lt.u32.totalorder %s1348_s18, %s1863_s4 }
  0x6e   :  { %p1354_p8 = pnand %p1352_p7, %p1349_p6 }
  0x70   :  { %1357 = shalt.err (!%p1354_p8)
}
  0x71   :  { %s1358_s2 = scalar_lea.vmem %s76_s3, 256  ;;  %p1363_p10 = scmp.lt.s32.totalorder %s76_s3, %s76_s3 }
  0x72   :  { %p1359_p9 = scmp.ne.s32.totalorder %s76_s3, %s1358_s2  ;;  %p1364_p11 = scmp.lt.s32.totalorder %s1358_s2, %s1358_s2 }
  0x74   :  { %p1365_p12 = por %p1364_p11, %p1363_p10 }
  0x76   :  { %p1366_p13 = pnand %p1365_p12, %p1359_p9 }
  0x78   :  { %1369 = shalt.err (!%p1366_p13)
}
  0x79   :  { %81 = dma.hbm_to_vmem [thread:$0]  %s1863_s4, 256, %s76_s3, [#allocation10], %s1480_s28, %s1480_s28, %s1481_s15  }
  0x7a   :  { %s1370_s5 = scalar_lea.hbm %s1865_s6, 16 }
  0x7b   :  { %p1371_p0 = scmp.ne.s32.totalorder %s1865_s6, %s1370_s5  ;;  %p1374_p1 = scmp.lt.u32.totalorder %s1370_s5, %s1865_s6 }
  0x7d   :  { %p1376_p2 = pnand %p1374_p1, %p1371_p0 }
  0x7f   :  { %1379 = shalt.err (!%p1376_p2)
}
  0x80   :  { %s1380_s30 = scalar_lea.vmem %s101_s17, 16  ;;  %s1384_s13 = scalar_lea.vmem %s101_s17, 32 }
  0x81   :  { %p1381_p3 = scmp.ne.s32.totalorder %s101_s17, %s1380_s30  ;;  %p1385_p4 = scmp.lt.s32.totalorder %s101_s17, %s101_s17 }
  0x82   :  { %p1386_p5 = scmp.lt.s32.totalorder %s1384_s13, %s1380_s30 }
  0x84   :  { %p1387_p6 = por %p1386_p5, %p1385_p4 }
  0x86   :  { %p1388_p7 = pnand %p1387_p6, %p1381_p3 }
  0x88   :  { %1391 = shalt.err (!%p1388_p7)
}
  0x89   :  { %103 = dma.hbm_to_vmem [thread:$0]  %s1865_s6, 16, %s101_s17, [#allocation13]  }
  0x8a   :  { %s1486_s16 = smov [#allocation17]   ;;  %s1487_s14 = smov [#allocation18]  }
  0x8b   :  { %s121_s1 = sshll.u32 %s1486_s16, 4  ;;  %s134_s18 = sshll.u32 %s1487_s14, 4  ;;  %s122_s1 = int_to_ptr.vmem [resolvable:$true] %s121_s1  ;;  %s135_s18 = int_to_ptr.vmem [resolvable:$true] %s134_s18 }
  0x8c   :  { %s1392_s19 = scalar_lea.hbm %s1867_s8, 256 }
  0x8d   :  { %p1393_p8 = scmp.ne.s32.totalorder %s1867_s8, %s1392_s19  ;;  %p1396_p9 = scmp.lt.u32.totalorder %s1392_s19, %s1867_s8 }
  0x8f   :  { %p1398_p10 = pnand %p1396_p9, %p1393_p8 }
  0x91   :  { %1401 = shalt.err (!%p1398_p10)
}
  0x92   :  { %s1402_s6 = scalar_lea.vmem %s122_s1, 256  ;;  %p1407_p12 = scmp.lt.s32.totalorder %s122_s1, %s122_s1 }
  0x93   :  { %p1403_p11 = scmp.ne.s32.totalorder %s122_s1, %s1402_s6  ;;  %p1408_p13 = scmp.lt.s32.totalorder %s1402_s6, %s1402_s6 }
  0x95   :  { %p1409_p0 = por %p1408_p13, %p1407_p12 }
  0x97   :  { %p1410_p1 = pnand %p1409_p0, %p1403_p11 }
  0x99   :  { %1413 = shalt.err (!%p1410_p1)
}
  0x9a   :  { %127 = dma.hbm_to_vmem [thread:$0]  %s1867_s8, 256, %s122_s1, [#allocation16], %s1480_s28, %s1480_s28, %s1481_s15  }
  0x9b   :  { %s1414_s21 = scalar_lea.hbm %s1868_s9, 16 }
  0x9c   :  { %p1415_p2 = scmp.ne.s32.totalorder %s1868_s9, %s1414_s21  ;;  %p1418_p3 = scmp.lt.u32.totalorder %s1414_s21, %s1868_s9 }
  0x9e   :  { %p1420_p4 = pnand %p1418_p3, %p1415_p2 }
  0xa0   :  { %1423 = shalt.err (!%p1420_p4)
}
  0xa1   :  { %s1424_s13 = scalar_lea.vmem %s135_s18, 16  ;;  %s1428_s4 = scalar_lea.vmem %s135_s18, 32 }
  0xa2   :  { %p1425_p5 = scmp.ne.s32.totalorder %s135_s18, %s1424_s13  ;;  %p1429_p6 = scmp.lt.s32.totalorder %s135_s18, %s135_s18 }
  0xa3   :  { %p1430_p7 = scmp.lt.s32.totalorder %s1428_s4, %s1424_s13 }
  0xa5   :  { %p1431_p8 = por %p1430_p7, %p1429_p6 }
  0xa7   :  { %p1432_p9 = pnand %p1431_p8, %p1425_p5 }
  0xa9   :  { %1435 = shalt.err (!%p1432_p9)
}
  0xaa   :  { %137 = dma.hbm_to_vmem [thread:$0]  %s1868_s9, 16, %s135_s18, [#allocation19]  }
  0xab   :  { %1458 = dma.done.wait [#allocation4], 512  }
  0xac   :  { %1459 = vsyncadd [#allocation4], 4294966784 }
  0xad   :  { %1460 = dma.done.wait [#allocation7], 512  }
  0xae   :  { %1461 = vsyncadd [#allocation7], 4294966784 }
  0xaf   :  { %1462 = dma.done.wait [#allocation10], 512  }
  0xb0   :  { %1463 = vsyncadd [#allocation10], 4294966784 }
  0xb1   :  { %1464 = dma.done.wait [#allocation13], 272  }
  0xb2   :  { %1465 = vsyncadd [#allocation13], 4294967024 }
  0xb3   :  { %1466 = dma.done.wait [#allocation16], 1280  }
  0xb4   :  { %1467 = vsyncadd [#allocation16], 4294966016 }
  0xb5   :  { %1468 = dma.done.wait [#allocation19], 16  }
  0xb6   :  { %1469 = vsyncadd [#allocation19], 4294967280  ;;  %v1488_v0 = vmov 0   ;;  %v225_v1 = vld [vmem:[#allocation8] sm:$0xff]  ;;  %v204_v2 = vld [vmem:[#allocation6] sm:$0xff]  ;;  %v1489_v5 = vmov 0.0  }
  0xb7   :  { %1193 = vset.pattern.permute.xlu1 %v1488_v0  ;;  %1192 = vset.pattern.permute.xlu0 %v1488_v0  ;;  %v226_v3 = vld [vmem:[#allocation8 + $0x8] sm:$0xff]  ;;  %v205_v4 = vld [vmem:[#allocation6 + $0x8] sm:$0xff]  ;;  %vm1490_vm0 = vmmov 0   ;;  %vm173_vm1 = vcmask 261120   ;;  %v1057_v12 = vld [vmem:[#allocation3] sm:$0xff]   ;;  %vm278_vm2 = vcmask 130048  }
  0xb8   :  { %229 = vperm.xlu1 %1193, %v225_v1   ;;  %208 = vperm.xlu0 %1192, %v204_v2   ;;  %v819_v6 = vld [vmem:[#allocation15] sm:$0xff]  ;;  %v820_v7 = vld [vmem:[#allocation15 + $0x8] sm:$0xff]  ;;  %v821_v8 = vld [vmem:[#allocation15 + $0x10] sm:$0xff]  ;;  %174 = vst.msk [vmem:[#allocation2] sm:$0xff] %vm173_vm1, %v1489_v5  ;;  %v1059_v17 = vunpack.c.h.bf16 %v1057_v12  ;;  %v1058_v19 = vunpack.c.l.bf16 %v1057_v12  ;;  %vm979_vm3 = vcmask 31744   ;;  %s1491_s9 = smov [#allocation20]  }
  0xb9   :  { %1104 = vmatprep.subr.bf16.mxu1 %v1489_v5  ;;  %1116 = vmatprep.subr.bf16.mxu0 %v1489_v5  ;;  %v823_v9 = vld [vmem:[#allocation15 + $0x20] sm:$0xff]  ;;  %175 = vst.msk [vmem:[#allocation2 + $0x8] sm:$0xff] %vm173_vm1, %v1489_v5  ;;  %176 = vst.msk [vmem:[#allocation2 + $0x10] sm:$0xff] %vm173_vm1, %v1489_v5  ;;  %v822_v10 = vld [vmem:[#allocation15 + $0x18] sm:$0xff]  ;;  %s993_s15 = sshll.u32 %s1491_s9, 4  ;;  %s994_s15 = int_to_ptr.vmem [resolvable:$true] %s993_s15 }
  0xba   :  { %1106 = vmatprep.mubr.msk.bf16.mxu1 %vm1490_vm0, %v1489_v5  ;;  %1118 = vmatprep.mubr.msk.bf16.mxu0 %vm1490_vm0, %v1489_v5  ;;  %177 = vst.msk [vmem:[#allocation2 + $0x18] sm:$0xff] %vm173_vm1, %v1489_v5  ;;  %178 = vst.msk [vmem:[#allocation2 + $0x20] sm:$0xff] %vm173_vm1, %v1489_v5  ;;  %v824_v11 = vld [vmem:[#allocation15 + $0x28] sm:$0xff]  ;;  %v1724_v13 = vld [vmem:[#allocation3 + $0x10] sm:$0xff]   ;;  %s1436_s3 = scalar_lea.vmem %s994_s15, 1024  ;;  %p1441_p11 = scmp.lt.s32.totalorder %s994_s15, %s994_s15 }
  0xbb   :  { %179 = vst.msk [vmem:[#allocation2 + $0x28] sm:$0xff] %vm173_vm1, %v1489_v5  ;;  %180 = vst.msk [vmem:[#allocation2 + $0x30] sm:$0xff] %vm173_vm1, %v1489_v5  ;;  %v1072_v16 = vld [vmem:[#allocation3 + $0x8] sm:$0xff]   ;;  %v1067_v18 = vunpack.c.h.bf16 %v1724_v13  ;;  %v1066_v20 = vunpack.c.l.bf16 %v1724_v13  ;;  %v249_v25 = vld [vmem:[#allocation9] sm:$0x3]  ;;  %p1437_p10 = scmp.ne.s32.totalorder %s994_s15, %s1436_s3  ;;  %p1442_p12 = scmp.lt.s32.totalorder %s1436_s3, %s1436_s3 }
  0xbc   :  { %234 = vperm.xlu1 %1193, %v226_v3   ;;  %213 = vperm.xlu0 %1192, %v205_v4   ;;  %181 = vst.msk [vmem:[#allocation2 + $0x38] sm:$0xff] %vm173_vm1, %v1489_v5  ;;  %v1047_v21 = vunpack.c.h.bf16 %v1072_v16  ;;  %v1046_v22 = vunpack.c.l.bf16 %v1072_v16  ;;  %v250_v30 = vld [vmem:[#allocation9 + $0x2] sm:$0x3]  ;;  %v253_v31 = vld [vmem:[#allocation9 + $0x8] sm:$0x3]  ;;  %v257_v38 = vunpack.c.l.s8.bf16 %v249_v25  ;;  %v1074_v42 = vld [vmem:[#allocation3 + $0x18] sm:$0xff]  }
  0xbd   :  { %v254_v32 = vld [vmem:[#allocation9 + $0xa] sm:$0x3]  ;;  %v258_v39 = vunpack.c.l.s8.bf16 %v250_v30  ;;  %v261_v40 = vunpack.c.l.s8.bf16 %v253_v31  ;;  %v1055_v46 = vunpack.c.h.bf16 %v1074_v42  ;;  %v1194_v51 = vld [vmem:[#allocation12] sm:$0xff]   ;;  %v1054_v58 = vunpack.c.l.bf16 %v1074_v42  ;;  %v1196_v31 = vld [vmem:[#allocation11] sm:$0xff]   ;;  %p1443_p13 = por %p1442_p12, %p1441_p11 }
  0xbe   :  { %v262_v41 = vunpack.c.l.s8.bf16 %v254_v32  ;;  %v251_v57 = vld [vmem:[#allocation9 + $0x4] sm:$0x3]  ;;  %v252_v61 = vld [vmem:[#allocation9 + $0x6] sm:$0x3]  ;;  %v1195_v63 = vld [vmem:[#allocation12 + $0x8] sm:$0xff]  }
  0xbf   :  { %v1012_v55 = vcombine.low %v257_v38, %v258_v39  ;;  %v1197_v32 = vld [vmem:[#allocation11 + $0x8] sm:$0xff]   ;;  %p1444_p0 = pnand %p1443_p13, %p1437_p10 }
  0xc0   :  { %515 = vperm.xlu1 %1193, %v205_v4   ;;  %510 = vperm.xlu0 %1192, %v204_v2   ;;  %v1016_v56 = vcombine.low %v261_v40, %v262_v41  ;;  %v259_v2 = vunpack.c.l.s8.bf16 %v251_v57 }
  0xc2   :  { %v270_v38 = vld [vmem:[#allocation2 + $0x28] sm:$0xff] }
  0xc4   :  { %535 = vperm.xlu1 %1193, %v226_v3   ;;  %530 = vperm.xlu0 %1192, %v225_v1  }
  0xc8   :  { %829 = vperm.xlu1 %1193, %v819_v6   ;;  %834 = vperm.xlu0 %1192, %v820_v7   ;;  %v260_v7 = vunpack.c.l.s8.bf16 %v252_v61  ;;  %v272_v61 = vld [vmem:[#allocation2 + $0x38] sm:$0xff] }
  0xcc   :  { %839 = vperm.xlu1 %1193, %v821_v8   ;;  %849 = vperm.xlu0 %1192, %v823_v9  }
  0xd0   :  { %844 = vperm.xlu1 %1193, %v822_v10  }
  0xd4   :  { %854 = vperm.xlu1 %1193, %v824_v11  }
 0x137   :  { %v1726_v14 = vpop.permute.xlu1 %229  ;;  %v1728_v15 = vpop.permute.xlu0 %208 }
 0x138   :  { %v216_v26 = vmul.f32 %v1058_v19, %v1728_v15  ;;  %v220_v28 = vmul.f32 %v1066_v20, %v1728_v15  ;;  %v218_v43 = vmul.f32 %v1046_v22, %v1728_v15  ;;  %v222_v8 = vmul.f32 %v1054_v58, %v1728_v15 }
 0x139   :  { %v1014_v15 = vcombine.low %v259_v2, %v260_v7 }
 0x13a   :  { %v237_v44 = vadd.f32 %v1726_v14, %v216_v26  ;;  %v241_v45 = vadd.f32 %v1726_v14, %v220_v28  ;;  %v239_v59 = vadd.f32 %v1726_v14, %v218_v43 }
 0x13b   :  { %v1732_v23 = vpop.permute.xlu1 %234  ;;  %v214_v24 = vpop.permute.xlu0 %213 }
 0x13c   :  { %v217_v27 = vmul.f32 %v1059_v17, %v214_v24  ;;  %v221_v29 = vmul.f32 %v1067_v18, %v214_v24  ;;  %v219_v33 = vmul.f32 %v1047_v21, %v214_v24  ;;  %v223_v0 = vmul.f32 %v1055_v46, %v214_v24 }
 0x13e   :  { %v238_v34 = vadd.f32 %v1732_v23, %v217_v27  ;;  %v242_v35 = vadd.f32 %v1732_v23, %v221_v29  ;;  %v240_v47 = vadd.f32 %v1732_v23, %v219_v33  ;;  %v244_v13 = vadd.f32 %v1732_v23, %v223_v0  ;;  %v265_v33 = vld [vmem:[#allocation2] sm:$0xff] }
 0x13f   :  { %v1738_v36 = vpop.permute.xlu1 %515  ;;  %v1740_v37 = vpop.permute.xlu0 %510 }
 0x140   :  { %v519_v48 = vmul.f32 %v1059_v17, %v1738_v36  ;;  %v245_v49 = vpack.c.bf16 %v238_v34, %v237_v44  ;;  %v247_v50 = vpack.c.bf16 %v242_v35, %v241_v45  ;;  %v518_v52 = vmul.f32 %v1058_v19, %v1740_v37  ;;  %v255_v19 = vld [vmem:[#allocation9 + $0xc] sm:$0x3]  ;;  %v269_v34 = vld [vmem:[#allocation2 + $0x20] sm:$0xff] }
 0x141   :  { %v246_v1 = vpack.c.bf16 %v240_v47, %v239_v59  ;;  %v521_v3 = vmul.f32 %v1047_v21, %v1738_v36  ;;  %v520_v4 = vmul.f32 %v1046_v22, %v1740_v37  ;;  %v523_v9 = vmul.f32 %v1067_v18, %v1738_v36  ;;  %v271_v59 = vld [vmem:[#allocation2 + $0x30] sm:$0xff] }
 0x142   :  { %1105 = vmatpush3.bf16.msra.mxu1 %v245_v49  ;;  %1117 = vmatpush3.bf16.msra.mxu0 %v247_v50  ;;  %v522_v10 = vmul.f32 %v1066_v20, %v1740_v37  ;;  %v243_v18 = vadd.f32 %v1726_v14, %v222_v8  ;;  %v256_v20 = vld [vmem:[#allocation9 + $0xe] sm:$0x3]  ;;  %v525_v25 = vmul.f32 %v1055_v46, %v1738_v36  ;;  %v263_v26 = vunpack.c.l.s8.bf16 %v255_v19  ;;  %v268_v50 = vld [vmem:[#allocation2 + $0x18] sm:$0xff] }
 0x143   :  { %v536_v53 = vpop.permute.xlu1 %535  ;;  %v531_v54 = vpop.permute.xlu0 %530  ;;  %1110 = vmatprep.subr.bf16.mxu1 %v1489_v5  ;;  %1128 = vmatprep.subr.bf16.mxu0 %v1194_v51  ;;  %v524_v23 = vmul.f32 %v1054_v58, %v1740_v37  ;;  %v264_v27 = vunpack.c.l.s8.bf16 %v256_v20  ;;  %v266_v36 = vld [vmem:[#allocation2 + $0x8] sm:$0xff] }
 0x144   :  { %v539_v60 = vadd.f32 %v536_v53, %v519_v48  ;;  %v538_v62 = vadd.f32 %v531_v54, %v518_v52  ;;  %v541_v11 = vadd.f32 %v536_v53, %v521_v3  ;;  %v540_v12 = vadd.f32 %v531_v54, %v520_v4  ;;  %v267_v48 = vld [vmem:[#allocation2 + $0x10] sm:$0xff] }
 0x145   :  { %1107 = vmatmul.mubr.msk.bf16.vlgmr.msra.gmra.mrb[0].mxu1 %vm278_vm2, %v1012_v55  ;;  %1119 = vmatmul.mubr.msk.bf16.vlgmr.msra.gmra.mrb[0].mxu0 %vm278_vm2, %v1016_v56  ;;  %v543_v16 = vadd.f32 %v536_v53, %v523_v9  ;;  %v542_v17 = vadd.f32 %v531_v54, %v522_v10  ;;  %v248_v22 = vpack.c.bf16 %v244_v13, %v243_v18  ;;  %v1032_v13 = vld [vmem:[#allocation14] ss:$0 sm:$0xff] }
 0x146   :  { %v546_v6 = vpack.c.bf16 %v539_v60, %v538_v62  ;;  %1111 = vmatpush3.bf16.msra.mxu1 %v246_v1  ;;  %1129 = vmatpush3.bf16.msra.mxu0 %v1194_v51  ;;  %v547_v21 = vpack.c.bf16 %v541_v11, %v540_v12  ;;  %v545_v14 = vadd.f32 %v536_v53, %v525_v25 }
 0x147   :  { %1130 = vmatprep.subr.bf16.mxu0 %v1195_v63  ;;  %1112 = vmatprep.mubr.msk.bf16.mxu1 %vm1490_vm0, %v1489_v5  ;;  %v548_v24 = vpack.c.bf16 %v543_v16, %v542_v17  ;;  %v544_v28 = vadd.f32 %v531_v54, %v524_v23  ;;  %v1018_v29 = vcombine.low %v263_v26, %v264_v27 }
 0x148   :  { %1132 = vmatprep.mubr.msk.bf16.mxu0 %vm173_vm1, %v546_v6  ;;  %1122 = vmatprep.subr.bf16.mxu1 %v1489_v5 }
 0x149   :  { %v549_v30 = vpack.c.bf16 %v545_v14, %v544_v28 }
 0x14a   :  { %1131 = vmatpush3.bf16.msra.mxu0 %v1195_v63 }
 0x14b   :  { %1140 = vmatprep.subr.bf16.mxu0 %v1196_v31 }
 0x14d   :  { %1113 = vmatmul.mubr.msk.bf16.vlgmr.msra.gmra.mrb[4].mxu1 %vm278_vm2, %v1014_v15  ;;  %1133 = vmatmul.mubr.msk.bf16.vlgmr.msra.gmra.mrb[4].mxu0 %vm173_vm1, %v547_v21 }
 0x14e   :  { %1123 = vmatpush3.bf16.msra.mxu1 %v248_v22  ;;  %1136 = vmatprep.mubr.msk.bf16.mxu0 %vm173_vm1, %v548_v24 }
 0x14f   :  { %1124 = vmatprep.mubr.msk.bf16.mxu1 %vm1490_vm0, %v1489_v5  ;;  %1141 = vmatpush3.bf16.msra.mxu0 %v1196_v31 }
 0x150   :  { %1142 = vmatprep.subr.bf16.mxu0 %v1197_v32 }
 0x153   :  { %1143 = vmatpush3.bf16.msra.mxu0 %v1197_v32 }
 0x155   :  { %1125 = vmatmul.mubr.msk.bf16.vlgmr.msra.gmra.mrb[8].mxu1 %vm278_vm2, %v1018_v29  ;;  %1137 = vmatmul.mubr.msk.bf16.gmra.mrb[8].mxu0 %vm173_vm1, %v549_v30 }
 0x218   :  { %v316_v35 = vpop.f32.mrb[0].mxu1  ;;  %v414_v37 = vpop.f32.mrb[0].mxu0 }
 0x219   :  { %v470_v39 = vadd.f32 %v316_v35, %v265_v33  ;;  %v1108_v5 = vpop.f32.mrb[1].mxu1  ;;  %v474_v40 = vadd.f32 %v414_v37, %v269_v34  ;;  %v1120_v41 = vpop.f32.mrb[1].mxu0 }
 0x21a   :  { %v319_v42 = vpop.f32.mrb[2].mxu1  ;;  %v417_v43 = vpop.f32.mrb[2].mxu0 }
 0x21b   :  { %479 = vst.msk [vmem:[#allocation2] sm:$0xff] %vm173_vm1, %v470_v39  ;;  %v471_v44 = vadd.f32 %v319_v42, %v266_v36  ;;  %v1109_v45 = vpop.f32.mrb[3].mxu1  ;;  %483 = vst.msk [vmem:[#allocation2 + $0x20] sm:$0xff] %vm173_vm1, %v474_v40  ;;  %v475_v46 = vadd.f32 %v417_v43, %v270_v38  ;;  %v1121_v47 = vpop.f32.mrb[3].mxu0 }
 0x21c   :  { %v826_v45 = vld [vmem:[#allocation15 + $0x38] sm:$0xff]  ;;  %v825_v47 = vld [vmem:[#allocation15 + $0x30] sm:$0xff] }
 0x21d   :  { %480 = vst.msk [vmem:[#allocation2 + $0x8] sm:$0xff] %vm173_vm1, %v471_v44  ;;  %484 = vst.msk [vmem:[#allocation2 + $0x28] sm:$0xff] %vm173_vm1, %v475_v46  ;;  %v1198_v46 = vld [vmem:[#allocation17] sm:$0xff]  }
 0x21e   :  { %1152 = vmatprep.subr.bf16.mxu1 %v1198_v46 }
 0x21f   :  { %1153 = vmatpush3.bf16.msra.mxu1 %v1198_v46 }
 0x220   :  { %v365_v49 = vpop.f32.mrb[4].mxu1 }
 0x221   :  { %v472_v51 = vadd.f32 %v365_v49, %v267_v48  ;;  %v1114_v52 = vpop.f32.mrb[5].mxu1  ;;  %v1199_v48 = vld [vmem:[#allocation17 + $0x8] sm:$0xff]   ;;  %v830_v49 = vpop.permute.xlu1 %829 }
 0x222   :  { %v368_v53 = vpop.f32.mrb[6].mxu1  ;;  %v550_v56 = vld [vmem:[#allocation2] sm:$0xff]  ;;  %1154 = vmatprep.subr.bf16.mxu1 %v1199_v48 }
 0x223   :  { %481 = vst.msk [vmem:[#allocation2 + $0x10] sm:$0xff] %vm173_vm1, %v472_v51  ;;  %v473_v54 = vadd.f32 %v368_v53, %v268_v50  ;;  %v1115_v55 = vpop.f32.mrb[7].mxu1  ;;  %v554_v0 = vld [vmem:[#allocation2 + $0x20] sm:$0xff]  ;;  %1155 = vmatpush3.bf16.msra.mxu1 %v1199_v48  ;;  %v835_v51 = vpop.permute.xlu0 %834 }
 0x224   :  { %v551_v57 = vld [vmem:[#allocation2 + $0x8] sm:$0xff] }
 0x225   :  { %482 = vst.msk [vmem:[#allocation2 + $0x18] sm:$0xff] %vm173_vm1, %v473_v54  ;;  %v558_v58 = vpack.c.bf16 %v551_v57, %v550_v56  ;;  %v555_v1 = vld [vmem:[#allocation2 + $0x28] sm:$0xff]  ;;  %v840_v50 = vpop.permute.xlu1 %839 }
 0x226   :  { %v560_v8 = vpack.c.bf16 %v555_v1, %v554_v0 }
 0x227   :  { %1144 = vmatprep.mubr.msk.bf16.mxu0 %vm173_vm1, %v558_v58  ;;  %v850_v53 = vpop.permute.xlu0 %849 }
 0x228   :  { %v463_v60 = vpop.f32.mrb[8].mxu1 }
 0x229   :  { %v476_v62 = vadd.f32 %v463_v60, %v271_v59  ;;  %v1126_v63 = vpop.f32.mrb[9].mxu1  ;;  %v845_v52 = vpop.permute.xlu1 %844 }
 0x22a   :  { %v466_v2 = vpop.f32.mrb[10].mxu1  ;;  %v552_v6 = vld [vmem:[#allocation2 + $0x10] sm:$0xff] }
 0x22b   :  { %485 = vst.msk [vmem:[#allocation2 + $0x30] sm:$0xff] %vm173_vm1, %v476_v62  ;;  %v477_v3 = vadd.f32 %v466_v2, %v272_v61  ;;  %v1127_v4 = vpop.f32.mrb[11].mxu1 }
 0x22c   :  { %v553_v7 = vld [vmem:[#allocation2 + $0x18] sm:$0xff] }
 0x22d   :  { %486 = vst.msk [vmem:[#allocation2 + $0x38] sm:$0xff] %vm173_vm1, %v477_v3  ;;  %v559_v9 = vpack.c.bf16 %v553_v7, %v552_v6  ;;  %v855_v54 = vpop.permute.xlu1 %854 }
 0x22f   :  { %1145 = vmatmul.mubr.msk.bf16.vlgmr.msra.gmra.mrb[4].mxu0 %vm173_vm1, %v559_v9 }
 0x230   :  { %1148 = vmatprep.mubr.msk.bf16.mxu0 %vm173_vm1, %v560_v8 }
 0x232   :  { %v556_v10 = vld [vmem:[#allocation2 + $0x30] sm:$0xff] }
 0x234   :  { %v557_v11 = vld [vmem:[#allocation2 + $0x38] sm:$0xff] }
 0x235   :  { %v561_v12 = vpack.c.bf16 %v557_v11, %v556_v10 }
 0x237   :  { %1149 = vmatmul.mubr.msk.bf16.gmra.mrb[8].mxu0 %vm173_vm1, %v561_v12 }
 0x302   :  { %v1146_v16 = vpop.f32.mrb[4].mxu0 }
 0x303   :  { %v1784_v17 = vadd.f32 %v1146_v16, %v1032_v13  ;;  %v717_v15 = vpop.f32.mrb[5].mxu0 }
 0x304   :  { %v1786_v18 = vadd.f32 %v1032_v13, %v717_v15  ;;  %v1147_v19 = vpop.f32.mrb[6].mxu0 }
 0x305   :  { %v720_v20 = vpop.f32.mrb[7].mxu0  ;;  %v765_v21 = vmul.f32 %v1784_v17, %v1784_v17  ;;  %v1790_v22 = vadd.f32 %v1147_v19, %v1032_v13 }
 0x306   :  { %v1792_v24 = vadd.f32 %v1032_v13, %v720_v20  ;;  %v763_v23 = vmul.f32 %v1786_v18, %v1786_v18 }
 0x307   :  { %v777_v25 = vsel %vm173_vm1, %v765_v21, 0.0  ;;  %v766_v28 = vmul.f32 %v1790_v22, %v1790_v22 }
 0x308   :  { %778 = vadd.xlane.f32.xlu0 %v777_v25  ;;  %v764_v26 = vmul.f32 %v1792_v24, %v1792_v24  ;;  %v771_v31 = vsel %vm173_vm1, %v763_v23, 0.0 }
 0x309   :  { %v780_v37 = vsel %vm173_vm1, %v766_v28, 0.0 }
 0x30a   :  { %v1150_v27 = vpop.f32.mrb[8].mxu0  ;;  %v774_v14 = vsel %vm173_vm1, %v764_v26, 0.0 }
 0x30b   :  { %v1802_v29 = vadd.f32 %v1150_v27, %v1032_v13  ;;  %775 = vadd.xlane.f32.xlu1 %v774_v14  ;;  %v733_v30 = vpop.f32.mrb[9].mxu0 }
 0x30c   :  { %v1805_v32 = vadd.f32 %v1032_v13, %v733_v30  ;;  %772 = vadd.xlane.f32.xlu0 %v771_v31  ;;  %v1151_v33 = vpop.f32.mrb[10].mxu0 }
 0x30d   :  { %v1807_v34 = vadd.f32 %v1151_v33, %v1032_v13  ;;  %v736_v35 = vpop.f32.mrb[11].mxu0  ;;  %v769_v36 = vmul.f32 %v1802_v29, %v1802_v29 }
 0x30e   :  { %v1812_v38 = vadd.f32 %v1032_v13, %v736_v35  ;;  %v767_v5 = vmul.f32 %v1805_v32, %v1805_v32 }
 0x30f   :  { %v789_v39 = vsel %vm173_vm1, %v769_v36, 0.0  ;;  %v770_v40 = vmul.f32 %v1807_v34, %v1807_v34 }
 0x310   :  { %781 = vadd.xlane.f32.xlu0 %v780_v37  ;;  %790 = vadd.xlane.f32.xlu1 %v789_v39  ;;  %v783_v41 = vsel %vm173_vm1, %v767_v5, 0.0  ;;  %v768_v43 = vmul.f32 %v1812_v38, %v1812_v38 }
 0x311   :  { %v792_v42 = vsel %vm173_vm1, %v770_v40, 0.0 }
 0x312   :  { %v786_v44 = vsel %vm173_vm1, %v768_v43, 0.0 }
 0x314   :  { %784 = vadd.xlane.f32.xlu1 %v783_v41  ;;  %793 = vadd.xlane.f32.xlu0 %v792_v42 }
 0x318   :  { %787 = vadd.xlane.f32.xlu0 %v786_v44 }
 0x325   :  { %864 = vperm.xlu1 %1193, %v826_v45  }
 0x32e   :  { %859 = vperm.xlu0 %1192, %v825_v47  }
 0x395   :  { %v779_v55 = vpop.xlane.xlu0 %778 }
 0x396   :  { %v797_v56 = vmax.f32 %v779_v55, 1e-24 }
 0x398   :  { %v776_v57 = vpop.xlane.xlu1 %775  ;;  %1200 = vrsqrt.f32 %v797_v56 }
 0x399   :  { %v796_v58 = vmax.f32 %v776_v57, 1e-24  ;;  %v773_v59 = vpop.xlane.xlu0 %772 }
 0x39a   :  { %v795_v60 = vmax.f32 %v773_v59, 1e-24 }
 0x39b   :  { %1202 = vrsqrt.f32 %v796_v58 }
 0x39c   :  { %1204 = vrsqrt.f32 %v795_v60 }
 0x39d   :  { %v782_v61 = vpop.xlane.xlu0 %781  ;;  %v791_v62 = vpop.xlane.xlu1 %790 }
 0x39e   :  { %v798_v63 = vmax.f32 %v782_v61, 1e-24  ;;  %v801_v0 = vmax.f32 %v791_v62, 1e-24 }
 0x3a0   :  { %1206 = vrsqrt.f32 %v798_v63 }
 0x3a1   :  { %v785_v1 = vpop.xlane.xlu1 %784  ;;  %v794_v2 = vpop.xlane.xlu0 %793  ;;  %1208 = vrsqrt.f32 %v801_v0 }
 0x3a2   :  { %v799_v3 = vmax.f32 %v785_v1, 1e-24  ;;  %v802_v4 = vmax.f32 %v794_v2, 1e-24  ;;  %v1201_v6 = vpop.eup %1200 }
 0x3a3   :  { %v813_v16 = vmul.f32 %v1201_v6, %v1784_v17 }
 0x3a4   :  { %1210 = vrsqrt.f32 %v799_v3 }
 0x3a5   :  { %v1203_v7 = vpop.eup %1202  ;;  %1212 = vrsqrt.f32 %v802_v4  ;;  %v788_v8 = vpop.xlane.xlu0 %787  ;;  %v869_v23 = vmul.f32 %v840_v50, %v813_v16 }
 0x3a6   :  { %v1205_v9 = vpop.eup %1204  ;;  %v800_v10 = vmax.f32 %v788_v8, 1e-24  ;;  %v812_v11 = vmul.f32 %v1203_v7, %v1792_v24  ;;  %v865_v31 = vpop.permute.xlu1 %864 }
 0x3a7   :  { %v811_v12 = vmul.f32 %v1205_v9, %v1786_v18 }
 0x3a8   :  { %1214 = vrsqrt.f32 %v800_v10  ;;  %v868_v13 = vmul.f32 %v835_v51, %v812_v11 }
 0x3a9   :  { %v867_v15 = vmul.f32 %v830_v49, %v811_v12 }
 0x3aa   :  { %v1207_v19 = vpop.eup %1206 }
 0x3ab   :  { %v814_v20 = vmul.f32 %v1207_v19, %v1790_v22  ;;  %v875_v21 = vpack.c.bf16 %v868_v13, %v867_v15  ;;  %v1209_v25 = vpop.eup %1208 }
 0x3ac   :  { %v817_v30 = vmul.f32 %v1209_v25, %v1802_v29 }
 0x3ad   :  { %1156 = vmatprep.mubr.msk.bf16.mxu1 %vm173_vm1, %v875_v21  ;;  %v870_v26 = vmul.f32 %v845_v52, %v814_v20  ;;  %v860_v22 = vpop.permute.xlu0 %859 }
 0x3ae   :  { %v1211_v27 = vpop.eup %1210  ;;  %v873_v39 = vmul.f32 %v860_v22, %v817_v30 }
 0x3af   :  { %v1213_v14 = vpop.eup %1212  ;;  %v876_v28 = vpack.c.bf16 %v870_v26, %v869_v23  ;;  %v815_v18 = vmul.f32 %v1211_v27, %v1805_v32 }
 0x3b0   :  { %v818_v24 = vmul.f32 %v1213_v14, %v1807_v34  ;;  %v1033_v34 = vld [vmem:[#allocation18] ss:$0 sm:$0xff] }
 0x3b1   :  { %1157 = vmatmul.mubr.msk.bf16.vlgmr.msra.gmra.mrb[12].mxu1 %vm173_vm1, %v876_v28  ;;  %v871_v36 = vmul.f32 %v850_v53, %v815_v18 }
 0x3b2   :  { %v1215_v17 = vpop.eup %1214  ;;  %v874_v35 = vmul.f32 %v865_v31, %v818_v24 }
 0x3b3   :  { %v816_v33 = vmul.f32 %v1215_v17, %v1812_v38 }
 0x3b4   :  { %v878_v40 = vpack.c.bf16 %v874_v35, %v873_v39 }
 0x3b5   :  { %v872_v37 = vmul.f32 %v855_v54, %v816_v33 }
 0x3b7   :  { %v877_v5 = vpack.c.bf16 %v872_v37, %v871_v36 }
 0x3b9   :  { %1160 = vmatprep.mubr.msk.bf16.mxu1 %vm173_vm1, %v877_v5 }
 0x3ba   :  { %1161 = vmatmul.mubr.msk.bf16.gmra.mrb[16].mxu1 %vm173_vm1, %v878_v40 }
 0x484   :  { %v1158_v41 = vpop.f32.mrb[12].mxu1 }
 0x485   :  { %v957_v32 = vadd.f32 %v1158_v41, %v1033_v34  ;;  %v948_v42 = vpop.f32.mrb[13].mxu1 }
 0x486   :  { %v949_v29 = vadd.f32 %v1033_v34, %v948_v42  ;;  %v1159_v43 = vpop.f32.mrb[14].mxu1 }
 0x487   :  { %982 = vst.msk [vmem:[#allocation20 + $0x10] sm:$0xff] %vm979_vm3, %v957_v32  ;;  %v960_v38 = vadd.f32 %v1159_v43, %v1033_v34  ;;  %v951_v44 = vpop.f32.mrb[15].mxu1 }
 0x488   :  { %980 = vst.msk [vmem:[#allocation20] sm:$0xff] %vm979_vm3, %v949_v29  ;;  %v952_v45 = vadd.f32 %v1033_v34, %v951_v44 }
 0x489   :  { %983 = vst.msk [vmem:[#allocation20 + $0x18] sm:$0xff] %vm979_vm3, %v960_v38 }
 0x48a   :  { %981 = vst.msk [vmem:[#allocation20 + $0x8] sm:$0xff] %vm979_vm3, %v952_v45 }
 0x48d   :  { %v1162_v46 = vpop.f32.mrb[16].mxu1 }
 0x48e   :  { %v973_v47 = vadd.f32 %v1162_v46, %v1033_v34  ;;  %v964_v48 = vpop.f32.mrb[17].mxu1 }
 0x48f   :  { %v965_v49 = vadd.f32 %v1033_v34, %v964_v48  ;;  %v1163_v50 = vpop.f32.mrb[18].mxu1 }
 0x490   :  { %986 = vst.msk [vmem:[#allocation20 + $0x30] sm:$0xff] %vm979_vm3, %v973_v47  ;;  %v976_v51 = vadd.f32 %v1163_v50, %v1033_v34  ;;  %v967_v52 = vpop.f32.mrb[19].mxu1 }
 0x491   :  { %984 = vst.msk [vmem:[#allocation20 + $0x20] sm:$0xff] %vm979_vm3, %v965_v49  ;;  %v968_v53 = vadd.f32 %v1033_v34, %v967_v52 }
 0x492   :  { %987 = vst.msk [vmem:[#allocation20 + $0x38] sm:$0xff] %vm979_vm3, %v976_v51 }
 0x493   :  { %985 = vst.msk [vmem:[#allocation20 + $0x28] sm:$0xff] %vm979_vm3, %v968_v53 }
 0x494   :  { %1447 = shalt.err (!%p1444_p0)
}
 0x495   :  { %s1448_s14 = scalar_lea.hbm %s1869_s10, 1024 }
 0x496   :  { %p1449_p1 = scmp.ne.s32.totalorder %s1869_s10, %s1448_s14  ;;  %p1452_p2 = scmp.lt.u32.totalorder %s1448_s14, %s1869_s10 }
 0x498   :  { %p1454_p3 = pnand %p1452_p2, %p1449_p1 }
 0x49a   :  { %1457 = shalt.err (!%p1454_p3)
}
 0x49b   :  { %999 = dma.vmem_to_hbm [thread:$0]  %s994_s15, 1024, %s1869_s10, [#allocation5], %s1473_s23, %s1473_s23, %s1474_s24  }
 0x49c   :  { %1470 = dma.done.wait [#allocation5], 1024  }
 0x49d   :  { %1471 = vsyncadd [#allocation5], 4294966272 }
 0x49e   :  { %1003 = vsyncpa [#allocation4], 1 }
 0x49f   :  { %1004 = vsyncpa [#allocation7], 1 }
 0x4a0   :  { %1005 = vsyncpa [#allocation10], 1 }
 0x4a1   :  { %1006 = vsyncpa [#allocation13], 1 }
 0x4a2   :  { %1007 = vsyncpa [#allocation16], 1 }
 0x4a3   :  { %1008 = vsyncpa [#allocation19], 1 }
 0x4a4   :  { %1009 = vsyncpa [#allocation5], 1 }

</bundles_post_ra>
